<compile_context>
chip_gen: v7x
topology: tpu7x:2x2x1
jax: 0.10.0
libtpu: 0.0.40
codegen_flags: <defaults>
</compile_context>

<pallas_src>
import functools
import math

import jax
import jax.numpy as jnp
from jax.experimental import pallas as pl
from jax.experimental.pallas import tpu as pltpu

SMOOTH = 1e-10                         # smooth in softDiceLoss._dice_loss
EPS_NORM = 1e-8                        # eps in _l2_normalize
MAX_LANES = 8192                       # spatial tile (lanes) upper bound per grid step
VMEM_TILE_BUDGET = 20 * 1024 * 1024    # target bytes for the double-buffered big tiles
VMEM_LIMIT_BYTES = 32 * 1024 * 1024    # explicit scoped-VMEM cap (safe on v5e/v6e/v7x)


# ------------------------------------------------------------------ in-kernel helpers


def _affine_unrolled(xs, w_ref, bias_ref, C, K):
    # z_k = bias[k] + sum_c W[k,c] * xs[c] ; W flattened row-major in SMEM (K*C,)
    zs = []
    for k in range(K):
        acc = xs[0] * w_ref[k * C + 0]
        for c in range(1, C):
            acc = acc + xs[c] * w_ref[k * C + c]
        zs.append(acc + bias_ref[k])
    return zs


def _softmax_unrolled(zs):
    # channel axis is unrolled in registers -> no cross-sublane max/sum reductions
    m = zs[0]
    for z in zs[1:]:
        m = jnp.maximum(m, z)
    es = [jnp.exp(z - m) for z in zs]
    tot = es[0]
    for e in es[1:]:
        tot = tot + e
    # EUP approx reciprocal + one Newton step: keeps full f32 accuracy for the
    # 1e-3/1e-5 check while moving the heavy part of the divide off the VALU slot.
    r = pl.reciprocal(tot, approx=True)
    inv = r * (2.0 - tot * r)
    return [e * inv for e in es]


def _pack_rows(scalars):
    # pack per-step scalar partials into one lane-dense (n, 128) slab (single vst)
    rows = [jnp.broadcast_to(s, (1, 128)) for s in scalars]
    return jnp.concatenate(rows, axis=0)


# ------------------------------------------------------------------ kernels


def _sumsq_kernel(d_ref, ssq_ref, *, B, C):
    # d_ref: (B, C, R, ts);  ssq_ref: (1, B, 128) lane-dense per-step per-sample partial
    vals = []
    for bb in range(B):
        acc = None
        for c in range(C):
            v = d_ref[bb, c]
            acc = v * v if acc is None else acc + v * v
        vals.append(jnp.sum(acc))
    ssq_ref[0] = _pack_rows(vals)


def _fwd_sums_kernel(w_ref, bias_ref, alpha_ref, x_ref, d_ref, sums_ref, *, B, C, K):
    # Fused: pred = softmax(Wx+b), p_hat = softmax(W(x+alpha*d)+b), per-class dice sums.
    # x_ref/d_ref: (B, C, R, ts); alpha_ref: SMEM (B,); sums_ref: (1, 3K, 128) partials.
    acc = [None] * (3 * K)
    for bb in range(B):
        a = alpha_ref[bb]
        xs = [x_ref[bb, c] for c in range(C)]
        xps = [xs[c] + a * d_ref[bb, c] for c in range(C)]
        pred = _softmax_unrolled(_affine_unrolled(xs, w_ref, bias_ref, C, K))
        phat = _softmax_unrolled(_affine_unrolled(xps, w_ref, bias_ref, C, K))
        for k in range(K):
            terms = (phat[k] * pred[k], phat[k] * phat[k], pred[k] * pred[k])
            for j, t in enumerate(terms):
                idx = 3 * k + j
                acc[idx] = t if acc[idx] is None else acc[idx] + t
    sums_ref[0] = _pack_rows([jnp.sum(a) for a in acc])


def _grad_kernel(w_ref, bias_ref, coef_ref, alpha_ref, x_ref, d_ref, g_ref, ssq_ref,
                 *, B, C, K):
    # Analytic d(mean-class-dice)/d(d_norm): dice -> softmax -> pointwise conv -> x+xi*d.
    # coef_ref (SMEM, 2K): xi * [A_0..A_{K-1}, C_0..C_{K-1}] with dL/dp_k = A_k*p_k - C_k*t_k
    # (the global xi factor of d.grad is folded into coef).
    vals = []
    for bb in range(B):
        a = alpha_ref[bb]
        xs = [x_ref[bb, c] for c in range(C)]
        xps = [xs[c] + a * d_ref[bb, c] for c in range(C)]
        pred = _softmax_unrolled(_affine_unrolled(xs, w_ref, bias_ref, C, K))
        phat = _softmax_unrolled(_affine_unrolled(xps, w_ref, bias_ref, C, K))

        gps = [coef_ref[k] * phat[k] - coef_ref[K + k] * pred[k] for k in range(K)]
        inner = gps[0] * phat[0]
        for k in range(1, K):
            inner = inner + gps[k] * phat[k]
        dzs = [phat[k] * (gps[k] - inner) for k in range(K)]

        ssq = None
        for c in range(C):
            g = dzs[0] * w_ref[0 * C + c]
            for k in range(1, K):
                g = g + dzs[k] * w_ref[k * C + c]
            g_ref[bb, c] = g                     # d.grad = xi * W^T dz (xi folded in coef)
            gg = g * g
            ssq = gg if ssq is None else ssq + gg
        vals.append(jnp.sum(ssq))
    ssq_ref[0] = _pack_rows(vals)


# ------------------------------------------------------------------ tiling helpers


def _choose_fold(S):
    # fold R spatial rows onto the 8 f32 sublanes, preferring lane-aligned S/R
    for r in (8, 4, 2, 1):
        if S % (r * 128) == 0:
            return r
    for r in (8, 4, 2, 1):
        if S % r == 0:
            return r
    return 1


def _spatial_tiles(S2, n_streams, B, C, R):
    # n_streams = number of full-size (B,C,R,ts) tensors moved per grid step
    lane_bytes = n_streams * 2 * B * C * R * 4        # double-buffered f32 bytes per lane
    if S2 % 128 != 0:
        # single full-extent block fallback (see TODO about padding + masking)
        if lane_bytes * S2 > VMEM_TILE_BUDGET:
            raise NotImplementedError(
                "unaligned spatial size too large for a single VMEM block; pad to a "
                "multiple of 128 lanes")
        return S2, 1
    cap = max(128, min(MAX_LANES, (VMEM_TILE_BUDGET // lane_bytes) // 128 * 128))
    ts = min(S2, cap)
    while S2 % ts != 0:
        ts -= 128
    if S2 // ts < 2:                                  # keep >=2 steps for v7x dual-TC
        t = (S2 // 2) // 128 * 128
        while t >= 128 and S2 % t != 0:
            t -= 128
        if t >= 128:
            ts = t
    return ts, S2 // ts


def _cparams():
    return pltpu.CompilerParams(dimension_semantics=("parallel",),
                                vmem_limit_bytes=VMEM_LIMIT_BYTES)


_SMEM = pl.BlockSpec(memory_space=pltpu.MemorySpace.SMEM)


# ------------------------------------------------------------------ pallas_call wrappers


def sumsq_per_sample(d_l):
    B, C, R, S2 = d_l.shape
    ts, nt = _spatial_tiles(S2, 1, B, C, R)
    part = pl.pallas_call(
        functools.partial(_sumsq_kernel, B=B, C=C),
        out_shape=jax.ShapeDtypeStruct((nt, B, 128), jnp.float32),
        grid=(nt,),
        in_specs=[pl.BlockSpec((B, C, R, ts), lambda i: (0, 0, 0, i))],
        out_specs=pl.BlockSpec((1, B, 128), lambda i: (i, 0, 0)),
        compiler_params=_cparams(),
    )(d_l)
    return part[:, :, 0].sum(axis=0)                  # (B,)


def fwd_dice_sums(x_l, d_l, alpha_b, w_flat, bias, K):
    B, C, R, S2 = x_l.shape
    ts, nt = _spatial_tiles(S2, 2, B, C, R)
    sums = pl.pallas_call(
        functools.partial(_fwd_sums_kernel, B=B, C=C, K=K),
        out_shape=jax.ShapeDtypeStruct((nt, 3 * K, 128), jnp.float32),
        grid=(nt,),
        in_specs=[
            _SMEM,                                           # W (flattened, K*C)
            _SMEM,                                           # bias (K,)
            _SMEM,                                           # alpha (B,)
            pl.BlockSpec((B, C, R, ts), lambda i: (0, 0, 0, i)),   # x
            pl.BlockSpec((B, C, R, ts), lambda i: (0, 0, 0, i)),   # d (raw direction)
        ],
        out_specs=pl.BlockSpec((1, 3 * K, 128), lambda i: (i, 0, 0)),
        compiler_params=_cparams(),
    )(w_flat, bias, alpha_b, x_l, d_l)
    return sums[:, :, 0].sum(axis=0)                  # (3K,)  [I_k, Z_k, Y_k] interleaved


def vat_grad(x_l, d_l, alpha_b, w_flat, bias, coef, K, alias_d=False):
    B, C, R, S2 = x_l.shape
    ts, nt = _spatial_tiles(S2, 3, B, C, R)
    extra = {"input_output_aliases": {5: 0}} if alias_d else {}
    g, ssq = pl.pallas_call(
        functools.partial(_grad_kernel, B=B, C=C, K=K),
        out_shape=(jax.ShapeDtypeStruct((B, C, R, S2), jnp.float32),
                   jax.ShapeDtypeStruct((nt, B, 128), jnp.float32)),
        grid=(nt,),
        in_specs=[
            _SMEM,                                           # W (flattened)
            _SMEM,                                           # bias
            _SMEM,                                           # xi * [A_k..., C_k...]
            _SMEM,                                           # alpha (B,)
            pl.BlockSpec((B, C, R, ts), lambda i: (0, 0, 0, i)),   # x
            pl.BlockSpec((B, C, R, ts), lambda i: (0, 0, 0, i)),   # d (raw direction)
        ],
        out_specs=(pl.BlockSpec((B, C, R, ts), lambda i: (0, 0, 0, i)),
                   pl.BlockSpec((1, B, 128), lambda i: (i, 0, 0))),
        compiler_params=_cparams(),
        **extra,
    )(w_flat, bias, coef, alpha_b, x_l, d_l)
    return g, ssq[:, :, 0].sum(axis=0)


# ------------------------------------------------------------------ VAT2d forward (Pallas hot path)


def vat2d_loss(x_nchw, d_init_nchw, w, bias, xi=10.0, epi=6.0, ip=1):
    """VAT2d.forward with a synthetic pointwise-conv model head (K = n_classes = 4)."""
    assert x_nchw.shape == d_init_nchw.shape
    B, C = x_nchw.shape[0], x_nchw.shape[1]
    S = math.prod(x_nchw.shape[2:])
    K = w.shape[0]

    R = _choose_fold(S)
    S2 = S // R

    # natural contiguous layout (free reshape; no transpose / HBM round trip)
    x_l = x_nchw.reshape(B, C, R, S2).astype(jnp.float32)
    d_l = d_init_nchw.reshape(B, C, R, S2).astype(jnp.float32)
    w_flat = w.reshape(-1).astype(jnp.float32)       # (K*C,) row-major
    bias_f = bias.astype(jnp.float32)                # (K,)

    def inv_from_ssq(ssq_b):                         # matches _l2_normalize: 1/(||d_b||+1e-8)
        return 1.0 / (jnp.sqrt(ssq_b) + EPS_NORM)

    # d0 = l2_normalize(d_init): only the per-sample norm is computed; the scaling is
    # folded into the consumer via the per-sample SMEM scalar alpha[b].
    inv_b = inv_from_ssq(sumsq_per_sample(d_l))

    for it in range(ip):
        alpha = (xi * inv_b).astype(jnp.float32)
        # pass A: dice sums of softmax(model(x + xi*normalize(d))) vs recomputed pred
        sums = fwd_dice_sums(x_l, d_l, alpha, w_flat, bias_f, K)
        I = sums[0::3]
        Z = sums[1::3]
        Y = sums[2::3]
        D = Z + Y + SMOOTH
        A = 2.0 * (2.0 * I + SMOOTH) / (D * D) / K   # dL/dp_k = A_k*p_k - C_k*t_k
        Cc = 2.0 / D / K
        coef = (xi * jnp.concatenate([A, Cc])).astype(jnp.float32)   # fold xi into coef

        # pass B: analytic grad wrt the normalized d (xi already inside coef)
        d_l, ssq_b = vat_grad(x_l, d_l, alpha, w_flat, bias_f, coef, K,
                              alias_d=(it > 0))
        inv_b = inv_from_ssq(ssq_b)

    # lds = softDice(softmax(model(x + epi*normalize(d))), pred) — sums only
    alpha = (epi * inv_b).astype(jnp.float32)
    sums = fwd_dice_sums(x_l, d_l, alpha, w_flat, bias_f, K)
    I = sums[0::3]
    Z = sums[1::3]
    Y = sums[2::3]
    return jnp.mean(1.0 - (2.0 * I + SMOOTH) / (Z + Y + SMOOTH))


# ------------------------------------------------------------------ plain-JAX reference


def _vat2d_loss_ref(x_nchw, d_init_nchw, w, bias, xi=10.0, epi=6.0, ip=1):
    B, C = x_nchw.shape[0], x_nchw.shape[1]
    S = math.prod(x_nchw.shape[2:])
    K = w.shape[0]
    xf = x_nchw.reshape(B, C, S).astype(jnp.float32)

    def model(xx):
        return jnp.einsum('kc,bcs->bks', w, xx,
                          precision=jax.lax.Precision.HIGHEST) + bias[None, :, None]

    def soft_dice(inputs, target):
        loss = 0.0
        for i in range(K):
            sc, tg = inputs[:, i], target[:, i]
            inter = jnp.sum(sc * tg)
            zs = jnp.sum(sc * sc)
            ys = jnp.sum(tg * tg)
            loss = loss + (1.0 - (2.0 * inter + SMOOTH) / (zs + ys + SMOOTH))
        return loss / K

    def norm(dd):
        n = jnp.sqrt(jnp.sum(dd.reshape(B, -1) ** 2, axis=1)).reshape(B, 1, 1)
        return dd / (n + EPS_NORM)

    pred = jax.nn.softmax(model(xf), axis=1)
    d = norm(d_init_nchw.reshape(B, C, S).astype(jnp.float32))
    for _ in range(ip):
        g = jax.grad(lambda dd: soft_dice(
            jax.nn.softmax(model(xf + xi * dd), axis=1), pred))(d)
        d = norm(g)
    p_hat = jax.nn.softmax(model(xf + epi * d), axis=1)
    return soft_dice(p_hat, pred)


# ------------------------------------------------------------------ main


if __name__ == "__main__":
    key = jax.random.PRNGKey(0)
    kx, kw, kb, kd = jax.random.split(key, 4)

    B, C, K, H, W = 2, 4, 4, 32, 32          # S = 1024 (8 sublane fold * 128 lanes)
    x = jax.random.normal(kx, (B, C, H, W), dtype=jnp.float32)
    w = jax.random.normal(kw, (K, C), dtype=jnp.float32) * 0.5
    bias = jax.random.normal(kb, (K,), dtype=jnp.float32) * 0.5
    # d = torch.rand(x.shape).sub(0.5)  (deterministic stand-in)
    d_init = jax.random.uniform(kd, (B, C, H, W), dtype=jnp.float32) - 0.5

    loss_fn = jax.jit(functools.partial(vat2d_loss, xi=10.0, epi=6.0, ip=1))
    lds = jax.block_until_ready(loss_fn(x, d_init, w, bias))
    lds_ref = jax.block_until_ready(
        _vat2d_loss_ref(x, d_init, w, bias, xi=10.0, epi=6.0, ip=1))

    assert jnp.allclose(lds, lds_ref, rtol=1e-3, atol=1e-5), (float(lds), float(lds_ref))
    print("KERNEL_OK")
</pallas_src>

<mosaic_0001>
module attributes {stable_mosaic.version = 11 : i64} {
  func.func @_sumsq_kernel(%arg0: i32, %arg1: memref<2x4x8x128xf32, #tpu.memory_space<vmem>>, %arg2: memref<1x2x128xf32, #tpu.memory_space<vmem>>) attributes {dimension_semantics = [#tpu.dimension_semantics<parallel>], iteration_bounds = array<i64: 1>, scalar_prefetch = 0 : i64, scratch_operands = 0 : i64, tpu.core_type = #tpu.core_type<tc>, window_params = [{transform_indices = @transform_0, window_bounds = array<i64: 2, 4, 8, 128>}, {transform_indices = @transform_1, window_bounds = array<i64: 1, 2, 128>}]} {
    %c0 = arith.constant 0 : index
    %c0_0 = arith.constant 0 : index
    %c0_1 = arith.constant 0 : index
    %c0_2 = arith.constant 0 : index
    %0 = vector.load %arg1[%c0, %c0_0, %c0_1, %c0_2] : memref<2x4x8x128xf32, #tpu.memory_space<vmem>>, vector<1x1x8x128xf32>
    %1 = vector.shape_cast %0 : vector<1x1x8x128xf32> to vector<8x128xf32>
    %2 = arith.mulf %1, %1 : vector<8x128xf32>
    %c0_3 = arith.constant 0 : index
    %c1 = arith.constant 1 : index
    %c0_4 = arith.constant 0 : index
    %c0_5 = arith.constant 0 : index
    %3 = vector.load %arg1[%c0_3, %c1, %c0_4, %c0_5] : memref<2x4x8x128xf32, #tpu.memory_space<vmem>>, vector<1x1x8x128xf32>
    %4 = vector.shape_cast %3 : vector<1x1x8x128xf32> to vector<8x128xf32>
    %5 = arith.mulf %4, %4 : vector<8x128xf32>
    %6 = arith.addf %2, %5 : vector<8x128xf32>
    %c0_6 = arith.constant 0 : index
    %c2 = arith.constant 2 : index
    %c0_7 = arith.constant 0 : index
    %c0_8 = arith.constant 0 : index
    %7 = vector.load %arg1[%c0_6, %c2, %c0_7, %c0_8] : memref<2x4x8x128xf32, #tpu.memory_space<vmem>>, vector<1x1x8x128xf32>
    %8 = vector.shape_cast %7 : vector<1x1x8x128xf32> to vector<8x128xf32>
    %9 = arith.mulf %8, %8 : vector<8x128xf32>
    %10 = arith.addf %6, %9 : vector<8x128xf32>
    %c0_9 = arith.constant 0 : index
    %c3 = arith.constant 3 : index
    %c0_10 = arith.constant 0 : index
    %c0_11 = arith.constant 0 : index
    %11 = vector.load %arg1[%c0_9, %c3, %c0_10, %c0_11] : memref<2x4x8x128xf32, #tpu.memory_space<vmem>>, vector<1x1x8x128xf32>
    %12 = vector.shape_cast %11 : vector<1x1x8x128xf32> to vector<8x128xf32>
    %13 = arith.mulf %12, %12 : vector<8x128xf32>
    %14 = arith.addf %10, %13 : vector<8x128xf32>
    %15 = vector.shape_cast %14 : vector<8x128xf32> to vector<1x8x128xf32>
    %cst = arith.constant dense<0.000000e+00> : vector<1xf32>
    %16 = vector.multi_reduction <add>, %15, %cst [1, 2] : vector<1x8x128xf32> to vector<1xf32>
    %17 = vector.shape_cast %16 : vector<1xf32> to vector<1x1x1xf32>
    %18 = vector.extract %17[0, 0, 0] : f32 from vector<1x1x1xf32>
    %c1_12 = arith.constant 1 : index
    %c0_13 = arith.constant 0 : index
    %c0_14 = arith.constant 0 : index
    %c0_15 = arith.constant 0 : index
    %19 = vector.load %arg1[%c1_12, %c0_13, %c0_14, %c0_15] : memref<2x4x8x128xf32, #tpu.memory_space<vmem>>, vector<1x1x8x128xf32>
    %20 = vector.shape_cast %19 : vector<1x1x8x128xf32> to vector<8x128xf32>
    %21 = arith.mulf %20, %20 : vector<8x128xf32>
    %c1_16 = arith.constant 1 : index
    %c1_17 = arith.constant 1 : index
    %c0_18 = arith.constant 0 : index
    %c0_19 = arith.constant 0 : index
    %22 = vector.load %arg1[%c1_16, %c1_17, %c0_18, %c0_19] : memref<2x4x8x128xf32, #tpu.memory_space<vmem>>, vector<1x1x8x128xf32>
    %23 = vector.shape_cast %22 : vector<1x1x8x128xf32> to vector<8x128xf32>
    %24 = arith.mulf %23, %23 : vector<8x128xf32>
    %25 = arith.addf %21, %24 : vector<8x128xf32>
    %c1_20 = arith.constant 1 : index
    %c2_21 = arith.constant 2 : index
    %c0_22 = arith.constant 0 : index
    %c0_23 = arith.constant 0 : index
    %26 = vector.load %arg1[%c1_20, %c2_21, %c0_22, %c0_23] : memref<2x4x8x128xf32, #tpu.memory_space<vmem>>, vector<1x1x8x128xf32>
    %27 = vector.shape_cast %26 : vector<1x1x8x128xf32> to vector<8x128xf32>
    %28 = arith.mulf %27, %27 : vector<8x128xf32>
    %29 = arith.addf %25, %28 : vector<8x128xf32>
    %c1_24 = arith.constant 1 : index
    %c3_25 = arith.constant 3 : index
    %c0_26 = arith.constant 0 : index
    %c0_27 = arith.constant 0 : index
    %30 = vector.load %arg1[%c1_24, %c3_25, %c0_26, %c0_27] : memref<2x4x8x128xf32, #tpu.memory_space<vmem>>, vector<1x1x8x128xf32>
    %31 = vector.shape_cast %30 : vector<1x1x8x128xf32> to vector<8x128xf32>
    %32 = arith.mulf %31, %31 : vector<8x128xf32>
    %33 = arith.addf %29, %32 : vector<8x128xf32>
    %34 = vector.shape_cast %33 : vector<8x128xf32> to vector<1x8x128xf32>
    %cst_28 = arith.constant dense<0.000000e+00> : vector<1xf32>
    %35 = vector.multi_reduction <add>, %34, %cst_28 [1, 2] : vector<1x8x128xf32> to vector<1xf32>
    %36 = vector.shape_cast %35 : vector<1xf32> to vector<1x1x1xf32>
    %37 = vector.extract %36[0, 0, 0] : f32 from vector<1x1x1xf32>
    %38 = vector.broadcast %18 : f32 to vector<1x128xf32>
    %39 = vector.broadcast %37 : f32 to vector<1x128xf32>
    %40 = tpu.concatenate %38, %39 in 0 : vector<1x128xf32>, vector<1x128xf32> -> vector<2x128xf32>
    %c0_29 = arith.constant 0 : index
    %c0_30 = arith.constant 0 : index
    %c0_31 = arith.constant 0 : index
    %41 = vector.load %arg2[%c0_29, %c0_30, %c0_31] : memref<1x2x128xf32, #tpu.memory_space<vmem>>, vector<1x2x128xf32>
    %42 = vector.shape_cast %41 : vector<1x2x128xf32> to vector<2x128xf32>
    %43 = vector.shape_cast %40 : vector<2x128xf32> to vector<1x2x128xf32>
    tpu.vector_store %arg2[%c0_29, %c0_30, %c0_31], %43 {strides = array<i32>} : memref<1x2x128xf32, #tpu.memory_space<vmem>>, vector<1x2x128xf32>,
    return
  }
  func.func @transform_0(%arg0: i32) -> (i32, i32, i32, i32) {
    %c0_i32 = arith.constant 0 : i32
    %c0_i32_0 = arith.constant 0 : i32
    %c0_i32_1 = arith.constant 0 : i32
    %c0_i32_2 = arith.constant 0 : i32
    return %c0_i32, %c0_i32_0, %c0_i32_1, %arg0 : i32, i32, i32, i32
  }
  func.func @transform_1(%arg0: i32) -> (i32, i32, i32) {
    %c0_i32 = arith.constant 0 : i32
    %c0_i32_0 = arith.constant 0 : i32
    %c0_i32_1 = arith.constant 0 : i32
    return %arg0, %c0_i32, %c0_i32_0 : i32, i32, i32
  }
}

module attributes {stable_mosaic.version = 11 : i64} {
  func.func @_fwd_sums_kernel(%arg0: i32, %arg1: memref<16xf32, #tpu.memory_space<smem>>, %arg2: memref<4xf32, #tpu.memory_space<smem>>, %arg3: memref<2xf32, #tpu.memory_space<smem>>, %arg4: memref<2x4x8x128xf32, #tpu.memory_space<vmem>>, %arg5: memref<2x4x8x128xf32, #tpu.memory_space<vmem>>, %arg6: memref<1x12x128xf32, #tpu.memory_space<vmem>>) attributes {dimension_semantics = [#tpu.dimension_semantics<parallel>], iteration_bounds = array<i64: 1>, scalar_prefetch = 0 : i64, scratch_operands = 0 : i64, tpu.core_type = #tpu.core_type<tc>, window_params = [{transform_indices = @transform_0, window_bounds = array<i64: 16>}, {transform_indices = @transform_1, window_bounds = array<i64: 4>}, {transform_indices = @transform_2, window_bounds = array<i64: 2>}, {transform_indices = @transform_3, window_bounds = array<i64: 2, 4, 8, 128>}, {transform_indices = @transform_4, window_bounds = array<i64: 2, 4, 8, 128>}, {transform_indices = @transform_5, window_bounds = array<i64: 1, 12, 128>}]} {
    %c0 = arith.constant 0 : index
    %0 = memref.load %arg3[%c0] : memref<2xf32, #tpu.memory_space<smem>>
    %c0_0 = arith.constant 0 : index
    %c0_1 = arith.constant 0 : index
    %c0_2 = arith.constant 0 : index
    %c0_3 = arith.constant 0 : index
    %1 = vector.load %arg4[%c0_0, %c0_1, %c0_2, %c0_3] : memref<2x4x8x128xf32, #tpu.memory_space<vmem>>, vector<1x1x8x128xf32>
    %2 = vector.shape_cast %1 : vector<1x1x8x128xf32> to vector<8x128xf32>
    %c0_4 = arith.constant 0 : index
    %c1 = arith.constant 1 : index
    %c0_5 = arith.constant 0 : index
    %c0_6 = arith.constant 0 : index
    %3 = vector.load %arg4[%c0_4, %c1, %c0_5, %c0_6] : memref<2x4x8x128xf32, #tpu.memory_space<vmem>>, vector<1x1x8x128xf32>
    %4 = vector.shape_cast %3 : vector<1x1x8x128xf32> to vector<8x128xf32>
    %c0_7 = arith.constant 0 : index
    %c2 = arith.constant 2 : index
    %c0_8 = arith.constant 0 : index
    %c0_9 = arith.constant 0 : index
    %5 = vector.load %arg4[%c0_7, %c2, %c0_8, %c0_9] : memref<2x4x8x128xf32, #tpu.memory_space<vmem>>, vector<1x1x8x128xf32>
    %6 = vector.shape_cast %5 : vector<1x1x8x128xf32> to vector<8x128xf32>
    %c0_10 = arith.constant 0 : index
    %c3 = arith.constant 3 : index
    %c0_11 = arith.constant 0 : index
    %c0_12 = arith.constant 0 : index
    %7 = vector.load %arg4[%c0_10, %c3, %c0_11, %c0_12] : memref<2x4x8x128xf32, #tpu.memory_space<vmem>>, vector<1x1x8x128xf32>
    %8 = vector.shape_cast %7 : vector<1x1x8x128xf32> to vector<8x128xf32>
    %c0_13 = arith.constant 0 : index
    %c0_14 = arith.constant 0 : index
    %c0_15 = arith.constant 0 : index
    %c0_16 = arith.constant 0 : index
    %9 = vector.load %arg5[%c0_13, %c0_14, %c0_15, %c0_16] : memref<2x4x8x128xf32, #tpu.memory_space<vmem>>, vector<1x1x8x128xf32>
    %10 = vector.shape_cast %9 : vector<1x1x8x128xf32> to vector<8x128xf32>
    %11 = vector.broadcast %0 : f32 to vector<8x128xf32>
    %12 = arith.mulf %11, %10 : vector<8x128xf32>
    %13 = arith.addf %2, %12 : vector<8x128xf32>
    %c0_17 = arith.constant 0 : index
    %c1_18 = arith.constant 1 : index
    %c0_19 = arith.constant 0 : index
    %c0_20 = arith.constant 0 : index
    %14 = vector.load %arg5[%c0_17, %c1_18, %c0_19, %c0_20] : memref<2x4x8x128xf32, #tpu.memory_space<vmem>>, vector<1x1x8x128xf32>
    %15 = vector.shape_cast %14 : vector<1x1x8x128xf32> to vector<8x128xf32>
    %16 = vector.broadcast %0 : f32 to vector<8x128xf32>
    %17 = arith.mulf %16, %15 : vector<8x128xf32>
    %18 = arith.addf %4, %17 : vector<8x128xf32>
    %c0_21 = arith.constant 0 : index
    %c2_22 = arith.constant 2 : index
    %c0_23 = arith.constant 0 : index
    %c0_24 = arith.constant 0 : index
    %19 = vector.load %arg5[%c0_21, %c2_22, %c0_23, %c0_24] : memref<2x4x8x128xf32, #tpu.memory_space<vmem>>, vector<1x1x8x128xf32>
    %20 = vector.shape_cast %19 : vector<1x1x8x128xf32> to vector<8x128xf32>
    %21 = vector.broadcast %0 : f32 to vector<8x128xf32>
    %22 = arith.mulf %21, %20 : vector<8x128xf32>
    %23 = arith.addf %6, %22 : vector<8x128xf32>
    %c0_25 = arith.constant 0 : index
    %c3_26 = arith.constant 3 : index
    %c0_27 = arith.constant 0 : index
    %c0_28 = arith.constant 0 : index
    %24 = vector.load %arg5[%c0_25, %c3_26, %c0_27, %c0_28] : memref<2x4x8x128xf32, #tpu.memory_space<vmem>>, vector<1x1x8x128xf32>
    %25 = vector.shape_cast %24 : vector<1x1x8x128xf32> to vector<8x128xf32>
    %26 = vector.broadcast %0 : f32 to vector<8x128xf32>
    %27 = arith.mulf %26, %25 : vector<8x128xf32>
    %28 = arith.addf %8, %27 : vector<8x128xf32>
    %c0_29 = arith.constant 0 : index
    %29 = memref.load %arg1[%c0_29] : memref<16xf32, #tpu.memory_space<smem>>
    %30 = vector.broadcast %29 : f32 to vector<8x128xf32>
    %31 = arith.mulf %2, %30 : vector<8x128xf32>
    %c1_30 = arith.constant 1 : index
    %32 = memref.load %arg1[%c1_30] : memref<16xf32, #tpu.memory_space<smem>>
    %33 = vector.broadcast %32 : f32 to vector<8x128xf32>
    %34 = arith.mulf %4, %33 : vector<8x128xf32>
    %35 = arith.addf %31, %34 : vector<8x128xf32>
    %c2_31 = arith.constant 2 : index
    %36 = memref.load %arg1[%c2_31] : memref<16xf32, #tpu.memory_space<smem>>
    %37 = vector.broadcast %36 : f32 to vector<8x128xf32>
    %38 = arith.mulf %6, %37 : vector<8x128xf32>
    %39 = arith.addf %35, %38 : vector<8x128xf32>
    %c3_32 = arith.constant 3 : index
    %40 = memref.load %arg1[%c3_32] : memref<16xf32, #tpu.memory_space<smem>>
    %41 = vector.broadcast %40 : f32 to vector<8x128xf32>
    %42 = arith.mulf %8, %41 : vector<8x128xf32>
    %43 = arith.addf %39, %42 : vector<8x128xf32>
    %c0_33 = arith.constant 0 : index
    %44 = memref.load %arg2[%c0_33] : memref<4xf32, #tpu.memory_space<smem>>
    %45 = vector.broadcast %44 : f32 to vector<8x128xf32>
    %46 = arith.addf %43, %45 : vector<8x128xf32>
    %c4 = arith.constant 4 : index
    %47 = memref.load %arg1[%c4] : memref<16xf32, #tpu.memory_space<smem>>
    %48 = vector.broadcast %47 : f32 to vector<8x128xf32>
    %49 = arith.mulf %2, %48 : vector<8x128xf32>
    %c5 = arith.constant 5 : index
    %50 = memref.load %arg1[%c5] : memref<16xf32, #tpu.memory_space<smem>>
    %51 = vector.broadcast %50 : f32 to vector<8x128xf32>
    %52 = arith.mulf %4, %51 : vector<8x128xf32>
    %53 = arith.addf %49, %52 : vector<8x128xf32>
    %c6 = arith.constant 6 : index
    %54 = memref.load %arg1[%c6] : memref<16xf32, #tpu.memory_space<smem>>
    %55 = vector.broadcast %54 : f32 to vector<8x128xf32>
    %56 = arith.mulf %6, %55 : vector<8x128xf32>
    %57 = arith.addf %53, %56 : vector<8x128xf32>
    %c7 = arith.constant 7 : index
    %58 = memref.load %arg1[%c7] : memref<16xf32, #tpu.memory_space<smem>>
    %59 = vector.broadcast %58 : f32 to vector<8x128xf32>
    %60 = arith.mulf %8, %59 : vector<8x128xf32>
    %61 = arith.addf %57, %60 : vector<8x128xf32>
    %c1_34 = arith.constant 1 : index
    %62 = memref.load %arg2[%c1_34] : memref<4xf32, #tpu.memory_space<smem>>
    %63 = vector.broadcast %62 : f32 to vector<8x128xf32>
    %64 = arith.addf %61, %63 : vector<8x128xf32>
    %c8 = arith.constant 8 : index
    %65 = memref.load %arg1[%c8] : memref<16xf32, #tpu.memory_space<smem>>
    %66 = vector.broadcast %65 : f32 to vector<8x128xf32>
    %67 = arith.mulf %2, %66 : vector<8x128xf32>
    %c9 = arith.constant 9 : index
    %68 = memref.load %arg1[%c9] : memref<16xf32, #tpu.memory_space<smem>>
    %69 = vector.broadcast %68 : f32 to vector<8x128xf32>
    %70 = arith.mulf %4, %69 : vector<8x128xf32>
    %71 = arith.addf %67, %70 : vector<8x128xf32>
    %c10 = arith.constant 10 : index
    %72 = memref.load %arg1[%c10] : memref<16xf32, #tpu.memory_space<smem>>
    %73 = vector.broadcast %72 : f32 to vector<8x128xf32>
    %74 = arith.mulf %6, %73 : vector<8x128xf32>
    %75 = arith.addf %71, %74 : vector<8x128xf32>
    %c11 = arith.constant 11 : index
    %76 = memref.load %arg1[%c11] : memref<16xf32, #tpu.memory_space<smem>>
    %77 = vector.broadcast %76 : f32 to vector<8x128xf32>
    %78 = arith.mulf %8, %77 : vector<8x128xf32>
    %79 = arith.addf %75, %78 : vector<8x128xf32>
    %c2_35 = arith.constant 2 : index
    %80 = memref.load %arg2[%c2_35] : memref<4xf32, #tpu.memory_space<smem>>
    %81 = vector.broadcast %80 : f32 to vector<8x128xf32>
    %82 = arith.addf %79, %81 : vector<8x128xf32>
    %c12 = arith.constant 12 : index
    %83 = memref.load %arg1[%c12] : memref<16xf32, #tpu.memory_space<smem>>
    %84 = vector.broadcast %83 : f32 to vector<8x128xf32>
    %85 = arith.mulf %2, %84 : vector<8x128xf32>
    %c13 = arith.constant 13 : index
    %86 = memref.load %arg1[%c13] : memref<16xf32, #tpu.memory_space<smem>>
    %87 = vector.broadcast %86 : f32 to vector<8x128xf32>
    %88 = arith.mulf %4, %87 : vector<8x128xf32>
    %89 = arith.addf %85, %88 : vector<8x128xf32>
    %c14 = arith.constant 14 : index
    %90 = memref.load %arg1[%c14] : memref<16xf32, #tpu.memory_space<smem>>
    %91 = vector.broadcast %90 : f32 to vector<8x128xf32>
    %92 = arith.mulf %6, %91 : vector<8x128xf32>
    %93 = arith.addf %89, %92 : vector<8x128xf32>
    %c15 = arith.constant 15 : index
    %94 = memref.load %arg1[%c15] : memref<16xf32, #tpu.memory_space<smem>>
    %95 = vector.broadcast %94 : f32 to vector<8x128xf32>
    %96 = arith.mulf %8, %95 : vector<8x128xf32>
    %97 = arith.addf %93, %96 : vector<8x128xf32>
    %c3_36 = arith.constant 3 : index
    %98 = memref.load %arg2[%c3_36] : memref<4xf32, #tpu.memory_space<smem>>
    %99 = vector.broadcast %98 : f32 to vector<8x128xf32>
    %100 = arith.addf %97, %99 : vector<8x128xf32>
    %101 = arith.maximumf %46, %64 : vector<8x128xf32>
    %102 = arith.maximumf %101, %82 : vector<8x128xf32>
    %103 = arith.maximumf %102, %100 : vector<8x128xf32>
    %104 = arith.subf %46, %103 : vector<8x128xf32>
    %105 = math.exp %104 : vector<8x128xf32>
    %106 = arith.subf %64, %103 : vector<8x128xf32>
    %107 = math.exp %106 : vector<8x128xf32>
    %108 = arith.subf %82, %103 : vector<8x128xf32>
    %109 = math.exp %108 : vector<8x128xf32>
    %110 = arith.subf %100, %103 : vector<8x128xf32>
    %111 = math.exp %110 : vector<8x128xf32>
    %112 = arith.addf %105, %107 : vector<8x128xf32>
    %113 = arith.addf %112, %109 : vector<8x128xf32>
    %114 = arith.addf %113, %111 : vector<8x128xf32>
    %115 = tpu.reciprocal %114 {approx = true} : vector<8x128xf32> -> vector<8x128xf32>
    %116 = arith.mulf %114, %115 : vector<8x128xf32>
    %cst = arith.constant 2.000000e+00 : f32
    %117 = vector.broadcast %cst : f32 to vector<8x128xf32>
    %118 = arith.subf %117, %116 : vector<8x128xf32>
    %119 = arith.mulf %115, %118 : vector<8x128xf32>
    %120 = arith.mulf %105, %119 : vector<8x128xf32>
    %121 = arith.mulf %107, %119 : vector<8x128xf32>
    %122 = arith.mulf %109, %119 : vector<8x128xf32>
    %123 = arith.mulf %111, %119 : vector<8x128xf32>
    %c0_37 = arith.constant 0 : index
    %124 = memref.load %arg1[%c0_37] : memref<16xf32, #tpu.memory_space<smem>>
    %125 = vector.broadcast %124 : f32 to vector<8x128xf32>
    %126 = arith.mulf %13, %125 : vector<8x128xf32>
    %c1_38 = arith.constant 1 : index
    %127 = memref.load %arg1[%c1_38] : memref<16xf32, #tpu.memory_space<smem>>
    %128 = vector.broadcast %127 : f32 to vector<8x128xf32>
    %129 = arith.mulf %18, %128 : vector<8x128xf32>
    %130 = arith.addf %126, %129 : vector<8x128xf32>
    %c2_39 = arith.constant 2 : index
    %131 = memref.load %arg1[%c2_39] : memref<16xf32, #tpu.memory_space<smem>>
    %132 = vector.broadcast %131 : f32 to vector<8x128xf32>
    %133 = arith.mulf %23, %132 : vector<8x128xf32>
    %134 = arith.addf %130, %133 : vector<8x128xf32>
    %c3_40 = arith.constant 3 : index
    %135 = memref.load %arg1[%c3_40] : memref<16xf32, #tpu.memory_space<smem>>
    %136 = vector.broadcast %135 : f32 to vector<8x128xf32>
    %137 = arith.mulf %28, %136 : vector<8x128xf32>
    %138 = arith.addf %134, %137 : vector<8x128xf32>
    %c0_41 = arith.constant 0 : index
    %139 = memref.load %arg2[%c0_41] : memref<4xf32, #tpu.memory_space<smem>>
    %140 = vector.broadcast %139 : f32 to vector<8x128xf32>
    %141 = arith.addf %138, %140 : vector<8x128xf32>
    %c4_42 = arith.constant 4 : index
    %142 = memref.load %arg1[%c4_42] : memref<16xf32, #tpu.memory_space<smem>>
    %143 = vector.broadcast %142 : f32 to vector<8x128xf32>
    %144 = arith.mulf %13, %143 : vector<8x128xf32>
    %c5_43 = arith.constant 5 : index
    %145 = memref.load %arg1[%c5_43] : memref<16xf32, #tpu.memory_space<smem>>
    %146 = vector.broadcast %145 : f32 to vector<8x128xf32>
    %147 = arith.mulf %18, %146 : vector<8x128xf32>
    %148 = arith.addf %144, %147 : vector<8x128xf32>
    %c6_44 = arith.constant 6 : index
    %149 = memref.load %arg1[%c6_44] : memref<16xf32, #tpu.memory_space<smem>>
    %150 = vector.broadcast %149 : f32 to vector<8x128xf32>
    %151 = arith.mulf %23, %150 : vector<8x128xf32>
    %152 = arith.addf %148, %151 : vector<8x128xf32>
    %c7_45 = arith.constant 7 : index
    %153 = memref.load %arg1[%c7_45] : memref<16xf32, #tpu.memory_space<smem>>
    %154 = vector.broadcast %153 : f32 to vector<8x128xf32>
    %155 = arith.mulf %28, %154 : vector<8x128xf32>
    %156 = arith.addf %152, %155 : vector<8x128xf32>
    %c1_46 = arith.constant 1 : index
    %157 = memref.load %arg2[%c1_46] : memref<4xf32, #tpu.memory_space<smem>>
    %158 = vector.broadcast %157 : f32 to vector<8x128xf32>
    %159 = arith.addf %156, %158 : vector<8x128xf32>
    %c8_47 = arith.constant 8 : index
    %160 = memref.load %arg1[%c8_47] : memref<16xf32, #tpu.memory_space<smem>>
    %161 = vector.broadcast %160 : f32 to vector<8x128xf32>
    %162 = arith.mulf %13, %161 : vector<8x128xf32>
    %c9_48 = arith.constant 9 : index
    %163 = memref.load %arg1[%c9_48] : memref<16xf32, #tpu.memory_space<smem>>
    %164 = vector.broadcast %163 : f32 to vector<8x128xf32>
    %165 = arith.mulf %18, %164 : vector<8x128xf32>
    %166 = arith.addf %162, %165 : vector<8x128xf32>
    %c10_49 = arith.constant 10 : index
    %167 = memref.load %arg1[%c10_49] : memref<16xf32, #tpu.memory_space<smem>>
    %168 = vector.broadcast %167 : f32 to vector<8x128xf32>
    %169 = arith.mulf %23, %168 : vector<8x128xf32>
    %170 = arith.addf %166, %169 : vector<8x128xf32>
    %c11_50 = arith.constant 11 : index
    %171 = memref.load %arg1[%c11_50] : memref<16xf32, #tpu.memory_space<smem>>
    %172 = vector.broadcast %171 : f32 to vector<8x128xf32>
    %173 = arith.mulf %28, %172 : vector<8x128xf32>
    %174 = arith.addf %170, %173 : vector<8x128xf32>
    %c2_51 = arith.constant 2 : index
    %175 = memref.load %arg2[%c2_51] : memref<4xf32, #tpu.memory_space<smem>>
    %176 = vector.broadcast %175 : f32 to vector<8x128xf32>
    %177 = arith.addf %174, %176 : vector<8x128xf32>
    %c12_52 = arith.constant 12 : index
    %178 = memref.load %arg1[%c12_52] : memref<16xf32, #tpu.memory_space<smem>>
    %179 = vector.broadcast %178 : f32 to vector<8x128xf32>
    %180 = arith.mulf %13, %179 : vector<8x128xf32>
    %c13_53 = arith.constant 13 : index
    %181 = memref.load %arg1[%c13_53] : memref<16xf32, #tpu.memory_space<smem>>
    %182 = vector.broadcast %181 : f32 to vector<8x128xf32>
    %183 = arith.mulf %18, %182 : vector<8x128xf32>
    %184 = arith.addf %180, %183 : vector<8x128xf32>
    %c14_54 = arith.constant 14 : index
    %185 = memref.load %arg1[%c14_54] : memref<16xf32, #tpu.memory_space<smem>>
    %186 = vector.broadcast %185 : f32 to vector<8x128xf32>
    %187 = arith.mulf %23, %186 : vector<8x128xf32>
    %188 = arith.addf %184, %187 : vector<8x128xf32>
    %c15_55 = arith.constant 15 : index
    %189 = memref.load %arg1[%c15_55] : memref<16xf32, #tpu.memory_space<smem>>
    %190 = vector.broadcast %189 : f32 to vector<8x128xf32>
    %191 = arith.mulf %28, %190 : vector<8x128xf32>
    %192 = arith.addf %188, %191 : vector<8x128xf32>
    %c3_56 = arith.constant 3 : index
    %193 = memref.load %arg2[%c3_56] : memref<4xf32, #tpu.memory_space<smem>>
    %194 = vector.broadcast %193 : f32 to vector<8x128xf32>
    %195 = arith.addf %192, %194 : vector<8x128xf32>
    %196 = arith.maximumf %141, %159 : vector<8x128xf32>
    %197 = arith.maximumf %196, %177 : vector<8x128xf32>
    %198 = arith.maximumf %197, %195 : vector<8x128xf32>
    %199 = arith.subf %141, %198 : vector<8x128xf32>
    %200 = math.exp %199 : vector<8x128xf32>
    %201 = arith.subf %159, %198 : vector<8x128xf32>
    %202 = math.exp %201 : vector<8x128xf32>
    %203 = arith.subf %177, %198 : vector<8x128xf32>
    %204 = math.exp %203 : vector<8x128xf32>
    %205 = arith.subf %195, %198 : vector<8x128xf32>
    %206 = math.exp %205 : vector<8x128xf32>
    %207 = arith.addf %200, %202 : vector<8x128xf32>
    %208 = arith.addf %207, %204 : vector<8x128xf32>
    %209 = arith.addf %208, %206 : vector<8x128xf32>
    %210 = tpu.reciprocal %209 {approx = true} : vector<8x128xf32> -> vector<8x128xf32>
    %211 = arith.mulf %209, %210 : vector<8x128xf32>
    %cst_57 = arith.constant 2.000000e+00 : f32
    %212 = vector.broadcast %cst_57 : f32 to vector<8x128xf32>
    %213 = arith.subf %212, %211 : vector<8x128xf32>
    %214 = arith.mulf %210, %213 : vector<8x128xf32>
    %215 = arith.mulf %200, %214 : vector<8x128xf32>
    %216 = arith.mulf %202, %214 : vector<8x128xf32>
    %217 = arith.mulf %204, %214 : vector<8x128xf32>
    %218 = arith.mulf %206, %214 : vector<8x128xf32>
    %219 = arith.mulf %215, %120 : vector<8x128xf32>
    %220 = arith.mulf %215, %215 : vector<8x128xf32>
    %221 = arith.mulf %120, %120 : vector<8x128xf32>
    %222 = arith.mulf %216, %121 : vector<8x128xf32>
    %223 = arith.mulf %216, %216 : vector<8x128xf32>
    %224 = arith.mulf %121, %121 : vector<8x128xf32>
    %225 = arith.mulf %217, %122 : vector<8x128xf32>
    %226 = arith.mulf %217, %217 : vector<8x128xf32>
    %227 = arith.mulf %122, %122 : vector<8x128xf32>
    %228 = arith.mulf %218, %123 : vector<8x128xf32>
    %229 = arith.mulf %218, %218 : vector<8x128xf32>
    %230 = arith.mulf %123, %123 : vector<8x128xf32>
    %c1_58 = arith.constant 1 : index
    %231 = memref.load %arg3[%c1_58] : memref<2xf32, #tpu.memory_space<smem>>
    %c1_59 = arith.constant 1 : index
    %c0_60 = arith.constant 0 : index
    %c0_61 = arith.constant 0 : index
    %c0_62 = arith.constant 0 : index
    %232 = vector.load %arg4[%c1_59, %c0_60, %c0_61, %c0_62] : memref<2x4x8x128xf32, #tpu.memory_space<vmem>>, vector<1x1x8x128xf32>
    %233 = vector.shape_cast %232 : vector<1x1x8x128xf32> to vector<8x128xf32>
    %c1_63 = arith.constant 1 : index
    %c1_64 = arith.constant 1 : index
    %c0_65 = arith.constant 0 : index
    %c0_66 = arith.constant 0 : index
    %234 = vector.load %arg4[%c1_63, %c1_64, %c0_65, %c0_66] : memref<2x4x8x128xf32, #tpu.memory_space<vmem>>, vector<1x1x8x128xf32>
    %235 = vector.shape_cast %234 : vector<1x1x8x128xf32> to vector<8x128xf32>
    %c1_67 = arith.constant 1 : index
    %c2_68 = arith.constant 2 : index
    %c0_69 = arith.constant 0 : index
    %c0_70 = arith.constant 0 : index
    %236 = vector.load %arg4[%c1_67, %c2_68, %c0_69, %c0_70] : memref<2x4x8x128xf32, #tpu.memory_space<vmem>>, vector<1x1x8x128xf32>
    %237 = vector.shape_cast %236 : vector<1x1x8x128xf32> to vector<8x128xf32>
    %c1_71 = arith.constant 1 : index
    %c3_72 = arith.constant 3 : index
    %c0_73 = arith.constant 0 : index
    %c0_74 = arith.constant 0 : index
    %238 = vector.load %arg4[%c1_71, %c3_72, %c0_73, %c0_74] : memref<2x4x8x128xf32, #tpu.memory_space<vmem>>, vector<1x1x8x128xf32>
    %239 = vector.shape_cast %238 : vector<1x1x8x128xf32> to vector<8x128xf32>
    %c1_75 = arith.constant 1 : index
    %c0_76 = arith.constant 0 : index
    %c0_77 = arith.constant 0 : index
    %c0_78 = arith.constant 0 : index
    %240 = vector.load %arg5[%c1_75, %c0_76, %c0_77, %c0_78] : memref<2x4x8x128xf32, #tpu.memory_space<vmem>>, vector<1x1x8x128xf32>
    %241 = vector.shape_cast %240 : vector<1x1x8x128xf32> to vector<8x128xf32>
    %242 = vector.broadcast %231 : f32 to vector<8x128xf32>
    %243 = arith.mulf %242, %241 : vector<8x128xf32>
    %244 = arith.addf %233, %243 : vector<8x128xf32>
    %c1_79 = arith.constant 1 : index
    %c1_80 = arith.constant 1 : index
    %c0_81 = arith.constant 0 : index
    %c0_82 = arith.constant 0 : index
    %245 = vector.load %arg5[%c1_79, %c1_80, %c0_81, %c0_82] : memref<2x4x8x128xf32, #tpu.memory_space<vmem>>, vector<1x1x8x128xf32>
    %246 = vector.shape_cast %245 : vector<1x1x8x128xf32> to vector<8x128xf32>
    %247 = vector.broadcast %231 : f32 to vector<8x128xf32>
    %248 = arith.mulf %247, %246 : vector<8x128xf32>
    %249 = arith.addf %235, %248 : vector<8x128xf32>
    %c1_83 = arith.constant 1 : index
    %c2_84 = arith.constant 2 : index
    %c0_85 = arith.constant 0 : index
    %c0_86 = arith.constant 0 : index
    %250 = vector.load %arg5[%c1_83, %c2_84, %c0_85, %c0_86] : memref<2x4x8x128xf32, #tpu.memory_space<vmem>>, vector<1x1x8x128xf32>
    %251 = vector.shape_cast %250 : vector<1x1x8x128xf32> to vector<8x128xf32>
    %252 = vector.broadcast %231 : f32 to vector<8x128xf32>
    %253 = arith.mulf %252, %251 : vector<8x128xf32>
    %254 = arith.addf %237, %253 : vector<8x128xf32>
    %c1_87 = arith.constant 1 : index
    %c3_88 = arith.constant 3 : index
    %c0_89 = arith.constant 0 : index
    %c0_90 = arith.constant 0 : index
    %255 = vector.load %arg5[%c1_87, %c3_88, %c0_89, %c0_90] : memref<2x4x8x128xf32, #tpu.memory_space<vmem>>, vector<1x1x8x128xf32>
    %256 = vector.shape_cast %255 : vector<1x1x8x128xf32> to vector<8x128xf32>
    %257 = vector.broadcast %231 : f32 to vector<8x128xf32>
    %258 = arith.mulf %257, %256 : vector<8x128xf32>
    %259 = arith.addf %239, %258 : vector<8x128xf32>
    %c0_91 = arith.constant 0 : index
    %260 = memref.load %arg1[%c0_91] : memref<16xf32, #tpu.memory_space<smem>>
    %261 = vector.broadcast %260 : f32 to vector<8x128xf32>
    %262 = arith.mulf %233, %261 : vector<8x128xf32>
    %c1_92 = arith.constant 1 : index
    %263 = memref.load %arg1[%c1_92] : memref<16xf32, #tpu.memory_space<smem>>
    %264 = vector.broadcast %263 : f32 to vector<8x128xf32>
    %265 = arith.mulf %235, %264 : vector<8x128xf32>
    %266 = arith.addf %262, %265 : vector<8x128xf32>
    %c2_93 = arith.constant 2 : index
    %267 = memref.load %arg1[%c2_93] : memref<16xf32, #tpu.memory_space<smem>>
    %268 = vector.broadcast %267 : f32 to vector<8x128xf32>
    %269 = arith.mulf %237, %268 : vector<8x128xf32>
    %270 = arith.addf %266, %269 : vector<8x128xf32>
    %c3_94 = arith.constant 3 : index
    %271 = memref.load %arg1[%c3_94] : memref<16xf32, #tpu.memory_space<smem>>
    %272 = vector.broadcast %271 : f32 to vector<8x128xf32>
    %273 = arith.mulf %239, %272 : vector<8x128xf32>
    %274 = arith.addf %270, %273 : vector<8x128xf32>
    %c0_95 = arith.constant 0 : index
    %275 = memref.load %arg2[%c0_95] : memref<4xf32, #tpu.memory_space<smem>>
    %276 = vector.broadcast %275 : f32 to vector<8x128xf32>
    %277 = arith.addf %274, %276 : vector<8x128xf32>
    %c4_96 = arith.constant 4 : index
    %278 = memref.load %arg1[%c4_96] : memref<16xf32, #tpu.memory_space<smem>>
    %279 = vector.broadcast %278 : f32 to vector<8x128xf32>
    %280 = arith.mulf %233, %279 : vector<8x128xf32>
    %c5_97 = arith.constant 5 : index
    %281 = memref.load %arg1[%c5_97] : memref<16xf32, #tpu.memory_space<smem>>
    %282 = vector.broadcast %281 : f32 to vector<8x128xf32>
    %283 = arith.mulf %235, %282 : vector<8x128xf32>
    %284 = arith.addf %280, %283 : vector<8x128xf32>
    %c6_98 = arith.constant 6 : index
    %285 = memref.load %arg1[%c6_98] : memref<16xf32, #tpu.memory_space<smem>>
    %286 = vector.broadcast %285 : f32 to vector<8x128xf32>
    %287 = arith.mulf %237, %286 : vector<8x128xf32>
    %288 = arith.addf %284, %287 : vector<8x128xf32>
    %c7_99 = arith.constant 7 : index
    %289 = memref.load %arg1[%c7_99] : memref<16xf32, #tpu.memory_space<smem>>
    %290 = vector.broadcast %289 : f32 to vector<8x128xf32>
    %291 = arith.mulf %239, %290 : vector<8x128xf32>
    %292 = arith.addf %288, %291 : vector<8x128xf32>
    %c1_100 = arith.constant 1 : index
    %293 = memref.load %arg2[%c1_100] : memref<4xf32, #tpu.memory_space<smem>>
    %294 = vector.broadcast %293 : f32 to vector<8x128xf32>
    %295 = arith.addf %292, %294 : vector<8x128xf32>
    %c8_101 = arith.constant 8 : index
    %296 = memref.load %arg1[%c8_101] : memref<16xf32, #tpu.memory_space<smem>>
    %297 = vector.broadcast %296 : f32 to vector<8x128xf32>
    %298 = arith.mulf %233, %297 : vector<8x128xf32>
    %c9_102 = arith.constant 9 : index
    %299 = memref.load %arg1[%c9_102] : memref<16xf32, #tpu.memory_space<smem>>
    %300 = vector.broadcast %299 : f32 to vector<8x128xf32>
    %301 = arith.mulf %235, %300 : vector<8x128xf32>
    %302 = arith.addf %298, %301 : vector<8x128xf32>
    %c10_103 = arith.constant 10 : index
    %303 = memref.load %arg1[%c10_103] : memref<16xf32, #tpu.memory_space<smem>>
    %304 = vector.broadcast %303 : f32 to vector<8x128xf32>
    %305 = arith.mulf %237, %304 : vector<8x128xf32>
    %306 = arith.addf %302, %305 : vector<8x128xf32>
    %c11_104 = arith.constant 11 : index
    %307 = memref.load %arg1[%c11_104] : memref<16xf32, #tpu.memory_space<smem>>
    %308 = vector.broadcast %307 : f32 to vector<8x128xf32>
    %309 = arith.mulf %239, %308 : vector<8x128xf32>
    %310 = arith.addf %306, %309 : vector<8x128xf32>
    %c2_105 = arith.constant 2 : index
    %311 = memref.load %arg2[%c2_105] : memref<4xf32, #tpu.memory_space<smem>>
    %312 = vector.broadcast %311 : f32 to vector<8x128xf32>
    %313 = arith.addf %310, %312 : vector<8x128xf32>
    %c12_106 = arith.constant 12 : index
    %314 = memref.load %arg1[%c12_106] : memref<16xf32, #tpu.memory_space<smem>>
    %315 = vector.broadcast %314 : f32 to vector<8x128xf32>
    %316 = arith.mulf %233, %315 : vector<8x128xf32>
    %c13_107 = arith.constant 13 : index
    %317 = memref.load %arg1[%c13_107] : memref<16xf32, #tpu.memory_space<smem>>
    %318 = vector.broadcast %317 : f32 to vector<8x128xf32>
    %319 = arith.mulf %235, %318 : vector<8x128xf32>
    %320 = arith.addf %316, %319 : vector<8x128xf32>
    %c14_108 = arith.constant 14 : index
    %321 = memref.load %arg1[%c14_108] : memref<16xf32, #tpu.memory_space<smem>>
    %322 = vector.broadcast %321 : f32 to vector<8x128xf32>
    %323 = arith.mulf %237, %322 : vector<8x128xf32>
    %324 = arith.addf %320, %323 : vector<8x128xf32>
    %c15_109 = arith.constant 15 : index
    %325 = memref.load %arg1[%c15_109] : memref<16xf32, #tpu.memory_space<smem>>
    %326 = vector.broadcast %325 : f32 to vector<8x128xf32>
    %327 = arith.mulf %239, %326 : vector<8x128xf32>
    %328 = arith.addf %324, %327 : vector<8x128xf32>
    %c3_110 = arith.constant 3 : index
    %329 = memref.load %arg2[%c3_110] : memref<4xf32, #tpu.memory_space<smem>>
    %330 = vector.broadcast %329 : f32 to vector<8x128xf32>
    %331 = arith.addf %328, %330 : vector<8x128xf32>
    %332 = arith.maximumf %277, %295 : vector<8x128xf32>
    %333 = arith.maximumf %332, %313 : vector<8x128xf32>
    %334 = arith.maximumf %333, %331 : vector<8x128xf32>
    %335 = arith.subf %277, %334 : vector<8x128xf32>
    %336 = math.exp %335 : vector<8x128xf32>
    %337 = arith.subf %295, %334 : vector<8x128xf32>
    %338 = math.exp %337 : vector<8x128xf32>
    %339 = arith.subf %313, %334 : vector<8x128xf32>
    %340 = math.exp %339 : vector<8x128xf32>
    %341 = arith.subf %331, %334 : vector<8x128xf32>
    %342 = math.exp %341 : vector<8x128xf32>
    %343 = arith.addf %336, %338 : vector<8x128xf32>
    %344 = arith.addf %343, %340 : vector<8x128xf32>
    %345 = arith.addf %344, %342 : vector<8x128xf32>
    %346 = tpu.reciprocal %345 {approx = true} : vector<8x128xf32> -> vector<8x128xf32>
    %347 = arith.mulf %345, %346 : vector<8x128xf32>
    %cst_111 = arith.constant 2.000000e+00 : f32
    %348 = vector.broadcast %cst_111 : f32 to vector<8x128xf32>
    %349 = arith.subf %348, %347 : vector<8x128xf32>
    %350 = arith.mulf %346, %349 : vector<8x128xf32>
    %351 = arith.mulf %336, %350 : vector<8x128xf32>
    %352 = arith.mulf %338, %350 : vector<8x128xf32>
    %353 = arith.mulf %340, %350 : vector<8x128xf32>
    %354 = arith.mulf %342, %350 : vector<8x128xf32>
    %c0_112 = arith.constant 0 : index
    %355 = memref.load %arg1[%c0_112] : memref<16xf32, #tpu.memory_space<smem>>
    %356 = vector.broadcast %355 : f32 to vector<8x128xf32>
    %357 = arith.mulf %244, %356 : vector<8x128xf32>
    %c1_113 = arith.constant 1 : index
    %358 = memref.load %arg1[%c1_113] : memref<16xf32, #tpu.memory_space<smem>>
    %359 = vector.broadcast %358 : f32 to vector<8x128xf32>
    %360 = arith.mulf %249, %359 : vector<8x128xf32>
    %361 = arith.addf %357, %360 : vector<8x128xf32>
    %c2_114 = arith.constant 2 : index
    %362 = memref.load %arg1[%c2_114] : memref<16xf32, #tpu.memory_space<smem>>
    %363 = vector.broadcast %362 : f32 to vector<8x128xf32>
    %364 = arith.mulf %254, %363 : vector<8x128xf32>
    %365 = arith.addf %361, %364 : vector<8x128xf32>
    %c3_115 = arith.constant 3 : index
    %366 = memref.load %arg1[%c3_115] : memref<16xf32, #tpu.memory_space<smem>>
    %367 = vector.broadcast %366 : f32 to vector<8x128xf32>
    %368 = arith.mulf %259, %367 : vector<8x128xf32>
    %369 = arith.addf %365, %368 : vector<8x128xf32>
    %c0_116 = arith.constant 0 : index
    %370 = memref.load %arg2[%c0_116] : memref<4xf32, #tpu.memory_space<smem>>
    %371 = vector.broadcast %370 : f32 to vector<8x128xf32>
    %372 = arith.addf %369, %371 : vector<8x128xf32>
    %c4_117 = arith.constant 4 : index
    %373 = memref.load %arg1[%c4_117] : memref<16xf32, #tpu.memory_space<smem>>
    %374 = vector.broadcast %373 : f32 to vector<8x128xf32>
    %375 = arith.mulf %244, %374 : vector<8x128xf32>
    %c5_118 = arith.constant 5 : index
    %376 = memref.load %arg1[%c5_118] : memref<16xf32, #tpu.memory_space<smem>>
    %377 = vector.broadcast %376 : f32 to vector<8x128xf32>
    %378 = arith.mulf %249, %377 : vector<8x128xf32>
    %379 = arith.addf %375, %378 : vector<8x128xf32>
    %c6_119 = arith.constant 6 : index
    %380 = memref.load %arg1[%c6_119] : memref<16xf32, #tpu.memory_space<smem>>
    %381 = vector.broadcast %380 : f32 to vector<8x128xf32>
    %382 = arith.mulf %254, %381 : vector<8x128xf32>
    %383 = arith.addf %379, %382 : vector<8x128xf32>
    %c7_120 = arith.constant 7 : index
    %384 = memref.load %arg1[%c7_120] : memref<16xf32, #tpu.memory_space<smem>>
    %385 = vector.broadcast %384 : f32 to vector<8x128xf32>
    %386 = arith.mulf %259, %385 : vector<8x128xf32>
    %387 = arith.addf %383, %386 : vector<8x128xf32>
    %c1_121 = arith.constant 1 : index
    %388 = memref.load %arg2[%c1_121] : memref<4xf32, #tpu.memory_space<smem>>
    %389 = vector.broadcast %388 : f32 to vector<8x128xf32>
    %390 = arith.addf %387, %389 : vector<8x128xf32>
    %c8_122 = arith.constant 8 : index
    %391 = memref.load %arg1[%c8_122] : memref<16xf32, #tpu.memory_space<smem>>
    %392 = vector.broadcast %391 : f32 to vector<8x128xf32>
    %393 = arith.mulf %244, %392 : vector<8x128xf32>
    %c9_123 = arith.constant 9 : index
    %394 = memref.load %arg1[%c9_123] : memref<16xf32, #tpu.memory_space<smem>>
    %395 = vector.broadcast %394 : f32 to vector<8x128xf32>
    %396 = arith.mulf %249, %395 : vector<8x128xf32>
    %397 = arith.addf %393, %396 : vector<8x128xf32>
    %c10_124 = arith.constant 10 : index
    %398 = memref.load %arg1[%c10_124] : memref<16xf32, #tpu.memory_space<smem>>
    %399 = vector.broadcast %398 : f32 to vector<8x128xf32>
    %400 = arith.mulf %254, %399 : vector<8x128xf32>
    %401 = arith.addf %397, %400 : vector<8x128xf32>
    %c11_125 = arith.constant 11 : index
    %402 = memref.load %arg1[%c11_125] : memref<16xf32, #tpu.memory_space<smem>>
    %403 = vector.broadcast %402 : f32 to vector<8x128xf32>
    %404 = arith.mulf %259, %403 : vector<8x128xf32>
    %405 = arith.addf %401, %404 : vector<8x128xf32>
    %c2_126 = arith.constant 2 : index
    %406 = memref.load %arg2[%c2_126] : memref<4xf32, #tpu.memory_space<smem>>
    %407 = vector.broadcast %406 : f32 to vector<8x128xf32>
    %408 = arith.addf %405, %407 : vector<8x128xf32>
    %c12_127 = arith.constant 12 : index
    %409 = memref.load %arg1[%c12_127] : memref<16xf32, #tpu.memory_space<smem>>
    %410 = vector.broadcast %409 : f32 to vector<8x128xf32>
    %411 = arith.mulf %244, %410 : vector<8x128xf32>
    %c13_128 = arith.constant 13 : index
    %412 = memref.load %arg1[%c13_128] : memref<16xf32, #tpu.memory_space<smem>>
    %413 = vector.broadcast %412 : f32 to vector<8x128xf32>
    %414 = arith.mulf %249, %413 : vector<8x128xf32>
    %415 = arith.addf %411, %414 : vector<8x128xf32>
    %c14_129 = arith.constant 14 : index
    %416 = memref.load %arg1[%c14_129] : memref<16xf32, #tpu.memory_space<smem>>
    %417 = vector.broadcast %416 : f32 to vector<8x128xf32>
    %418 = arith.mulf %254, %417 : vector<8x128xf32>
    %419 = arith.addf %415, %418 : vector<8x128xf32>
    %c15_130 = arith.constant 15 : index
    %420 = memref.load %arg1[%c15_130] : memref<16xf32, #tpu.memory_space<smem>>
    %421 = vector.broadcast %420 : f32 to vector<8x128xf32>
    %422 = arith.mulf %259, %421 : vector<8x128xf32>
    %423 = arith.addf %419, %422 : vector<8x128xf32>
    %c3_131 = arith.constant 3 : index
    %424 = memref.load %arg2[%c3_131] : memref<4xf32, #tpu.memory_space<smem>>
    %425 = vector.broadcast %424 : f32 to vector<8x128xf32>
    %426 = arith.addf %423, %425 : vector<8x128xf32>
    %427 = arith.maximumf %372, %390 : vector<8x128xf32>
    %428 = arith.maximumf %427, %408 : vector<8x128xf32>
    %429 = arith.maximumf %428, %426 : vector<8x128xf32>
    %430 = arith.subf %372, %429 : vector<8x128xf32>
    %431 = math.exp %430 : vector<8x128xf32>
    %432 = arith.subf %390, %429 : vector<8x128xf32>
    %433 = math.exp %432 : vector<8x128xf32>
    %434 = arith.subf %408, %429 : vector<8x128xf32>
    %435 = math.exp %434 : vector<8x128xf32>
    %436 = arith.subf %426, %429 : vector<8x128xf32>
    %437 = math.exp %436 : vector<8x128xf32>
    %438 = arith.addf %431, %433 : vector<8x128xf32>
    %439 = arith.addf %438, %435 : vector<8x128xf32>
    %440 = arith.addf %439, %437 : vector<8x128xf32>
    %441 = tpu.reciprocal %440 {approx = true} : vector<8x128xf32> -> vector<8x128xf32>
    %442 = arith.mulf %440, %441 : vector<8x128xf32>
    %cst_132 = arith.constant 2.000000e+00 : f32
    %443 = vector.broadcast %cst_132 : f32 to vector<8x128xf32>
    %444 = arith.subf %443, %442 : vector<8x128xf32>
    %445 = arith.mulf %441, %444 : vector<8x128xf32>
    %446 = arith.mulf %431, %445 : vector<8x128xf32>
    %447 = arith.mulf %433, %445 : vector<8x128xf32>
    %448 = arith.mulf %435, %445 : vector<8x128xf32>
    %449 = arith.mulf %437, %445 : vector<8x128xf32>
    %450 = arith.mulf %446, %351 : vector<8x128xf32>
    %451 = arith.mulf %446, %446 : vector<8x128xf32>
    %452 = arith.mulf %351, %351 : vector<8x128xf32>
    %453 = arith.addf %219, %450 : vector<8x128xf32>
    %454 = arith.addf %220, %451 : vector<8x128xf32>
    %455 = arith.addf %221, %452 : vector<8x128xf32>
    %456 = arith.mulf %447, %352 : vector<8x128xf32>
    %457 = arith.mulf %447, %447 : vector<8x128xf32>
    %458 = arith.mulf %352, %352 : vector<8x128xf32>
    %459 = arith.addf %222, %456 : vector<8x128xf32>
    %460 = arith.addf %223, %457 : vector<8x128xf32>
    %461 = arith.addf %224, %458 : vector<8x128xf32>
    %462 = arith.mulf %448, %353 : vector<8x128xf32>
    %463 = arith.mulf %448, %448 : vector<8x128xf32>
    %464 = arith.mulf %353, %353 : vector<8x128xf32>
    %465 = arith.addf %225, %462 : vector<8x128xf32>
    %466 = arith.addf %226, %463 : vector<8x128xf32>
    %467 = arith.addf %227, %464 : vector<8x128xf32>
    %468 = arith.mulf %449, %354 : vector<8x128xf32>
    %469 = arith.mulf %449, %449 : vector<8x128xf32>
    %470 = arith.mulf %354, %354 : vector<8x128xf32>
    %471 = arith.addf %228, %468 : vector<8x128xf32>
    %472 = arith.addf %229, %469 : vector<8x128xf32>
    %473 = arith.addf %230, %470 : vector<8x128xf32>
    %474 = vector.shape_cast %453 : vector<8x128xf32> to vector<1x8x128xf32>
    %cst_133 = arith.constant dense<0.000000e+00> : vector<1xf32>
    %475 = vector.multi_reduction <add>, %474, %cst_133 [1, 2] : vector<1x8x128xf32> to vector<1xf32>
    %476 = vector.shape_cast %475 : vector<1xf32> to vector<1x1x1xf32>
    %477 = vector.extract %476[0, 0, 0] : f32 from vector<1x1x1xf32>
    %478 = vector.shape_cast %454 : vector<8x128xf32> to vector<1x8x128xf32>
    %cst_134 = arith.constant dense<0.000000e+00> : vector<1xf32>
    %479 = vector.multi_reduction <add>, %478, %cst_134 [1, 2] : vector<1x8x128xf32> to vector<1xf32>
    %480 = vector.shape_cast %479 : vector<1xf32> to vector<1x1x1xf32>
    %481 = vector.extract %480[0, 0, 0] : f32 from vector<1x1x1xf32>
    %482 = vector.shape_cast %455 : vector<8x128xf32> to vector<1x8x128xf32>
    %cst_135 = arith.constant dense<0.000000e+00> : vector<1xf32>
    %483 = vector.multi_reduction <add>, %482, %cst_135 [1, 2] : vector<1x8x128xf32> to vector<1xf32>
    %484 = vector.shape_cast %483 : vector<1xf32> to vector<1x1x1xf32>
    %485 = vector.extract %484[0, 0, 0] : f32 from vector<1x1x1xf32>
    %486 = vector.shape_cast %459 : vector<8x128xf32> to vector<1x8x128xf32>
    %cst_136 = arith.constant dense<0.000000e+00> : vector<1xf32>
    %487 = vector.multi_reduction <add>, %486, %cst_136 [1, 2] : vector<1x8x128xf32> to vector<1xf32>
    %488 = vector.shape_cast %487 : vector<1xf32> to vector<1x1x1xf32>
    %489 = vector.extract %488[0, 0, 0] : f32 from vector<1x1x1xf32>
    %490 = vector.shape_cast %460 : vector<8x128xf32> to vector<1x8x128xf32>
    %cst_137 = arith.constant dense<0.000000e+00> : vector<1xf32>
    %491 = vector.multi_reduction <add>, %490, %cst_137 [1, 2] : vector<1x8x128xf32> to vector<1xf32>
    %492 = vector.shape_cast %491 : vector<1xf32> to vector<1x1x1xf32>
    %493 = vector.extract %492[0, 0, 0] : f32 from vector<1x1x1xf32>
    %494 = vector.shape_cast %461 : vector<8x128xf32> to vector<1x8x128xf32>
    %cst_138 = arith.constant dense<0.000000e+00> : vector<1xf32>
    %495 = vector.multi_reduction <add>, %494, %cst_138 [1, 2] : vector<1x8x128xf32> to vector<1xf32>
    %496 = vector.shape_cast %495 : vector<1xf32> to vector<1x1x1xf32>
    %497 = vector.extract %496[0, 0, 0] : f32 from vector<1x1x1xf32>
    %498 = vector.shape_cast %465 : vector<8x128xf32> to vector<1x8x128xf32>
    %cst_139 = arith.constant dense<0.000000e+00> : vector<1xf32>
    %499 = vector.multi_reduction <add>, %498, %cst_139 [1, 2] : vector<1x8x128xf32> to vector<1xf32>
    %500 = vector.shape_cast %499 : vector<1xf32> to vector<1x1x1xf32>
    %501 = vector.extract %500[0, 0, 0] : f32 from vector<1x1x1xf32>
    %502 = vector.shape_cast %466 : vector<8x128xf32> to vector<1x8x128xf32>
    %cst_140 = arith.constant dense<0.000000e+00> : vector<1xf32>
    %503 = vector.multi_reduction <add>, %502, %cst_140 [1, 2] : vector<1x8x128xf32> to vector<1xf32>
    %504 = vector.shape_cast %503 : vector<1xf32> to vector<1x1x1xf32>
    %505 = vector.extract %504[0, 0, 0] : f32 from vector<1x1x1xf32>
    %506 = vector.shape_cast %467 : vector<8x128xf32> to vector<1x8x128xf32>
    %cst_141 = arith.constant dense<0.000000e+00> : vector<1xf32>
    %507 = vector.multi_reduction <add>, %506, %cst_141 [1, 2] : vector<1x8x128xf32> to vector<1xf32>
    %508 = vector.shape_cast %507 : vector<1xf32> to vector<1x1x1xf32>
    %509 = vector.extract %508[0, 0, 0] : f32 from vector<1x1x1xf32>
    %510 = vector.shape_cast %471 : vector<8x128xf32> to vector<1x8x128xf32>
    %cst_142 = arith.constant dense<0.000000e+00> : vector<1xf32>
    %511 = vector.multi_reduction <add>, %510, %cst_142 [1, 2] : vector<1x8x128xf32> to vector<1xf32>
    %512 = vector.shape_cast %511 : vector<1xf32> to vector<1x1x1xf32>
    %513 = vector.extract %512[0, 0, 0] : f32 from vector<1x1x1xf32>
    %514 = vector.shape_cast %472 : vector<8x128xf32> to vector<1x8x128xf32>
    %cst_143 = arith.constant dense<0.000000e+00> : vector<1xf32>
    %515 = vector.multi_reduction <add>, %514, %cst_143 [1, 2] : vector<1x8x128xf32> to vector<1xf32>
    %516 = vector.shape_cast %515 : vector<1xf32> to vector<1x1x1xf32>
    %517 = vector.extract %516[0, 0, 0] : f32 from vector<1x1x1xf32>
    %518 = vector.shape_cast %473 : vector<8x128xf32> to vector<1x8x128xf32>
    %cst_144 = arith.constant dense<0.000000e+00> : vector<1xf32>
    %519 = vector.multi_reduction <add>, %518, %cst_144 [1, 2] : vector<1x8x128xf32> to vector<1xf32>
    %520 = vector.shape_cast %519 : vector<1xf32> to vector<1x1x1xf32>
    %521 = vector.extract %520[0, 0, 0] : f32 from vector<1x1x1xf32>
    %522 = vector.broadcast %477 : f32 to vector<1x128xf32>
    %523 = vector.broadcast %481 : f32 to vector<1x128xf32>
    %524 = vector.broadcast %485 : f32 to vector<1x128xf32>
    %525 = vector.broadcast %489 : f32 to vector<1x128xf32>
    %526 = vector.broadcast %493 : f32 to vector<1x128xf32>
    %527 = vector.broadcast %497 : f32 to vector<1x128xf32>
    %528 = vector.broadcast %501 : f32 to vector<1x128xf32>
    %529 = vector.broadcast %505 : f32 to vector<1x128xf32>
    %530 = vector.broadcast %509 : f32 to vector<1x128xf32>
    %531 = vector.broadcast %513 : f32 to vector<1x128xf32>
    %532 = vector.broadcast %517 : f32 to vector<1x128xf32>
    %533 = vector.broadcast %521 : f32 to vector<1x128xf32>
    %534 = tpu.concatenate %522, %523, %524, %525, %526, %527, %528, %529, %530, %531, %532, %533 in 0 : vector<1x128xf32>, vector<1x128xf32>, vector<1x128xf32>, vector<1x128xf32>, vector<1x128xf32>, vector<1x128xf32>, vector<1x128xf32>, vector<1x128xf32>, vector<1x128xf32>, vector<1x128xf32>, vector<1x128xf32>, vector<1x128xf32> -> vector<12x128xf32>
    %c0_145 = arith.constant 0 : index
    %c0_146 = arith.constant 0 : index
    %c0_147 = arith.constant 0 : index
    %535 = vector.load %arg6[%c0_145, %c0_146, %c0_147] : memref<1x12x128xf32, #tpu.memory_space<vmem>>, vector<1x12x128xf32>
    %536 = vector.shape_cast %535 : vector<1x12x128xf32> to vector<12x128xf32>
    %537 = vector.shape_cast %534 : vector<12x128xf32> to vector<1x12x128xf32>
    tpu.vector_store %arg6[%c0_145, %c0_146, %c0_147], %537 {strides = array<i32>} : memref<1x12x128xf32, #tpu.memory_space<vmem>>, vector<1x12x128xf32>,
    return
  }
  func.func @transform_0(%arg0: i32) -> i32 {
    %c0_i32 = arith.constant 0 : i32
    %c0_i32_0 = arith.constant 0 : i32
    return %c0_i32 : i32
  }
  func.func @transform_1(%arg0: i32) -> i32 {
    %c0_i32 = arith.constant 0 : i32
    %c0_i32_0 = arith.constant 0 : i32
    return %c0_i32 : i32
  }
  func.func @transform_2(%arg0: i32) -> i32 {
    %c0_i32 = arith.constant 0 : i32
    %c0_i32_0 = arith.constant 0 : i32
    return %c0_i32 : i32
  }
  func.func @transform_3(%arg0: i32) -> (i32, i32, i32, i32) {
    %c0_i32 = arith.constant 0 : i32
    %c0_i32_0 = arith.constant 0 : i32
    %c0_i32_1 = arith.constant 0 : i32
    %c0_i32_2 = arith.constant 0 : i32
    return %c0_i32, %c0_i32_0, %c0_i32_1, %arg0 : i32, i32, i32, i32
  }
  func.func @transform_4(%arg0: i32) -> (i32, i32, i32, i32) {
    %c0_i32 = arith.constant 0 : i32
    %c0_i32_0 = arith.constant 0 : i32
    %c0_i32_1 = arith.constant 0 : i32
    %c0_i32_2 = arith.constant 0 : i32
    return %c0_i32, %c0_i32_0, %c0_i32_1, %arg0 : i32, i32, i32, i32
  }
  func.func @transform_5(%arg0: i32) -> (i32, i32, i32) {
    %c0_i32 = arith.constant 0 : i32
    %c0_i32_0 = arith.constant 0 : i32
    %c0_i32_1 = arith.constant 0 : i32
    return %arg0, %c0_i32, %c0_i32_0 : i32, i32, i32
  }
}

module attributes {stable_mosaic.version = 11 : i64} {
  func.func @_grad_kernel(%arg0: i32, %arg1: memref<16xf32, #tpu.memory_space<smem>>, %arg2: memref<4xf32, #tpu.memory_space<smem>>, %arg3: memref<8xf32, #tpu.memory_space<smem>>, %arg4: memref<2xf32, #tpu.memory_space<smem>>, %arg5: memref<2x4x8x128xf32, #tpu.memory_space<vmem>>, %arg6: memref<2x4x8x128xf32, #tpu.memory_space<vmem>>, %arg7: memref<2x4x8x128xf32, #tpu.memory_space<vmem>>, %arg8: memref<1x2x128xf32, #tpu.memory_space<vmem>>) attributes {dimension_semantics = [#tpu.dimension_semantics<parallel>], iteration_bounds = array<i64: 1>, scalar_prefetch = 0 : i64, scratch_operands = 0 : i64, tpu.core_type = #tpu.core_type<tc>, window_params = [{transform_indices = @transform_0, window_bounds = array<i64: 16>}, {transform_indices = @transform_1, window_bounds = array<i64: 4>}, {transform_indices = @transform_2, window_bounds = array<i64: 8>}, {transform_indices = @transform_3, window_bounds = array<i64: 2>}, {transform_indices = @transform_4, window_bounds = array<i64: 2, 4, 8, 128>}, {transform_indices = @transform_5, window_bounds = array<i64: 2, 4, 8, 128>}, {transform_indices = @transform_6, window_bounds = array<i64: 2, 4, 8, 128>}, {transform_indices = @transform_7, window_bounds = array<i64: 1, 2, 128>}]} {
    %c0 = arith.constant 0 : index
    %0 = memref.load %arg4[%c0] : memref<2xf32, #tpu.memory_space<smem>>
    %c0_0 = arith.constant 0 : index
    %c0_1 = arith.constant 0 : index
    %c0_2 = arith.constant 0 : index
    %c0_3 = arith.constant 0 : index
    %1 = vector.load %arg5[%c0_0, %c0_1, %c0_2, %c0_3] : memref<2x4x8x128xf32, #tpu.memory_space<vmem>>, vector<1x1x8x128xf32>
    %2 = vector.shape_cast %1 : vector<1x1x8x128xf32> to vector<8x128xf32>
    %c0_4 = arith.constant 0 : index
    %c1 = arith.constant 1 : index
    %c0_5 = arith.constant 0 : index
    %c0_6 = arith.constant 0 : index
    %3 = vector.load %arg5[%c0_4, %c1, %c0_5, %c0_6] : memref<2x4x8x128xf32, #tpu.memory_space<vmem>>, vector<1x1x8x128xf32>
    %4 = vector.shape_cast %3 : vector<1x1x8x128xf32> to vector<8x128xf32>
    %c0_7 = arith.constant 0 : index
    %c2 = arith.constant 2 : index
    %c0_8 = arith.constant 0 : index
    %c0_9 = arith.constant 0 : index
    %5 = vector.load %arg5[%c0_7, %c2, %c0_8, %c0_9] : memref<2x4x8x128xf32, #tpu.memory_space<vmem>>, vector<1x1x8x128xf32>
    %6 = vector.shape_cast %5 : vector<1x1x8x128xf32> to vector<8x128xf32>
    %c0_10 = arith.constant 0 : index
    %c3 = arith.constant 3 : index
    %c0_11 = arith.constant 0 : index
    %c0_12 = arith.constant 0 : index
    %7 = vector.load %arg5[%c0_10, %c3, %c0_11, %c0_12] : memref<2x4x8x128xf32, #tpu.memory_space<vmem>>, vector<1x1x8x128xf32>
    %8 = vector.shape_cast %7 : vector<1x1x8x128xf32> to vector<8x128xf32>
    %c0_13 = arith.constant 0 : index
    %c0_14 = arith.constant 0 : index
    %c0_15 = arith.constant 0 : index
    %c0_16 = arith.constant 0 : index
    %9 = vector.load %arg6[%c0_13, %c0_14, %c0_15, %c0_16] : memref<2x4x8x128xf32, #tpu.memory_space<vmem>>, vector<1x1x8x128xf32>
    %10 = vector.shape_cast %9 : vector<1x1x8x128xf32> to vector<8x128xf32>
    %11 = vector.broadcast %0 : f32 to vector<8x128xf32>
    %12 = arith.mulf %11, %10 : vector<8x128xf32>
    %13 = arith.addf %2, %12 : vector<8x128xf32>
    %c0_17 = arith.constant 0 : index
    %c1_18 = arith.constant 1 : index
    %c0_19 = arith.constant 0 : index
    %c0_20 = arith.constant 0 : index
    %14 = vector.load %arg6[%c0_17, %c1_18, %c0_19, %c0_20] : memref<2x4x8x128xf32, #tpu.memory_space<vmem>>, vector<1x1x8x128xf32>
    %15 = vector.shape_cast %14 : vector<1x1x8x128xf32> to vector<8x128xf32>
    %16 = vector.broadcast %0 : f32 to vector<8x128xf32>
    %17 = arith.mulf %16, %15 : vector<8x128xf32>
    %18 = arith.addf %4, %17 : vector<8x128xf32>
    %c0_21 = arith.constant 0 : index
    %c2_22 = arith.constant 2 : index
    %c0_23 = arith.constant 0 : index
    %c0_24 = arith.constant 0 : index
    %19 = vector.load %arg6[%c0_21, %c2_22, %c0_23, %c0_24] : memref<2x4x8x128xf32, #tpu.memory_space<vmem>>, vector<1x1x8x128xf32>
    %20 = vector.shape_cast %19 : vector<1x1x8x128xf32> to vector<8x128xf32>
    %21 = vector.broadcast %0 : f32 to vector<8x128xf32>
    %22 = arith.mulf %21, %20 : vector<8x128xf32>
    %23 = arith.addf %6, %22 : vector<8x128xf32>
    %c0_25 = arith.constant 0 : index
    %c3_26 = arith.constant 3 : index
    %c0_27 = arith.constant 0 : index
    %c0_28 = arith.constant 0 : index
    %24 = vector.load %arg6[%c0_25, %c3_26, %c0_27, %c0_28] : memref<2x4x8x128xf32, #tpu.memory_space<vmem>>, vector<1x1x8x128xf32>
    %25 = vector.shape_cast %24 : vector<1x1x8x128xf32> to vector<8x128xf32>
    %26 = vector.broadcast %0 : f32 to vector<8x128xf32>
    %27 = arith.mulf %26, %25 : vector<8x128xf32>
    %28 = arith.addf %8, %27 : vector<8x128xf32>
    %c0_29 = arith.constant 0 : index
    %29 = memref.load %arg1[%c0_29] : memref<16xf32, #tpu.memory_space<smem>>
    %30 = vector.broadcast %29 : f32 to vector<8x128xf32>
    %31 = arith.mulf %2, %30 : vector<8x128xf32>
    %c1_30 = arith.constant 1 : index
    %32 = memref.load %arg1[%c1_30] : memref<16xf32, #tpu.memory_space<smem>>
    %33 = vector.broadcast %32 : f32 to vector<8x128xf32>
    %34 = arith.mulf %4, %33 : vector<8x128xf32>
    %35 = arith.addf %31, %34 : vector<8x128xf32>
    %c2_31 = arith.constant 2 : index
    %36 = memref.load %arg1[%c2_31] : memref<16xf32, #tpu.memory_space<smem>>
    %37 = vector.broadcast %36 : f32 to vector<8x128xf32>
    %38 = arith.mulf %6, %37 : vector<8x128xf32>
    %39 = arith.addf %35, %38 : vector<8x128xf32>
    %c3_32 = arith.constant 3 : index
    %40 = memref.load %arg1[%c3_32] : memref<16xf32, #tpu.memory_space<smem>>
    %41 = vector.broadcast %40 : f32 to vector<8x128xf32>
    %42 = arith.mulf %8, %41 : vector<8x128xf32>
    %43 = arith.addf %39, %42 : vector<8x128xf32>
    %c0_33 = arith.constant 0 : index
    %44 = memref.load %arg2[%c0_33] : memref<4xf32, #tpu.memory_space<smem>>
    %45 = vector.broadcast %44 : f32 to vector<8x128xf32>
    %46 = arith.addf %43, %45 : vector<8x128xf32>
    %c4 = arith.constant 4 : index
    %47 = memref.load %arg1[%c4] : memref<16xf32, #tpu.memory_space<smem>>
    %48 = vector.broadcast %47 : f32 to vector<8x128xf32>
    %49 = arith.mulf %2, %48 : vector<8x128xf32>
    %c5 = arith.constant 5 : index
    %50 = memref.load %arg1[%c5] : memref<16xf32, #tpu.memory_space<smem>>
    %51 = vector.broadcast %50 : f32 to vector<8x128xf32>
    %52 = arith.mulf %4, %51 : vector<8x128xf32>
    %53 = arith.addf %49, %52 : vector<8x128xf32>
    %c6 = arith.constant 6 : index
    %54 = memref.load %arg1[%c6] : memref<16xf32, #tpu.memory_space<smem>>
    %55 = vector.broadcast %54 : f32 to vector<8x128xf32>
    %56 = arith.mulf %6, %55 : vector<8x128xf32>
    %57 = arith.addf %53, %56 : vector<8x128xf32>
    %c7 = arith.constant 7 : index
    %58 = memref.load %arg1[%c7] : memref<16xf32, #tpu.memory_space<smem>>
    %59 = vector.broadcast %58 : f32 to vector<8x128xf32>
    %60 = arith.mulf %8, %59 : vector<8x128xf32>
    %61 = arith.addf %57, %60 : vector<8x128xf32>
    %c1_34 = arith.constant 1 : index
    %62 = memref.load %arg2[%c1_34] : memref<4xf32, #tpu.memory_space<smem>>
    %63 = vector.broadcast %62 : f32 to vector<8x128xf32>
    %64 = arith.addf %61, %63 : vector<8x128xf32>
    %c8 = arith.constant 8 : index
    %65 = memref.load %arg1[%c8] : memref<16xf32, #tpu.memory_space<smem>>
    %66 = vector.broadcast %65 : f32 to vector<8x128xf32>
    %67 = arith.mulf %2, %66 : vector<8x128xf32>
    %c9 = arith.constant 9 : index
    %68 = memref.load %arg1[%c9] : memref<16xf32, #tpu.memory_space<smem>>
    %69 = vector.broadcast %68 : f32 to vector<8x128xf32>
    %70 = arith.mulf %4, %69 : vector<8x128xf32>
    %71 = arith.addf %67, %70 : vector<8x128xf32>
    %c10 = arith.constant 10 : index
    %72 = memref.load %arg1[%c10] : memref<16xf32, #tpu.memory_space<smem>>
    %73 = vector.broadcast %72 : f32 to vector<8x128xf32>
    %74 = arith.mulf %6, %73 : vector<8x128xf32>
    %75 = arith.addf %71, %74 : vector<8x128xf32>
    %c11 = arith.constant 11 : index
    %76 = memref.load %arg1[%c11] : memref<16xf32, #tpu.memory_space<smem>>
    %77 = vector.broadcast %76 : f32 to vector<8x128xf32>
    %78 = arith.mulf %8, %77 : vector<8x128xf32>
    %79 = arith.addf %75, %78 : vector<8x128xf32>
    %c2_35 = arith.constant 2 : index
    %80 = memref.load %arg2[%c2_35] : memref<4xf32, #tpu.memory_space<smem>>
    %81 = vector.broadcast %80 : f32 to vector<8x128xf32>
    %82 = arith.addf %79, %81 : vector<8x128xf32>
    %c12 = arith.constant 12 : index
    %83 = memref.load %arg1[%c12] : memref<16xf32, #tpu.memory_space<smem>>
    %84 = vector.broadcast %83 : f32 to vector<8x128xf32>
    %85 = arith.mulf %2, %84 : vector<8x128xf32>
    %c13 = arith.constant 13 : index
    %86 = memref.load %arg1[%c13] : memref<16xf32, #tpu.memory_space<smem>>
    %87 = vector.broadcast %86 : f32 to vector<8x128xf32>
    %88 = arith.mulf %4, %87 : vector<8x128xf32>
    %89 = arith.addf %85, %88 : vector<8x128xf32>
    %c14 = arith.constant 14 : index
    %90 = memref.load %arg1[%c14] : memref<16xf32, #tpu.memory_space<smem>>
    %91 = vector.broadcast %90 : f32 to vector<8x128xf32>
    %92 = arith.mulf %6, %91 : vector<8x128xf32>
    %93 = arith.addf %89, %92 : vector<8x128xf32>
    %c15 = arith.constant 15 : index
    %94 = memref.load %arg1[%c15] : memref<16xf32, #tpu.memory_space<smem>>
    %95 = vector.broadcast %94 : f32 to vector<8x128xf32>
    %96 = arith.mulf %8, %95 : vector<8x128xf32>
    %97 = arith.addf %93, %96 : vector<8x128xf32>
    %c3_36 = arith.constant 3 : index
    %98 = memref.load %arg2[%c3_36] : memref<4xf32, #tpu.memory_space<smem>>
    %99 = vector.broadcast %98 : f32 to vector<8x128xf32>
    %100 = arith.addf %97, %99 : vector<8x128xf32>
    %101 = arith.maximumf %46, %64 : vector<8x128xf32>
    %102 = arith.maximumf %101, %82 : vector<8x128xf32>
    %103 = arith.maximumf %102, %100 : vector<8x128xf32>
    %104 = arith.subf %46, %103 : vector<8x128xf32>
    %105 = math.exp %104 : vector<8x128xf32>
    %106 = arith.subf %64, %103 : vector<8x128xf32>
    %107 = math.exp %106 : vector<8x128xf32>
    %108 = arith.subf %82, %103 : vector<8x128xf32>
    %109 = math.exp %108 : vector<8x128xf32>
    %110 = arith.subf %100, %103 : vector<8x128xf32>
    %111 = math.exp %110 : vector<8x128xf32>
    %112 = arith.addf %105, %107 : vector<8x128xf32>
    %113 = arith.addf %112, %109 : vector<8x128xf32>
    %114 = arith.addf %113, %111 : vector<8x128xf32>
    %115 = tpu.reciprocal %114 {approx = true} : vector<8x128xf32> -> vector<8x128xf32>
    %116 = arith.mulf %114, %115 : vector<8x128xf32>
    %cst = arith.constant 2.000000e+00 : f32
    %117 = vector.broadcast %cst : f32 to vector<8x128xf32>
    %118 = arith.subf %117, %116 : vector<8x128xf32>
    %119 = arith.mulf %115, %118 : vector<8x128xf32>
    %120 = arith.mulf %105, %119 : vector<8x128xf32>
    %121 = arith.mulf %107, %119 : vector<8x128xf32>
    %122 = arith.mulf %109, %119 : vector<8x128xf32>
    %123 = arith.mulf %111, %119 : vector<8x128xf32>
    %c0_37 = arith.constant 0 : index
    %124 = memref.load %arg1[%c0_37] : memref<16xf32, #tpu.memory_space<smem>>
    %125 = vector.broadcast %124 : f32 to vector<8x128xf32>
    %126 = arith.mulf %13, %125 : vector<8x128xf32>
    %c1_38 = arith.constant 1 : index
    %127 = memref.load %arg1[%c1_38] : memref<16xf32, #tpu.memory_space<smem>>
    %128 = vector.broadcast %127 : f32 to vector<8x128xf32>
    %129 = arith.mulf %18, %128 : vector<8x128xf32>
    %130 = arith.addf %126, %129 : vector<8x128xf32>
    %c2_39 = arith.constant 2 : index
    %131 = memref.load %arg1[%c2_39] : memref<16xf32, #tpu.memory_space<smem>>
    %132 = vector.broadcast %131 : f32 to vector<8x128xf32>
    %133 = arith.mulf %23, %132 : vector<8x128xf32>
    %134 = arith.addf %130, %133 : vector<8x128xf32>
    %c3_40 = arith.constant 3 : index
    %135 = memref.load %arg1[%c3_40] : memref<16xf32, #tpu.memory_space<smem>>
    %136 = vector.broadcast %135 : f32 to vector<8x128xf32>
    %137 = arith.mulf %28, %136 : vector<8x128xf32>
    %138 = arith.addf %134, %137 : vector<8x128xf32>
    %c0_41 = arith.constant 0 : index
    %139 = memref.load %arg2[%c0_41] : memref<4xf32, #tpu.memory_space<smem>>
    %140 = vector.broadcast %139 : f32 to vector<8x128xf32>
    %141 = arith.addf %138, %140 : vector<8x128xf32>
    %c4_42 = arith.constant 4 : index
    %142 = memref.load %arg1[%c4_42] : memref<16xf32, #tpu.memory_space<smem>>
    %143 = vector.broadcast %142 : f32 to vector<8x128xf32>
    %144 = arith.mulf %13, %143 : vector<8x128xf32>
    %c5_43 = arith.constant 5 : index
    %145 = memref.load %arg1[%c5_43] : memref<16xf32, #tpu.memory_space<smem>>
    %146 = vector.broadcast %145 : f32 to vector<8x128xf32>
    %147 = arith.mulf %18, %146 : vector<8x128xf32>
    %148 = arith.addf %144, %147 : vector<8x128xf32>
    %c6_44 = arith.constant 6 : index
    %149 = memref.load %arg1[%c6_44] : memref<16xf32, #tpu.memory_space<smem>>
    %150 = vector.broadcast %149 : f32 to vector<8x128xf32>
    %151 = arith.mulf %23, %150 : vector<8x128xf32>
    %152 = arith.addf %148, %151 : vector<8x128xf32>
    %c7_45 = arith.constant 7 : index
    %153 = memref.load %arg1[%c7_45] : memref<16xf32, #tpu.memory_space<smem>>
    %154 = vector.broadcast %153 : f32 to vector<8x128xf32>
    %155 = arith.mulf %28, %154 : vector<8x128xf32>
    %156 = arith.addf %152, %155 : vector<8x128xf32>
    %c1_46 = arith.constant 1 : index
    %157 = memref.load %arg2[%c1_46] : memref<4xf32, #tpu.memory_space<smem>>
    %158 = vector.broadcast %157 : f32 to vector<8x128xf32>
    %159 = arith.addf %156, %158 : vector<8x128xf32>
    %c8_47 = arith.constant 8 : index
    %160 = memref.load %arg1[%c8_47] : memref<16xf32, #tpu.memory_space<smem>>
    %161 = vector.broadcast %160 : f32 to vector<8x128xf32>
    %162 = arith.mulf %13, %161 : vector<8x128xf32>
    %c9_48 = arith.constant 9 : index
    %163 = memref.load %arg1[%c9_48] : memref<16xf32, #tpu.memory_space<smem>>
    %164 = vector.broadcast %163 : f32 to vector<8x128xf32>
    %165 = arith.mulf %18, %164 : vector<8x128xf32>
    %166 = arith.addf %162, %165 : vector<8x128xf32>
    %c10_49 = arith.constant 10 : index
    %167 = memref.load %arg1[%c10_49] : memref<16xf32, #tpu.memory_space<smem>>
    %168 = vector.broadcast %167 : f32 to vector<8x128xf32>
    %169 = arith.mulf %23, %168 : vector<8x128xf32>
    %170 = arith.addf %166, %169 : vector<8x128xf32>
    %c11_50 = arith.constant 11 : index
    %171 = memref.load %arg1[%c11_50] : memref<16xf32, #tpu.memory_space<smem>>
    %172 = vector.broadcast %171 : f32 to vector<8x128xf32>
    %173 = arith.mulf %28, %172 : vector<8x128xf32>
    %174 = arith.addf %170, %173 : vector<8x128xf32>
    %c2_51 = arith.constant 2 : index
    %175 = memref.load %arg2[%c2_51] : memref<4xf32, #tpu.memory_space<smem>>
    %176 = vector.broadcast %175 : f32 to vector<8x128xf32>
    %177 = arith.addf %174, %176 : vector<8x128xf32>
    %c12_52 = arith.constant 12 : index
    %178 = memref.load %arg1[%c12_52] : memref<16xf32, #tpu.memory_space<smem>>
    %179 = vector.broadcast %178 : f32 to vector<8x128xf32>
    %180 = arith.mulf %13, %179 : vector<8x128xf32>
    %c13_53 = arith.constant 13 : index
    %181 = memref.load %arg1[%c13_53] : memref<16xf32, #tpu.memory_space<smem>>
    %182 = vector.broadcast %181 : f32 to vector<8x128xf32>
    %183 = arith.mulf %18, %182 : vector<8x128xf32>
    %184 = arith.addf %180, %183 : vector<8x128xf32>
    %c14_54 = arith.constant 14 : index
    %185 = memref.load %arg1[%c14_54] : memref<16xf32, #tpu.memory_space<smem>>
    %186 = vector.broadcast %185 : f32 to vector<8x128xf32>
    %187 = arith.mulf %23, %186 : vector<8x128xf32>
    %188 = arith.addf %184, %187 : vector<8x128xf32>
    %c15_55 = arith.constant 15 : index
    %189 = memref.load %arg1[%c15_55] : memref<16xf32, #tpu.memory_space<smem>>
    %190 = vector.broadcast %189 : f32 to vector<8x128xf32>
    %191 = arith.mulf %28, %190 : vector<8x128xf32>
    %192 = arith.addf %188, %191 : vector<8x128xf32>
    %c3_56 = arith.constant 3 : index
    %193 = memref.load %arg2[%c3_56] : memref<4xf32, #tpu.memory_space<smem>>
    %194 = vector.broadcast %193 : f32 to vector<8x128xf32>
    %195 = arith.addf %192, %194 : vector<8x128xf32>
    %196 = arith.maximumf %141, %159 : vector<8x128xf32>
    %197 = arith.maximumf %196, %177 : vector<8x128xf32>
    %198 = arith.maximumf %197, %195 : vector<8x128xf32>
    %199 = arith.subf %141, %198 : vector<8x128xf32>
    %200 = math.exp %199 : vector<8x128xf32>
    %201 = arith.subf %159, %198 : vector<8x128xf32>
    %202 = math.exp %201 : vector<8x128xf32>
    %203 = arith.subf %177, %198 : vector<8x128xf32>
    %204 = math.exp %203 : vector<8x128xf32>
    %205 = arith.subf %195, %198 : vector<8x128xf32>
    %206 = math.exp %205 : vector<8x128xf32>
    %207 = arith.addf %200, %202 : vector<8x128xf32>
    %208 = arith.addf %207, %204 : vector<8x128xf32>
    %209 = arith.addf %208, %206 : vector<8x128xf32>
    %210 = tpu.reciprocal %209 {approx = true} : vector<8x128xf32> -> vector<8x128xf32>
    %211 = arith.mulf %209, %210 : vector<8x128xf32>
    %cst_57 = arith.constant 2.000000e+00 : f32
    %212 = vector.broadcast %cst_57 : f32 to vector<8x128xf32>
    %213 = arith.subf %212, %211 : vector<8x128xf32>
    %214 = arith.mulf %210, %213 : vector<8x128xf32>
    %215 = arith.mulf %200, %214 : vector<8x128xf32>
    %216 = arith.mulf %202, %214 : vector<8x128xf32>
    %217 = arith.mulf %204, %214 : vector<8x128xf32>
    %218 = arith.mulf %206, %214 : vector<8x128xf32>
    %c0_58 = arith.constant 0 : index
    %219 = memref.load %arg3[%c0_58] : memref<8xf32, #tpu.memory_space<smem>>
    %220 = vector.broadcast %219 : f32 to vector<8x128xf32>
    %221 = arith.mulf %220, %215 : vector<8x128xf32>
    %c4_59 = arith.constant 4 : index
    %222 = memref.load %arg3[%c4_59] : memref<8xf32, #tpu.memory_space<smem>>
    %223 = vector.broadcast %222 : f32 to vector<8x128xf32>
    %224 = arith.mulf %223, %120 : vector<8x128xf32>
    %225 = arith.subf %221, %224 : vector<8x128xf32>
    %c1_60 = arith.constant 1 : index
    %226 = memref.load %arg3[%c1_60] : memref<8xf32, #tpu.memory_space<smem>>
    %227 = vector.broadcast %226 : f32 to vector<8x128xf32>
    %228 = arith.mulf %227, %216 : vector<8x128xf32>
    %c5_61 = arith.constant 5 : index
    %229 = memref.load %arg3[%c5_61] : memref<8xf32, #tpu.memory_space<smem>>
    %230 = vector.broadcast %229 : f32 to vector<8x128xf32>
    %231 = arith.mulf %230, %121 : vector<8x128xf32>
    %232 = arith.subf %228, %231 : vector<8x128xf32>
    %c2_62 = arith.constant 2 : index
    %233 = memref.load %arg3[%c2_62] : memref<8xf32, #tpu.memory_space<smem>>
    %234 = vector.broadcast %233 : f32 to vector<8x128xf32>
    %235 = arith.mulf %234, %217 : vector<8x128xf32>
    %c6_63 = arith.constant 6 : index
    %236 = memref.load %arg3[%c6_63] : memref<8xf32, #tpu.memory_space<smem>>
    %237 = vector.broadcast %236 : f32 to vector<8x128xf32>
    %238 = arith.mulf %237, %122 : vector<8x128xf32>
    %239 = arith.subf %235, %238 : vector<8x128xf32>
    %c3_64 = arith.constant 3 : index
    %240 = memref.load %arg3[%c3_64] : memref<8xf32, #tpu.memory_space<smem>>
    %241 = vector.broadcast %240 : f32 to vector<8x128xf32>
    %242 = arith.mulf %241, %218 : vector<8x128xf32>
    %c7_65 = arith.constant 7 : index
    %243 = memref.load %arg3[%c7_65] : memref<8xf32, #tpu.memory_space<smem>>
    %244 = vector.broadcast %243 : f32 to vector<8x128xf32>
    %245 = arith.mulf %244, %123 : vector<8x128xf32>
    %246 = arith.subf %242, %245 : vector<8x128xf32>
    %247 = arith.mulf %225, %215 : vector<8x128xf32>
    %248 = arith.mulf %232, %216 : vector<8x128xf32>
    %249 = arith.addf %247, %248 : vector<8x128xf32>
    %250 = arith.mulf %239, %217 : vector<8x128xf32>
    %251 = arith.addf %249, %250 : vector<8x128xf32>
    %252 = arith.mulf %246, %218 : vector<8x128xf32>
    %253 = arith.addf %251, %252 : vector<8x128xf32>
    %254 = arith.subf %225, %253 : vector<8x128xf32>
    %255 = arith.mulf %215, %254 : vector<8x128xf32>
    %256 = arith.subf %232, %253 : vector<8x128xf32>
    %257 = arith.mulf %216, %256 : vector<8x128xf32>
    %258 = arith.subf %239, %253 : vector<8x128xf32>
    %259 = arith.mulf %217, %258 : vector<8x128xf32>
    %260 = arith.subf %246, %253 : vector<8x128xf32>
    %261 = arith.mulf %218, %260 : vector<8x128xf32>
    %c0_66 = arith.constant 0 : index
    %262 = memref.load %arg1[%c0_66] : memref<16xf32, #tpu.memory_space<smem>>
    %263 = vector.broadcast %262 : f32 to vector<8x128xf32>
    %264 = arith.mulf %255, %263 : vector<8x128xf32>
    %c4_67 = arith.constant 4 : index
    %265 = memref.load %arg1[%c4_67] : memref<16xf32, #tpu.memory_space<smem>>
    %266 = vector.broadcast %265 : f32 to vector<8x128xf32>
    %267 = arith.mulf %257, %266 : vector<8x128xf32>
    %268 = arith.addf %264, %267 : vector<8x128xf32>
    %c8_68 = arith.constant 8 : index
    %269 = memref.load %arg1[%c8_68] : memref<16xf32, #tpu.memory_space<smem>>
    %270 = vector.broadcast %269 : f32 to vector<8x128xf32>
    %271 = arith.mulf %259, %270 : vector<8x128xf32>
    %272 = arith.addf %268, %271 : vector<8x128xf32>
    %c12_69 = arith.constant 12 : index
    %273 = memref.load %arg1[%c12_69] : memref<16xf32, #tpu.memory_space<smem>>
    %274 = vector.broadcast %273 : f32 to vector<8x128xf32>
    %275 = arith.mulf %261, %274 : vector<8x128xf32>
    %276 = arith.addf %272, %275 : vector<8x128xf32>
    %c0_70 = arith.constant 0 : index
    %c0_71 = arith.constant 0 : index
    %c0_72 = arith.constant 0 : index
    %c0_73 = arith.constant 0 : index
    %277 = vector.load %arg7[%c0_70, %c0_71, %c0_72, %c0_73] : memref<2x4x8x128xf32, #tpu.memory_space<vmem>>, vector<1x1x8x128xf32>
    %278 = vector.shape_cast %277 : vector<1x1x8x128xf32> to vector<8x128xf32>
    %279 = vector.shape_cast %276 : vector<8x128xf32> to vector<1x1x8x128xf32>
    tpu.vector_store %arg7[%c0_70, %c0_71, %c0_72, %c0_73], %279 {strides = array<i32>} : memref<2x4x8x128xf32, #tpu.memory_space<vmem>>, vector<1x1x8x128xf32>,
    %280 = arith.mulf %276, %276 : vector<8x128xf32>
    %c1_74 = arith.constant 1 : index
    %281 = memref.load %arg1[%c1_74] : memref<16xf32, #tpu.memory_space<smem>>
    %282 = vector.broadcast %281 : f32 to vector<8x128xf32>
    %283 = arith.mulf %255, %282 : vector<8x128xf32>
    %c5_75 = arith.constant 5 : index
    %284 = memref.load %arg1[%c5_75] : memref<16xf32, #tpu.memory_space<smem>>
    %285 = vector.broadcast %284 : f32 to vector<8x128xf32>
    %286 = arith.mulf %257, %285 : vector<8x128xf32>
    %287 = arith.addf %283, %286 : vector<8x128xf32>
    %c9_76 = arith.constant 9 : index
    %288 = memref.load %arg1[%c9_76] : memref<16xf32, #tpu.memory_space<smem>>
    %289 = vector.broadcast %288 : f32 to vector<8x128xf32>
    %290 = arith.mulf %259, %289 : vector<8x128xf32>
    %291 = arith.addf %287, %290 : vector<8x128xf32>
    %c13_77 = arith.constant 13 : index
    %292 = memref.load %arg1[%c13_77] : memref<16xf32, #tpu.memory_space<smem>>
    %293 = vector.broadcast %292 : f32 to vector<8x128xf32>
    %294 = arith.mulf %261, %293 : vector<8x128xf32>
    %295 = arith.addf %291, %294 : vector<8x128xf32>
    %c0_78 = arith.constant 0 : index
    %c1_79 = arith.constant 1 : index
    %c0_80 = arith.constant 0 : index
    %c0_81 = arith.constant 0 : index
    %296 = vector.load %arg7[%c0_78, %c1_79, %c0_80, %c0_81] : memref<2x4x8x128xf32, #tpu.memory_space<vmem>>, vector<1x1x8x128xf32>
    %297 = vector.shape_cast %296 : vector<1x1x8x128xf32> to vector<8x128xf32>
    %298 = vector.shape_cast %295 : vector<8x128xf32> to vector<1x1x8x128xf32>
    tpu.vector_store %arg7[%c0_78, %c1_79, %c0_80, %c0_81], %298 {strides = array<i32>} : memref<2x4x8x128xf32, #tpu.memory_space<vmem>>, vector<1x1x8x128xf32>,
    %299 = arith.mulf %295, %295 : vector<8x128xf32>
    %300 = arith.addf %280, %299 : vector<8x128xf32>
    %c2_82 = arith.constant 2 : index
    %301 = memref.load %arg1[%c2_82] : memref<16xf32, #tpu.memory_space<smem>>
    %302 = vector.broadcast %301 : f32 to vector<8x128xf32>
    %303 = arith.mulf %255, %302 : vector<8x128xf32>
    %c6_83 = arith.constant 6 : index
    %304 = memref.load %arg1[%c6_83] : memref<16xf32, #tpu.memory_space<smem>>
    %305 = vector.broadcast %304 : f32 to vector<8x128xf32>
    %306 = arith.mulf %257, %305 : vector<8x128xf32>
    %307 = arith.addf %303, %306 : vector<8x128xf32>
    %c10_84 = arith.constant 10 : index
    %308 = memref.load %arg1[%c10_84] : memref<16xf32, #tpu.memory_space<smem>>
    %309 = vector.broadcast %308 : f32 to vector<8x128xf32>
    %310 = arith.mulf %259, %309 : vector<8x128xf32>
    %311 = arith.addf %307, %310 : vector<8x128xf32>
    %c14_85 = arith.constant 14 : index
    %312 = memref.load %arg1[%c14_85] : memref<16xf32, #tpu.memory_space<smem>>
    %313 = vector.broadcast %312 : f32 to vector<8x128xf32>
    %314 = arith.mulf %261, %313 : vector<8x128xf32>
    %315 = arith.addf %311, %314 : vector<8x128xf32>
    %c0_86 = arith.constant 0 : index
    %c2_87 = arith.constant 2 : index
    %c0_88 = arith.constant 0 : index
    %c0_89 = arith.constant 0 : index
    %316 = vector.load %arg7[%c0_86, %c2_87, %c0_88, %c0_89] : memref<2x4x8x128xf32, #tpu.memory_space<vmem>>, vector<1x1x8x128xf32>
    %317 = vector.shape_cast %316 : vector<1x1x8x128xf32> to vector<8x128xf32>
    %318 = vector.shape_cast %315 : vector<8x128xf32> to vector<1x1x8x128xf32>
    tpu.vector_store %arg7[%c0_86, %c2_87, %c0_88, %c0_89], %318 {strides = array<i32>} : memref<2x4x8x128xf32, #tpu.memory_space<vmem>>, vector<1x1x8x128xf32>,
    %319 = arith.mulf %315, %315 : vector<8x128xf32>
    %320 = arith.addf %300, %319 : vector<8x128xf32>
    %c3_90 = arith.constant 3 : index
    %321 = memref.load %arg1[%c3_90] : memref<16xf32, #tpu.memory_space<smem>>
    %322 = vector.broadcast %321 : f32 to vector<8x128xf32>
    %323 = arith.mulf %255, %322 : vector<8x128xf32>
    %c7_91 = arith.constant 7 : index
    %324 = memref.load %arg1[%c7_91] : memref<16xf32, #tpu.memory_space<smem>>
    %325 = vector.broadcast %324 : f32 to vector<8x128xf32>
    %326 = arith.mulf %257, %325 : vector<8x128xf32>
    %327 = arith.addf %323, %326 : vector<8x128xf32>
    %c11_92 = arith.constant 11 : index
    %328 = memref.load %arg1[%c11_92] : memref<16xf32, #tpu.memory_space<smem>>
    %329 = vector.broadcast %328 : f32 to vector<8x128xf32>
    %330 = arith.mulf %259, %329 : vector<8x128xf32>
    %331 = arith.addf %327, %330 : vector<8x128xf32>
    %c15_93 = arith.constant 15 : index
    %332 = memref.load %arg1[%c15_93] : memref<16xf32, #tpu.memory_space<smem>>
    %333 = vector.broadcast %332 : f32 to vector<8x128xf32>
    %334 = arith.mulf %261, %333 : vector<8x128xf32>
    %335 = arith.addf %331, %334 : vector<8x128xf32>
    %c0_94 = arith.constant 0 : index
    %c3_95 = arith.constant 3 : index
    %c0_96 = arith.constant 0 : index
    %c0_97 = arith.constant 0 : index
    %336 = vector.load %arg7[%c0_94, %c3_95, %c0_96, %c0_97] : memref<2x4x8x128xf32, #tpu.memory_space<vmem>>, vector<1x1x8x128xf32>
    %337 = vector.shape_cast %336 : vector<1x1x8x128xf32> to vector<8x128xf32>
    %338 = vector.shape_cast %335 : vector<8x128xf32> to vector<1x1x8x128xf32>
    tpu.vector_store %arg7[%c0_94, %c3_95, %c0_96, %c0_97], %338 {strides = array<i32>} : memref<2x4x8x128xf32, #tpu.memory_space<vmem>>, vector<1x1x8x128xf32>,
    %339 = arith.mulf %335, %335 : vector<8x128xf32>
    %340 = arith.addf %320, %339 : vector<8x128xf32>
    %341 = vector.shape_cast %340 : vector<8x128xf32> to vector<1x8x128xf32>
    %cst_98 = arith.constant dense<0.000000e+00> : vector<1xf32>
    %342 = vector.multi_reduction <add>, %341, %cst_98 [1, 2] : vector<1x8x128xf32> to vector<1xf32>
    %343 = vector.shape_cast %342 : vector<1xf32> to vector<1x1x1xf32>
    %344 = vector.extract %343[0, 0, 0] : f32 from vector<1x1x1xf32>
    %c1_99 = arith.constant 1 : index
    %345 = memref.load %arg4[%c1_99] : memref<2xf32, #tpu.memory_space<smem>>
    %c1_100 = arith.constant 1 : index
    %c0_101 = arith.constant 0 : index
    %c0_102 = arith.constant 0 : index
    %c0_103 = arith.constant 0 : index
    %346 = vector.load %arg5[%c1_100, %c0_101, %c0_102, %c0_103] : memref<2x4x8x128xf32, #tpu.memory_space<vmem>>, vector<1x1x8x128xf32>
    %347 = vector.shape_cast %346 : vector<1x1x8x128xf32> to vector<8x128xf32>
    %c1_104 = arith.constant 1 : index
    %c1_105 = arith.constant 1 : index
    %c0_106 = arith.constant 0 : index
    %c0_107 = arith.constant 0 : index
    %348 = vector.load %arg5[%c1_104, %c1_105, %c0_106, %c0_107] : memref<2x4x8x128xf32, #tpu.memory_space<vmem>>, vector<1x1x8x128xf32>
    %349 = vector.shape_cast %348 : vector<1x1x8x128xf32> to vector<8x128xf32>
    %c1_108 = arith.constant 1 : index
    %c2_109 = arith.constant 2 : index
    %c0_110 = arith.constant 0 : index
    %c0_111 = arith.constant 0 : index
    %350 = vector.load %arg5[%c1_108, %c2_109, %c0_110, %c0_111] : memref<2x4x8x128xf32, #tpu.memory_space<vmem>>, vector<1x1x8x128xf32>
    %351 = vector.shape_cast %350 : vector<1x1x8x128xf32> to vector<8x128xf32>
    %c1_112 = arith.constant 1 : index
    %c3_113 = arith.constant 3 : index
    %c0_114 = arith.constant 0 : index
    %c0_115 = arith.constant 0 : index
    %352 = vector.load %arg5[%c1_112, %c3_113, %c0_114, %c0_115] : memref<2x4x8x128xf32, #tpu.memory_space<vmem>>, vector<1x1x8x128xf32>
    %353 = vector.shape_cast %352 : vector<1x1x8x128xf32> to vector<8x128xf32>
    %c1_116 = arith.constant 1 : index
    %c0_117 = arith.constant 0 : index
    %c0_118 = arith.constant 0 : index
    %c0_119 = arith.constant 0 : index
    %354 = vector.load %arg6[%c1_116, %c0_117, %c0_118, %c0_119] : memref<2x4x8x128xf32, #tpu.memory_space<vmem>>, vector<1x1x8x128xf32>
    %355 = vector.shape_cast %354 : vector<1x1x8x128xf32> to vector<8x128xf32>
    %356 = vector.broadcast %345 : f32 to vector<8x128xf32>
    %357 = arith.mulf %356, %355 : vector<8x128xf32>
    %358 = arith.addf %347, %357 : vector<8x128xf32>
    %c1_120 = arith.constant 1 : index
    %c1_121 = arith.constant 1 : index
    %c0_122 = arith.constant 0 : index
    %c0_123 = arith.constant 0 : index
    %359 = vector.load %arg6[%c1_120, %c1_121, %c0_122, %c0_123] : memref<2x4x8x128xf32, #tpu.memory_space<vmem>>, vector<1x1x8x128xf32>
    %360 = vector.shape_cast %359 : vector<1x1x8x128xf32> to vector<8x128xf32>
    %361 = vector.broadcast %345 : f32 to vector<8x128xf32>
    %362 = arith.mulf %361, %360 : vector<8x128xf32>
    %363 = arith.addf %349, %362 : vector<8x128xf32>
    %c1_124 = arith.constant 1 : index
    %c2_125 = arith.constant 2 : index
    %c0_126 = arith.constant 0 : index
    %c0_127 = arith.constant 0 : index
    %364 = vector.load %arg6[%c1_124, %c2_125, %c0_126, %c0_127] : memref<2x4x8x128xf32, #tpu.memory_space<vmem>>, vector<1x1x8x128xf32>
    %365 = vector.shape_cast %364 : vector<1x1x8x128xf32> to vector<8x128xf32>
    %366 = vector.broadcast %345 : f32 to vector<8x128xf32>
    %367 = arith.mulf %366, %365 : vector<8x128xf32>
    %368 = arith.addf %351, %367 : vector<8x128xf32>
    %c1_128 = arith.constant 1 : index
    %c3_129 = arith.constant 3 : index
    %c0_130 = arith.constant 0 : index
    %c0_131 = arith.constant 0 : index
    %369 = vector.load %arg6[%c1_128, %c3_129, %c0_130, %c0_131] : memref<2x4x8x128xf32, #tpu.memory_space<vmem>>, vector<1x1x8x128xf32>
    %370 = vector.shape_cast %369 : vector<1x1x8x128xf32> to vector<8x128xf32>
    %371 = vector.broadcast %345 : f32 to vector<8x128xf32>
    %372 = arith.mulf %371, %370 : vector<8x128xf32>
    %373 = arith.addf %353, %372 : vector<8x128xf32>
    %c0_132 = arith.constant 0 : index
    %374 = memref.load %arg1[%c0_132] : memref<16xf32, #tpu.memory_space<smem>>
    %375 = vector.broadcast %374 : f32 to vector<8x128xf32>
    %376 = arith.mulf %347, %375 : vector<8x128xf32>
    %c1_133 = arith.constant 1 : index
    %377 = memref.load %arg1[%c1_133] : memref<16xf32, #tpu.memory_space<smem>>
    %378 = vector.broadcast %377 : f32 to vector<8x128xf32>
    %379 = arith.mulf %349, %378 : vector<8x128xf32>
    %380 = arith.addf %376, %379 : vector<8x128xf32>
    %c2_134 = arith.constant 2 : index
    %381 = memref.load %arg1[%c2_134] : memref<16xf32, #tpu.memory_space<smem>>
    %382 = vector.broadcast %381 : f32 to vector<8x128xf32>
    %383 = arith.mulf %351, %382 : vector<8x128xf32>
    %384 = arith.addf %380, %383 : vector<8x128xf32>
    %c3_135 = arith.constant 3 : index
    %385 = memref.load %arg1[%c3_135] : memref<16xf32, #tpu.memory_space<smem>>
    %386 = vector.broadcast %385 : f32 to vector<8x128xf32>
    %387 = arith.mulf %353, %386 : vector<8x128xf32>
    %388 = arith.addf %384, %387 : vector<8x128xf32>
    %c0_136 = arith.constant 0 : index
    %389 = memref.load %arg2[%c0_136] : memref<4xf32, #tpu.memory_space<smem>>
    %390 = vector.broadcast %389 : f32 to vector<8x128xf32>
    %391 = arith.addf %388, %390 : vector<8x128xf32>
    %c4_137 = arith.constant 4 : index
    %392 = memref.load %arg1[%c4_137] : memref<16xf32, #tpu.memory_space<smem>>
    %393 = vector.broadcast %392 : f32 to vector<8x128xf32>
    %394 = arith.mulf %347, %393 : vector<8x128xf32>
    %c5_138 = arith.constant 5 : index
    %395 = memref.load %arg1[%c5_138] : memref<16xf32, #tpu.memory_space<smem>>
    %396 = vector.broadcast %395 : f32 to vector<8x128xf32>
    %397 = arith.mulf %349, %396 : vector<8x128xf32>
    %398 = arith.addf %394, %397 : vector<8x128xf32>
    %c6_139 = arith.constant 6 : index
    %399 = memref.load %arg1[%c6_139] : memref<16xf32, #tpu.memory_space<smem>>
    %400 = vector.broadcast %399 : f32 to vector<8x128xf32>
    %401 = arith.mulf %351, %400 : vector<8x128xf32>
    %402 = arith.addf %398, %401 : vector<8x128xf32>
    %c7_140 = arith.constant 7 : index
    %403 = memref.load %arg1[%c7_140] : memref<16xf32, #tpu.memory_space<smem>>
    %404 = vector.broadcast %403 : f32 to vector<8x128xf32>
    %405 = arith.mulf %353, %404 : vector<8x128xf32>
    %406 = arith.addf %402, %405 : vector<8x128xf32>
    %c1_141 = arith.constant 1 : index
    %407 = memref.load %arg2[%c1_141] : memref<4xf32, #tpu.memory_space<smem>>
    %408 = vector.broadcast %407 : f32 to vector<8x128xf32>
    %409 = arith.addf %406, %408 : vector<8x128xf32>
    %c8_142 = arith.constant 8 : index
    %410 = memref.load %arg1[%c8_142] : memref<16xf32, #tpu.memory_space<smem>>
    %411 = vector.broadcast %410 : f32 to vector<8x128xf32>
    %412 = arith.mulf %347, %411 : vector<8x128xf32>
    %c9_143 = arith.constant 9 : index
    %413 = memref.load %arg1[%c9_143] : memref<16xf32, #tpu.memory_space<smem>>
    %414 = vector.broadcast %413 : f32 to vector<8x128xf32>
    %415 = arith.mulf %349, %414 : vector<8x128xf32>
    %416 = arith.addf %412, %415 : vector<8x128xf32>
    %c10_144 = arith.constant 10 : index
    %417 = memref.load %arg1[%c10_144] : memref<16xf32, #tpu.memory_space<smem>>
    %418 = vector.broadcast %417 : f32 to vector<8x128xf32>
    %419 = arith.mulf %351, %418 : vector<8x128xf32>
    %420 = arith.addf %416, %419 : vector<8x128xf32>
    %c11_145 = arith.constant 11 : index
    %421 = memref.load %arg1[%c11_145] : memref<16xf32, #tpu.memory_space<smem>>
    %422 = vector.broadcast %421 : f32 to vector<8x128xf32>
    %423 = arith.mulf %353, %422 : vector<8x128xf32>
    %424 = arith.addf %420, %423 : vector<8x128xf32>
    %c2_146 = arith.constant 2 : index
    %425 = memref.load %arg2[%c2_146] : memref<4xf32, #tpu.memory_space<smem>>
    %426 = vector.broadcast %425 : f32 to vector<8x128xf32>
    %427 = arith.addf %424, %426 : vector<8x128xf32>
    %c12_147 = arith.constant 12 : index
    %428 = memref.load %arg1[%c12_147] : memref<16xf32, #tpu.memory_space<smem>>
    %429 = vector.broadcast %428 : f32 to vector<8x128xf32>
    %430 = arith.mulf %347, %429 : vector<8x128xf32>
    %c13_148 = arith.constant 13 : index
    %431 = memref.load %arg1[%c13_148] : memref<16xf32, #tpu.memory_space<smem>>
    %432 = vector.broadcast %431 : f32 to vector<8x128xf32>
    %433 = arith.mulf %349, %432 : vector<8x128xf32>
    %434 = arith.addf %430, %433 : vector<8x128xf32>
    %c14_149 = arith.constant 14 : index
    %435 = memref.load %arg1[%c14_149] : memref<16xf32, #tpu.memory_space<smem>>
    %436 = vector.broadcast %435 : f32 to vector<8x128xf32>
    %437 = arith.mulf %351, %436 : vector<8x128xf32>
    %438 = arith.addf %434, %437 : vector<8x128xf32>
    %c15_150 = arith.constant 15 : index
    %439 = memref.load %arg1[%c15_150] : memref<16xf32, #tpu.memory_space<smem>>
    %440 = vector.broadcast %439 : f32 to vector<8x128xf32>
    %441 = arith.mulf %353, %440 : vector<8x128xf32>
    %442 = arith.addf %438, %441 : vector<8x128xf32>
    %c3_151 = arith.constant 3 : index
    %443 = memref.load %arg2[%c3_151] : memref<4xf32, #tpu.memory_space<smem>>
    %444 = vector.broadcast %443 : f32 to vector<8x128xf32>
    %445 = arith.addf %442, %444 : vector<8x128xf32>
    %446 = arith.maximumf %391, %409 : vector<8x128xf32>
    %447 = arith.maximumf %446, %427 : vector<8x128xf32>
    %448 = arith.maximumf %447, %445 : vector<8x128xf32>
    %449 = arith.subf %391, %448 : vector<8x128xf32>
    %450 = math.exp %449 : vector<8x128xf32>
    %451 = arith.subf %409, %448 : vector<8x128xf32>
    %452 = math.exp %451 : vector<8x128xf32>
    %453 = arith.subf %427, %448 : vector<8x128xf32>
    %454 = math.exp %453 : vector<8x128xf32>
    %455 = arith.subf %445, %448 : vector<8x128xf32>
    %456 = math.exp %455 : vector<8x128xf32>
    %457 = arith.addf %450, %452 : vector<8x128xf32>
    %458 = arith.addf %457, %454 : vector<8x128xf32>
    %459 = arith.addf %458, %456 : vector<8x128xf32>
    %460 = tpu.reciprocal %459 {approx = true} : vector<8x128xf32> -> vector<8x128xf32>
    %461 = arith.mulf %459, %460 : vector<8x128xf32>
    %cst_152 = arith.constant 2.000000e+00 : f32
    %462 = vector.broadcast %cst_152 : f32 to vector<8x128xf32>
    %463 = arith.subf %462, %461 : vector<8x128xf32>
    %464 = arith.mulf %460, %463 : vector<8x128xf32>
    %465 = arith.mulf %450, %464 : vector<8x128xf32>
    %466 = arith.mulf %452, %464 : vector<8x128xf32>
    %467 = arith.mulf %454, %464 : vector<8x128xf32>
    %468 = arith.mulf %456, %464 : vector<8x128xf32>
    %c0_153 = arith.constant 0 : index
    %469 = memref.load %arg1[%c0_153] : memref<16xf32, #tpu.memory_space<smem>>
    %470 = vector.broadcast %469 : f32 to vector<8x128xf32>
    %471 = arith.mulf %358, %470 : vector<8x128xf32>
    %c1_154 = arith.constant 1 : index
    %472 = memref.load %arg1[%c1_154] : memref<16xf32, #tpu.memory_space<smem>>
    %473 = vector.broadcast %472 : f32 to vector<8x128xf32>
    %474 = arith.mulf %363, %473 : vector<8x128xf32>
    %475 = arith.addf %471, %474 : vector<8x128xf32>
    %c2_155 = arith.constant 2 : index
    %476 = memref.load %arg1[%c2_155] : memref<16xf32, #tpu.memory_space<smem>>
    %477 = vector.broadcast %476 : f32 to vector<8x128xf32>
    %478 = arith.mulf %368, %477 : vector<8x128xf32>
    %479 = arith.addf %475, %478 : vector<8x128xf32>
    %c3_156 = arith.constant 3 : index
    %480 = memref.load %arg1[%c3_156] : memref<16xf32, #tpu.memory_space<smem>>
    %481 = vector.broadcast %480 : f32 to vector<8x128xf32>
    %482 = arith.mulf %373, %481 : vector<8x128xf32>
    %483 = arith.addf %479, %482 : vector<8x128xf32>
    %c0_157 = arith.constant 0 : index
    %484 = memref.load %arg2[%c0_157] : memref<4xf32, #tpu.memory_space<smem>>
    %485 = vector.broadcast %484 : f32 to vector<8x128xf32>
    %486 = arith.addf %483, %485 : vector<8x128xf32>
    %c4_158 = arith.constant 4 : index
    %487 = memref.load %arg1[%c4_158] : memref<16xf32, #tpu.memory_space<smem>>
    %488 = vector.broadcast %487 : f32 to vector<8x128xf32>
    %489 = arith.mulf %358, %488 : vector<8x128xf32>
    %c5_159 = arith.constant 5 : index
    %490 = memref.load %arg1[%c5_159] : memref<16xf32, #tpu.memory_space<smem>>
    %491 = vector.broadcast %490 : f32 to vector<8x128xf32>
    %492 = arith.mulf %363, %491 : vector<8x128xf32>
    %493 = arith.addf %489, %492 : vector<8x128xf32>
    %c6_160 = arith.constant 6 : index
    %494 = memref.load %arg1[%c6_160] : memref<16xf32, #tpu.memory_space<smem>>
    %495 = vector.broadcast %494 : f32 to vector<8x128xf32>
    %496 = arith.mulf %368, %495 : vector<8x128xf32>
    %497 = arith.addf %493, %496 : vector<8x128xf32>
    %c7_161 = arith.constant 7 : index
    %498 = memref.load %arg1[%c7_161] : memref<16xf32, #tpu.memory_space<smem>>
    %499 = vector.broadcast %498 : f32 to vector<8x128xf32>
    %500 = arith.mulf %373, %499 : vector<8x128xf32>
    %501 = arith.addf %497, %500 : vector<8x128xf32>
    %c1_162 = arith.constant 1 : index
    %502 = memref.load %arg2[%c1_162] : memref<4xf32, #tpu.memory_space<smem>>
    %503 = vector.broadcast %502 : f32 to vector<8x128xf32>
    %504 = arith.addf %501, %503 : vector<8x128xf32>
    %c8_163 = arith.constant 8 : index
    %505 = memref.load %arg1[%c8_163] : memref<16xf32, #tpu.memory_space<smem>>
    %506 = vector.broadcast %505 : f32 to vector<8x128xf32>
    %507 = arith.mulf %358, %506 : vector<8x128xf32>
    %c9_164 = arith.constant 9 : index
    %508 = memref.load %arg1[%c9_164] : memref<16xf32, #tpu.memory_space<smem>>
    %509 = vector.broadcast %508 : f32 to vector<8x128xf32>
    %510 = arith.mulf %363, %509 : vector<8x128xf32>
    %511 = arith.addf %507, %510 : vector<8x128xf32>
    %c10_165 = arith.constant 10 : index
    %512 = memref.load %arg1[%c10_165] : memref<16xf32, #tpu.memory_space<smem>>
    %513 = vector.broadcast %512 : f32 to vector<8x128xf32>
    %514 = arith.mulf %368, %513 : vector<8x128xf32>
    %515 = arith.addf %511, %514 : vector<8x128xf32>
    %c11_166 = arith.constant 11 : index
    %516 = memref.load %arg1[%c11_166] : memref<16xf32, #tpu.memory_space<smem>>
    %517 = vector.broadcast %516 : f32 to vector<8x128xf32>
    %518 = arith.mulf %373, %517 : vector<8x128xf32>
    %519 = arith.addf %515, %518 : vector<8x128xf32>
    %c2_167 = arith.constant 2 : index
    %520 = memref.load %arg2[%c2_167] : memref<4xf32, #tpu.memory_space<smem>>
    %521 = vector.broadcast %520 : f32 to vector<8x128xf32>
    %522 = arith.addf %519, %521 : vector<8x128xf32>
    %c12_168 = arith.constant 12 : index
    %523 = memref.load %arg1[%c12_168] : memref<16xf32, #tpu.memory_space<smem>>
    %524 = vector.broadcast %523 : f32 to vector<8x128xf32>
    %525 = arith.mulf %358, %524 : vector<8x128xf32>
    %c13_169 = arith.constant 13 : index
    %526 = memref.load %arg1[%c13_169] : memref<16xf32, #tpu.memory_space<smem>>
    %527 = vector.broadcast %526 : f32 to vector<8x128xf32>
    %528 = arith.mulf %363, %527 : vector<8x128xf32>
    %529 = arith.addf %525, %528 : vector<8x128xf32>
    %c14_170 = arith.constant 14 : index
    %530 = memref.load %arg1[%c14_170] : memref<16xf32, #tpu.memory_space<smem>>
    %531 = vector.broadcast %530 : f32 to vector<8x128xf32>
    %532 = arith.mulf %368, %531 : vector<8x128xf32>
    %533 = arith.addf %529, %532 : vector<8x128xf32>
    %c15_171 = arith.constant 15 : index
    %534 = memref.load %arg1[%c15_171] : memref<16xf32, #tpu.memory_space<smem>>
    %535 = vector.broadcast %534 : f32 to vector<8x128xf32>
    %536 = arith.mulf %373, %535 : vector<8x128xf32>
    %537 = arith.addf %533, %536 : vector<8x128xf32>
    %c3_172 = arith.constant 3 : index
    %538 = memref.load %arg2[%c3_172] : memref<4xf32, #tpu.memory_space<smem>>
    %539 = vector.broadcast %538 : f32 to vector<8x128xf32>
    %540 = arith.addf %537, %539 : vector<8x128xf32>
    %541 = arith.maximumf %486, %504 : vector<8x128xf32>
    %542 = arith.maximumf %541, %522 : vector<8x128xf32>
    %543 = arith.maximumf %542, %540 : vector<8x128xf32>
    %544 = arith.subf %486, %543 : vector<8x128xf32>
    %545 = math.exp %544 : vector<8x128xf32>
    %546 = arith.subf %504, %543 : vector<8x128xf32>
    %547 = math.exp %546 : vector<8x128xf32>
    %548 = arith.subf %522, %543 : vector<8x128xf32>
    %549 = math.exp %548 : vector<8x128xf32>
    %550 = arith.subf %540, %543 : vector<8x128xf32>
    %551 = math.exp %550 : vector<8x128xf32>
    %552 = arith.addf %545, %547 : vector<8x128xf32>
    %553 = arith.addf %552, %549 : vector<8x128xf32>
    %554 = arith.addf %553, %551 : vector<8x128xf32>
    %555 = tpu.reciprocal %554 {approx = true} : vector<8x128xf32> -> vector<8x128xf32>
    %556 = arith.mulf %554, %555 : vector<8x128xf32>
    %cst_173 = arith.constant 2.000000e+00 : f32
    %557 = vector.broadcast %cst_173 : f32 to vector<8x128xf32>
    %558 = arith.subf %557, %556 : vector<8x128xf32>
    %559 = arith.mulf %555, %558 : vector<8x128xf32>
    %560 = arith.mulf %545, %559 : vector<8x128xf32>
    %561 = arith.mulf %547, %559 : vector<8x128xf32>
    %562 = arith.mulf %549, %559 : vector<8x128xf32>
    %563 = arith.mulf %551, %559 : vector<8x128xf32>
    %c0_174 = arith.constant 0 : index
    %564 = memref.load %arg3[%c0_174] : memref<8xf32, #tpu.memory_space<smem>>
    %565 = vector.broadcast %564 : f32 to vector<8x128xf32>
    %566 = arith.mulf %565, %560 : vector<8x128xf32>
    %c4_175 = arith.constant 4 : index
    %567 = memref.load %arg3[%c4_175] : memref<8xf32, #tpu.memory_space<smem>>
    %568 = vector.broadcast %567 : f32 to vector<8x128xf32>
    %569 = arith.mulf %568, %465 : vector<8x128xf32>
    %570 = arith.subf %566, %569 : vector<8x128xf32>
    %c1_176 = arith.constant 1 : index
    %571 = memref.load %arg3[%c1_176] : memref<8xf32, #tpu.memory_space<smem>>
    %572 = vector.broadcast %571 : f32 to vector<8x128xf32>
    %573 = arith.mulf %572, %561 : vector<8x128xf32>
    %c5_177 = arith.constant 5 : index
    %574 = memref.load %arg3[%c5_177] : memref<8xf32, #tpu.memory_space<smem>>
    %575 = vector.broadcast %574 : f32 to vector<8x128xf32>
    %576 = arith.mulf %575, %466 : vector<8x128xf32>
    %577 = arith.subf %573, %576 : vector<8x128xf32>
    %c2_178 = arith.constant 2 : index
    %578 = memref.load %arg3[%c2_178] : memref<8xf32, #tpu.memory_space<smem>>
    %579 = vector.broadcast %578 : f32 to vector<8x128xf32>
    %580 = arith.mulf %579, %562 : vector<8x128xf32>
    %c6_179 = arith.constant 6 : index
    %581 = memref.load %arg3[%c6_179] : memref<8xf32, #tpu.memory_space<smem>>
    %582 = vector.broadcast %581 : f32 to vector<8x128xf32>
    %583 = arith.mulf %582, %467 : vector<8x128xf32>
    %584 = arith.subf %580, %583 : vector<8x128xf32>
    %c3_180 = arith.constant 3 : index
    %585 = memref.load %arg3[%c3_180] : memref<8xf32, #tpu.memory_space<smem>>
    %586 = vector.broadcast %585 : f32 to vector<8x128xf32>
    %587 = arith.mulf %586, %563 : vector<8x128xf32>
    %c7_181 = arith.constant 7 : index
    %588 = memref.load %arg3[%c7_181] : memref<8xf32, #tpu.memory_space<smem>>
    %589 = vector.broadcast %588 : f32 to vector<8x128xf32>
    %590 = arith.mulf %589, %468 : vector<8x128xf32>
    %591 = arith.subf %587, %590 : vector<8x128xf32>
    %592 = arith.mulf %570, %560 : vector<8x128xf32>
    %593 = arith.mulf %577, %561 : vector<8x128xf32>
    %594 = arith.addf %592, %593 : vector<8x128xf32>
    %595 = arith.mulf %584, %562 : vector<8x128xf32>
    %596 = arith.addf %594, %595 : vector<8x128xf32>
    %597 = arith.mulf %591, %563 : vector<8x128xf32>
    %598 = arith.addf %596, %597 : vector<8x128xf32>
    %599 = arith.subf %570, %598 : vector<8x128xf32>
    %600 = arith.mulf %560, %599 : vector<8x128xf32>
    %601 = arith.subf %577, %598 : vector<8x128xf32>
    %602 = arith.mulf %561, %601 : vector<8x128xf32>
    %603 = arith.subf %584, %598 : vector<8x128xf32>
    %604 = arith.mulf %562, %603 : vector<8x128xf32>
    %605 = arith.subf %591, %598 : vector<8x128xf32>
    %606 = arith.mulf %563, %605 : vector<8x128xf32>
    %c0_182 = arith.constant 0 : index
    %607 = memref.load %arg1[%c0_182] : memref<16xf32, #tpu.memory_space<smem>>
    %608 = vector.broadcast %607 : f32 to vector<8x128xf32>
    %609 = arith.mulf %600, %608 : vector<8x128xf32>
    %c4_183 = arith.constant 4 : index
    %610 = memref.load %arg1[%c4_183] : memref<16xf32, #tpu.memory_space<smem>>
    %611 = vector.broadcast %610 : f32 to vector<8x128xf32>
    %612 = arith.mulf %602, %611 : vector<8x128xf32>
    %613 = arith.addf %609, %612 : vector<8x128xf32>
    %c8_184 = arith.constant 8 : index
    %614 = memref.load %arg1[%c8_184] : memref<16xf32, #tpu.memory_space<smem>>
    %615 = vector.broadcast %614 : f32 to vector<8x128xf32>
    %616 = arith.mulf %604, %615 : vector<8x128xf32>
    %617 = arith.addf %613, %616 : vector<8x128xf32>
    %c12_185 = arith.constant 12 : index
    %618 = memref.load %arg1[%c12_185] : memref<16xf32, #tpu.memory_space<smem>>
    %619 = vector.broadcast %618 : f32 to vector<8x128xf32>
    %620 = arith.mulf %606, %619 : vector<8x128xf32>
    %621 = arith.addf %617, %620 : vector<8x128xf32>
    %c1_186 = arith.constant 1 : index
    %c0_187 = arith.constant 0 : index
    %c0_188 = arith.constant 0 : index
    %c0_189 = arith.constant 0 : index
    %622 = vector.load %arg7[%c1_186, %c0_187, %c0_188, %c0_189] : memref<2x4x8x128xf32, #tpu.memory_space<vmem>>, vector<1x1x8x128xf32>
    %623 = vector.shape_cast %622 : vector<1x1x8x128xf32> to vector<8x128xf32>
    %624 = vector.shape_cast %621 : vector<8x128xf32> to vector<1x1x8x128xf32>
    tpu.vector_store %arg7[%c1_186, %c0_187, %c0_188, %c0_189], %624 {strides = array<i32>} : memref<2x4x8x128xf32, #tpu.memory_space<vmem>>, vector<1x1x8x128xf32>,
    %625 = arith.mulf %621, %621 : vector<8x128xf32>
    %c1_190 = arith.constant 1 : index
    %626 = memref.load %arg1[%c1_190] : memref<16xf32, #tpu.memory_space<smem>>
    %627 = vector.broadcast %626 : f32 to vector<8x128xf32>
    %628 = arith.mulf %600, %627 : vector<8x128xf32>
    %c5_191 = arith.constant 5 : index
    %629 = memref.load %arg1[%c5_191] : memref<16xf32, #tpu.memory_space<smem>>
    %630 = vector.broadcast %629 : f32 to vector<8x128xf32>
    %631 = arith.mulf %602, %630 : vector<8x128xf32>
    %632 = arith.addf %628, %631 : vector<8x128xf32>
    %c9_192 = arith.constant 9 : index
    %633 = memref.load %arg1[%c9_192] : memref<16xf32, #tpu.memory_space<smem>>
    %634 = vector.broadcast %633 : f32 to vector<8x128xf32>
    %635 = arith.mulf %604, %634 : vector<8x128xf32>
    %636 = arith.addf %632, %635 : vector<8x128xf32>
    %c13_193 = arith.constant 13 : index
    %637 = memref.load %arg1[%c13_193] : memref<16xf32, #tpu.memory_space<smem>>
    %638 = vector.broadcast %637 : f32 to vector<8x128xf32>
    %639 = arith.mulf %606, %638 : vector<8x128xf32>
    %640 = arith.addf %636, %639 : vector<8x128xf32>
    %c1_194 = arith.constant 1 : index
    %c1_195 = arith.constant 1 : index
    %c0_196 = arith.constant 0 : index
    %c0_197 = arith.constant 0 : index
    %641 = vector.load %arg7[%c1_194, %c1_195, %c0_196, %c0_197] : memref<2x4x8x128xf32, #tpu.memory_space<vmem>>, vector<1x1x8x128xf32>
    %642 = vector.shape_cast %641 : vector<1x1x8x128xf32> to vector<8x128xf32>
    %643 = vector.shape_cast %640 : vector<8x128xf32> to vector<1x1x8x128xf32>
    tpu.vector_store %arg7[%c1_194, %c1_195, %c0_196, %c0_197], %643 {strides = array<i32>} : memref<2x4x8x128xf32, #tpu.memory_space<vmem>>, vector<1x1x8x128xf32>,
    %644 = arith.mulf %640, %640 : vector<8x128xf32>
    %645 = arith.addf %625, %644 : vector<8x128xf32>
    %c2_198 = arith.constant 2 : index
    %646 = memref.load %arg1[%c2_198] : memref<16xf32, #tpu.memory_space<smem>>
    %647 = vector.broadcast %646 : f32 to vector<8x128xf32>
    %648 = arith.mulf %600, %647 : vector<8x128xf32>
    %c6_199 = arith.constant 6 : index
    %649 = memref.load %arg1[%c6_199] : memref<16xf32, #tpu.memory_space<smem>>
    %650 = vector.broadcast %649 : f32 to vector<8x128xf32>
    %651 = arith.mulf %602, %650 : vector<8x128xf32>
    %652 = arith.addf %648, %651 : vector<8x128xf32>
    %c10_200 = arith.constant 10 : index
    %653 = memref.load %arg1[%c10_200] : memref<16xf32, #tpu.memory_space<smem>>
    %654 = vector.broadcast %653 : f32 to vector<8x128xf32>
    %655 = arith.mulf %604, %654 : vector<8x128xf32>
    %656 = arith.addf %652, %655 : vector<8x128xf32>
    %c14_201 = arith.constant 14 : index
    %657 = memref.load %arg1[%c14_201] : memref<16xf32, #tpu.memory_space<smem>>
    %658 = vector.broadcast %657 : f32 to vector<8x128xf32>
    %659 = arith.mulf %606, %658 : vector<8x128xf32>
    %660 = arith.addf %656, %659 : vector<8x128xf32>
    %c1_202 = arith.constant 1 : index
    %c2_203 = arith.constant 2 : index
    %c0_204 = arith.constant 0 : index
    %c0_205 = arith.constant 0 : index
    %661 = vector.load %arg7[%c1_202, %c2_203, %c0_204, %c0_205] : memref<2x4x8x128xf32, #tpu.memory_space<vmem>>, vector<1x1x8x128xf32>
    %662 = vector.shape_cast %661 : vector<1x1x8x128xf32> to vector<8x128xf32>
    %663 = vector.shape_cast %660 : vector<8x128xf32> to vector<1x1x8x128xf32>
    tpu.vector_store %arg7[%c1_202, %c2_203, %c0_204, %c0_205], %663 {strides = array<i32>} : memref<2x4x8x128xf32, #tpu.memory_space<vmem>>, vector<1x1x8x128xf32>,
    %664 = arith.mulf %660, %660 : vector<8x128xf32>
    %665 = arith.addf %645, %664 : vector<8x128xf32>
    %c3_206 = arith.constant 3 : index
    %666 = memref.load %arg1[%c3_206] : memref<16xf32, #tpu.memory_space<smem>>
    %667 = vector.broadcast %666 : f32 to vector<8x128xf32>
    %668 = arith.mulf %600, %667 : vector<8x128xf32>
    %c7_207 = arith.constant 7 : index
    %669 = memref.load %arg1[%c7_207] : memref<16xf32, #tpu.memory_space<smem>>
    %670 = vector.broadcast %669 : f32 to vector<8x128xf32>
    %671 = arith.mulf %602, %670 : vector<8x128xf32>
    %672 = arith.addf %668, %671 : vector<8x128xf32>
    %c11_208 = arith.constant 11 : index
    %673 = memref.load %arg1[%c11_208] : memref<16xf32, #tpu.memory_space<smem>>
    %674 = vector.broadcast %673 : f32 to vector<8x128xf32>
    %675 = arith.mulf %604, %674 : vector<8x128xf32>
    %676 = arith.addf %672, %675 : vector<8x128xf32>
    %c15_209 = arith.constant 15 : index
    %677 = memref.load %arg1[%c15_209] : memref<16xf32, #tpu.memory_space<smem>>
    %678 = vector.broadcast %677 : f32 to vector<8x128xf32>
    %679 = arith.mulf %606, %678 : vector<8x128xf32>
    %680 = arith.addf %676, %679 : vector<8x128xf32>
    %c1_210 = arith.constant 1 : index
    %c3_211 = arith.constant 3 : index
    %c0_212 = arith.constant 0 : index
    %c0_213 = arith.constant 0 : index
    %681 = vector.load %arg7[%c1_210, %c3_211, %c0_212, %c0_213] : memref<2x4x8x128xf32, #tpu.memory_space<vmem>>, vector<1x1x8x128xf32>
    %682 = vector.shape_cast %681 : vector<1x1x8x128xf32> to vector<8x128xf32>
    %683 = vector.shape_cast %680 : vector<8x128xf32> to vector<1x1x8x128xf32>
    tpu.vector_store %arg7[%c1_210, %c3_211, %c0_212, %c0_213], %683 {strides = array<i32>} : memref<2x4x8x128xf32, #tpu.memory_space<vmem>>, vector<1x1x8x128xf32>,
    %684 = arith.mulf %680, %680 : vector<8x128xf32>
    %685 = arith.addf %665, %684 : vector<8x128xf32>
    %686 = vector.shape_cast %685 : vector<8x128xf32> to vector<1x8x128xf32>
    %cst_214 = arith.constant dense<0.000000e+00> : vector<1xf32>
    %687 = vector.multi_reduction <add>, %686, %cst_214 [1, 2] : vector<1x8x128xf32> to vector<1xf32>
    %688 = vector.shape_cast %687 : vector<1xf32> to vector<1x1x1xf32>
    %689 = vector.extract %688[0, 0, 0] : f32 from vector<1x1x1xf32>
    %690 = vector.broadcast %344 : f32 to vector<1x128xf32>
    %691 = vector.broadcast %689 : f32 to vector<1x128xf32>
    %692 = tpu.concatenate %690, %691 in 0 : vector<1x128xf32>, vector<1x128xf32> -> vector<2x128xf32>
    %c0_215 = arith.constant 0 : index
    %c0_216 = arith.constant 0 : index
    %c0_217 = arith.constant 0 : index
    %693 = vector.load %arg8[%c0_215, %c0_216, %c0_217] : memref<1x2x128xf32, #tpu.memory_space<vmem>>, vector<1x2x128xf32>
    %694 = vector.shape_cast %693 : vector<1x2x128xf32> to vector<2x128xf32>
    %695 = vector.shape_cast %692 : vector<2x128xf32> to vector<1x2x128xf32>
    tpu.vector_store %arg8[%c0_215, %c0_216, %c0_217], %695 {strides = array<i32>} : memref<1x2x128xf32, #tpu.memory_space<vmem>>, vector<1x2x128xf32>,
    return
  }
  func.func @transform_0(%arg0: i32) -> i32 {
    %c0_i32 = arith.constant 0 : i32
    %c0_i32_0 = arith.constant 0 : i32
    return %c0_i32 : i32
  }
  func.func @transform_1(%arg0: i32) -> i32 {
    %c0_i32 = arith.constant 0 : i32
    %c0_i32_0 = arith.constant 0 : i32
    return %c0_i32 : i32
  }
  func.func @transform_2(%arg0: i32) -> i32 {
    %c0_i32 = arith.constant 0 : i32
    %c0_i32_0 = arith.constant 0 : i32
    return %c0_i32 : i32
  }
  func.func @transform_3(%arg0: i32) -> i32 {
    %c0_i32 = arith.constant 0 : i32
    %c0_i32_0 = arith.constant 0 : i32
    return %c0_i32 : i32
  }
  func.func @transform_4(%arg0: i32) -> (i32, i32, i32, i32) {
    %c0_i32 = arith.constant 0 : i32
    %c0_i32_0 = arith.constant 0 : i32
    %c0_i32_1 = arith.constant 0 : i32
    %c0_i32_2 = arith.constant 0 : i32
    return %c0_i32, %c0_i32_0, %c0_i32_1, %arg0 : i32, i32, i32, i32
  }
  func.func @transform_5(%arg0: i32) -> (i32, i32, i32, i32) {
    %c0_i32 = arith.constant 0 : i32
    %c0_i32_0 = arith.constant 0 : i32
    %c0_i32_1 = arith.constant 0 : i32
    %c0_i32_2 = arith.constant 0 : i32
    return %c0_i32, %c0_i32_0, %c0_i32_1, %arg0 : i32, i32, i32, i32
  }
  func.func @transform_6(%arg0: i32) -> (i32, i32, i32, i32) {
    %c0_i32 = arith.constant 0 : i32
    %c0_i32_0 = arith.constant 0 : i32
    %c0_i32_1 = arith.constant 0 : i32
    %c0_i32_2 = arith.constant 0 : i32
    return %c0_i32, %c0_i32_0, %c0_i32_1, %arg0 : i32, i32, i32, i32
  }
  func.func @transform_7(%arg0: i32) -> (i32, i32, i32) {
    %c0_i32 = arith.constant 0 : i32
    %c0_i32_0 = arith.constant 0 : i32
    %c0_i32_1 = arith.constant 0 : i32
    return %arg0, %c0_i32, %c0_i32_0 : i32, i32, i32
  }
}

</mosaic_0001>

<bundles_post_ra>
// kernel: vat2d_loss.4
= control target key start
LH: loop header
LB: loop body
LE: loop exit
PB: predicated region body
PF: predicated region fallthrough
CT: control target
= control target key end

     0   :  { %vm57_vm0 = vcmask 1040384   ;;  %s112_s0 = inlined_call_operand.vmem [shape: f32[2,4,8,128], index: 0, kind: input, shape index: {}]   ;;  %s113_s1 = inlined_call_operand.vmem [shape: f32[1,2,128], index: 1, kind: output, shape index: {}]  }
   0x1   :  { %v8_v0 = vld [vmem:[%s112_s0] sm:$0xff]  ;;  %v64_v1 = vld [vmem:[%s112_s0 + $0x8] sm:$0xff]  ;;  %v65_v2 = vld [vmem:[%s112_s0 + $0x10] sm:$0xff] }
   0x2   :  { %v9_v3 = vmul.f32 %v8_v0, %v8_v0  ;;  %v12_v4 = vmul.f32 %v64_v1, %v64_v1  ;;  %v16_v5 = vmul.f32 %v65_v2, %v65_v2  ;;  %v66_v6 = vld [vmem:[%s112_s0 + $0x18] sm:$0xff]  ;;  %v67_v7 = vld [vmem:[%s112_s0 + $0x20] sm:$0xff]  ;;  %v68_v8 = vld [vmem:[%s112_s0 + $0x28] sm:$0xff] }
   0x3   :  { %v33_v9 = vmul.f32 %v67_v7, %v67_v7  ;;  %v36_v10 = vmul.f32 %v68_v8, %v68_v8  ;;  %v69_v11 = vld [vmem:[%s112_s0 + $0x30] sm:$0xff]  ;;  %v70_v12 = vld [vmem:[%s112_s0 + $0x38] sm:$0xff]  ;;  %v20_v14 = vmul.f32 %v66_v6, %v66_v6 }
   0x4   :  { %v13_v13 = vadd.f32 %v12_v4, %v9_v3  ;;  %v40_v15 = vmul.f32 %v69_v11, %v69_v11  ;;  %v44_v18 = vmul.f32 %v70_v12, %v70_v12 }
   0x5   :  { %v37_v16 = vadd.f32 %v36_v10, %v33_v9 }
   0x6   :  { %v17_v17 = vadd.f32 %v16_v5, %v13_v13 }
   0x7   :  { %v41_v19 = vadd.f32 %v40_v15, %v37_v16 }
   0x8   :  { %v21_v20 = vadd.f32 %v20_v14, %v17_v17 }
   0x9   :  { %v45_v21 = vadd.f32 %v44_v18, %v41_v19 }
   0xa   :  { %22 = vadd.xlane.f32.xlu0 %v21_v20 }
   0xe   :  { %46 = vadd.xlane.f32.xlu0 %v45_v21 }
  0x97   :  { %v23_v22 = vpop.xlane.xlu0 %22 }
  0x98   :  { %v24_v23 = vrot.slane %v23_v22, 4 }
  0x9a   :  { %v25_v24 = vadd.f32 %v24_v23, %v23_v22 }
  0x9b   :  { %v47_v25 = vpop.xlane.xlu0 %46 }
  0x9c   :  { %v26_v26 = vrot.slane %v25_v24, 2  ;;  %v48_v27 = vrot.slane %v47_v25, 4 }
  0x9e   :  { %v49_v28 = vadd.f32 %v48_v27, %v47_v25  ;;  %v27_v29 = vadd.f32 %v26_v26, %v25_v24 }
  0xa0   :  { %v50_v30 = vrot.slane %v49_v28, 2  ;;  %v28_v31 = vrot.slane %v27_v29, 1 }
  0xa2   :  { %v51_v32 = vadd.f32 %v50_v30, %v49_v28  ;;  %v29_v33 = vadd.f32 %v28_v31, %v27_v29 }
  0xa4   :  { %71 = vpush %v29_v33  ;;  %v52_v34 = vrot.slane %v51_v32, 1 }
  0xa6   :  { %v53_v35 = vadd.f32 %v52_v34, %v51_v32 }
  0xa8   :  { %73 = vpush %v53_v35 }
  0xd5   :  { %s72_s0 = spop %71 }
  0xd6   :  { %v55_v36 = vstv %s72_s0 }
  0xd9   :  { %s74_s22 = spop %73 }
  0xda   :  { %v56_v37 = vstv %s74_s22 }
  0xdb   :  { %v58_v38 = vsel %vm57_vm0, %v55_v36, %v56_v37 }
  0xdc   :  { %59 = vst [vmem:[%s113_s1] sm:$0x3] %v58_v38 }

// kernel: vat2d_loss.5
= control target key start
LH: loop header
LB: loop body
LE: loop exit
PB: predicated region body
PF: predicated region fallthrough
CT: control target
= control target key end

     0   :  { %10 = vsyncpa [#allocation3], 0  ;;  %s1063_s0 = inlined_call_operand.vmem [shape: f32[16], index: 0, kind: input, shape index: {}]   ;;  %s1064_s1 = inlined_call_operand.vmem [shape: f32[4], index: 1, kind: input, shape index: {}]   ;;  %s1065_s2 = inlined_call_operand.vmem [shape: f32[2], index: 2, kind: input, shape index: {}]   ;;  %s1066_s3 = inlined_call_operand.vmem [shape: f32[2,4,8,128], index: 3, kind: input, shape index: {}]   ;;  %s1067_s4 = inlined_call_operand.vmem [shape: f32[2,4,8,128], index: 4, kind: input, shape index: {}]   ;;  %s1068_s5 = inlined_call_operand.vmem [shape: f32[1,12,128], index: 5, kind: output, shape index: {}]  }
   0x1   :  { %11 = vsyncpa [#allocation5], 0  ;;  %s28_s20 = sshll.u32 %s1064_s1, 4  ;;  %s18_s23 = sshll.u32 %s1063_s0, 4  ;;  %s29_s20 = int_to_ptr.vmem [resolvable:$true] %s28_s20  ;;  %s19_s23 = int_to_ptr.vmem [resolvable:$true] %s18_s23 }
   0x2   :  { %s659_s24 = scalar_lea.vmem %s29_s20, 16  ;;  %p664_p1 = scmp.lt.s32.totalorder %s29_s20, %s29_s20 }
   0x3   :  { %p660_p0 = scmp.ne.s32.totalorder %s29_s20, %s659_s24  ;;  %p665_p2 = scmp.lt.s32.totalorder %s659_s24, %s659_s24 }
   0x5   :  { %p666_p3 = por %p665_p2, %p664_p1 }
   0x7   :  { %p667_p4 = pnand %p666_p3, %p660_p0 }
   0x9   :  { %670 = shalt.err (!%p667_p4)
}
   0xa   :  { %s699_s25 = smov [#allocation4]   ;;  %s671_s26 = scalar_lea.vmem %s19_s23, 16 }
   0xb   :  { %31 = dma.vmem_to_smem %s29_s20, 16, %s699_s25, [#allocation5]  }
   0xc   :  { %p672_p5 = scmp.ne.s32.totalorder %s19_s23, %s671_s26  ;;  %p676_p6 = scmp.lt.s32.totalorder %s19_s23, %s19_s23 }
   0xd   :  { %p677_p7 = scmp.lt.s32.totalorder %s671_s26, %s671_s26 }
   0xf   :  { %p678_p8 = por %p677_p7, %p676_p6 }
  0x11   :  { %p679_p9 = pnand %p678_p8, %p672_p5 }
  0x13   :  { %682 = shalt.err (!%p679_p9)
}
  0x14   :  { %s700_s1 = smov [#allocation2]   ;;  %s38_s28 = sshll.u32 %s1065_s2, 4  ;;  %s39_s28 = int_to_ptr.vmem [resolvable:$true] %s38_s28 }
  0x15   :  { %21 = dma.vmem_to_smem %s19_s23, 16, %s700_s1, [#allocation3]  }
  0x16   :  { %s683_s29 = scalar_lea.vmem %s39_s28, 16  ;;  %p688_p11 = scmp.lt.s32.totalorder %s39_s28, %s39_s28 }
  0x17   :  { %p684_p10 = scmp.ne.s32.totalorder %s39_s28, %s683_s29  ;;  %p689_p12 = scmp.lt.s32.totalorder %s683_s29, %s683_s29 }
  0x19   :  { %p690_p13 = por %p689_p12, %p688_p11 }
  0x1b   :  { %p691_p0 = pnand %p690_p13, %p684_p10 }
  0x1d   :  { %694 = shalt.err (!%p691_p0)
}
  0x1e   :  { %s701_s30 = smov [#allocation6]  }
  0x1f   :  { %41 = dma.vmem_to_smem %s39_s28, 16, %s701_s30, [#allocation5]  }
  0x20   :  { %695 = dma.done.wait [#allocation3], 16  }
  0x21   :  { %696 = vsyncadd [#allocation3], 4294967280 }
  0x22   :  { %697 = dma.done.wait [#allocation5], 32  }
  0x23   :  { %698 = vsyncadd [#allocation5], 4294967264 }
  0x24   :  { %55 = sfence }
  0x25   :  { %s80_s6 = sld [smem:[#allocation2]]  ;;  %s565_s7 = sld [smem:[#allocation2 + $0x1]]  ;;  %v744_v0 = vld [vmem:[%s1066_s3] sm:$0xff]  ;;  %v758_v2 = vld [vmem:[%s1066_s3 + $0x8] sm:$0xff]  ;;  %v763_v3 = vld [vmem:[%s1066_s3 + $0x10] sm:$0xff]  ;;  %vm534_vm0 = vcmask 1040384  }
  0x26   :  { %s566_s8 = sld [smem:[#allocation2 + $0x2]]  ;;  %s567_s9 = sld [smem:[#allocation2 + $0x3]]  ;;  %v753_v1 = vld [vmem:[%s1066_s3 + $0x20] sm:$0xff]  ;;  %v772_v4 = vld [vmem:[%s1066_s3 + $0x18] sm:$0xff]  ;;  %v783_v6 = vld [vmem:[%s1066_s3 + $0x28] sm:$0xff]  ;;  %vm536_vm1 = vcmask 1041408  }
  0x27   :  { %s95_s2 = sld [smem:[#allocation4]]  ;;  %s568_s10 = sld [smem:[#allocation2 + $0x4]]  ;;  %v871_v47 = vld [vmem:[%s1066_s3 + $0x30] sm:$0xff]  ;;  %v876_v48 = vld [vmem:[%s1066_s3 + $0x38] sm:$0xff]  ;;  %vm538_vm2 = vcmask 1042432   ;;  %vm540_vm3 = vcmask 1043456  }
  0x28   :  { %s569_s11 = sld [smem:[#allocation2 + $0x5]]  ;;  %s746_s14 = sld [smem:[#allocation2 + $0x6]]  ;;  %vm542_vm4 = vcmask 1044480   ;;  %vm544_vm5 = vcmask 1045504   ;;  %vm546_vm6 = vcmask 1046528  }
  0x29   :  { %s748_s15 = sld [smem:[#allocation2 + $0x7]]  ;;  %s765_s22 = sld [smem:[#allocation4 + $0x1]] }
  0x2a   :  { %s767_s23 = sld [smem:[#allocation2 + $0x8]]  ;;  %s776_s26 = sld [smem:[#allocation2 + $0x9]] }
  0x2b   :  { %v774_v5 = vstv %s80_s6  ;;  %s778_s1 = sld [smem:[#allocation2 + $0xa]]  ;;  %v787_v8 = vstv %s565_s7  ;;  %s791_s28 = sld [smem:[#allocation2 + $0xb]] }
  0x2c   :  { %v82_v7 = vmul.f32 %v774_v5, %v744_v0  ;;  %v789_v9 = vstv %s566_s8  ;;  %s793_s29 = sld [smem:[#allocation4 + $0x2]]  ;;  %v274_v10 = vmul.f32 %v753_v1, %v774_v5  ;;  %v85_v11 = vmul.f32 %v758_v2, %v787_v8  ;;  %s578_s30 = sld [smem:[#allocation2 + $0xc]] }
  0x2d   :  { %v89_v12 = vmul.f32 %v763_v3, %v789_v9  ;;  %v801_v13 = vstv %s567_s9  ;;  %v803_v14 = vstv %s95_s2  ;;  %s579_s6 = sld [smem:[#allocation2 + $0xd]]  ;;  %v807_v16 = vstv %s568_s10  ;;  %s580_s7 = sld [smem:[#allocation2 + $0xe]] }
  0x2e   :  { %v93_v15 = vmul.f32 %v772_v4, %v801_v13  ;;  %v809_v17 = vstv %s569_s11  ;;  %s811_s8 = sld [smem:[#allocation2 + $0xf]]  ;;  %v275_v18 = vmul.f32 %v783_v6, %v787_v8  ;;  %v86_v19 = vadd.f32 %v85_v11, %v82_v7  ;;  %s822_s9 = sld [smem:[#allocation4 + $0x3]] }
  0x2f   :  { %v100_v20 = vmul.f32 %v807_v16, %v744_v0  ;;  %v103_v21 = vmul.f32 %v758_v2, %v809_v17  ;;  %v820_v22 = vstv %s746_s14  ;;  %v827_v24 = vstv %s748_s15  ;;  %s891_s13 = sld [smem:[#allocation6]]  ;;  %s952_s21 = sld [smem:[#allocation6 + $0x1]] }
  0x30   :  { %v107_v23 = vmul.f32 %v763_v3, %v820_v22  ;;  %v830_v25 = vstv %s765_s22  ;;  %v833_v26 = vstv %s767_s23  ;;  %v90_v27 = vadd.f32 %v89_v12, %v86_v19 }
  0x31   :  { %v104_v28 = vadd.f32 %v103_v21, %v100_v20  ;;  %v111_v29 = vmul.f32 %v772_v4, %v827_v24  ;;  %v118_v30 = vmul.f32 %v833_v26, %v744_v0  ;;  %v840_v31 = vstv %s776_s26 }
  0x32   :  { %v843_v32 = vstv %s778_s1  ;;  %v846_v33 = vstv %s791_s28  ;;  %v849_v34 = vstv %s793_s29  ;;  %v94_v35 = vadd.f32 %v93_v15, %v90_v27 }
  0x33   :  { %v108_v36 = vadd.f32 %v107_v23, %v104_v28  ;;  %v121_v37 = vmul.f32 %v758_v2, %v840_v31  ;;  %v125_v38 = vmul.f32 %v763_v3, %v843_v32  ;;  %v129_v39 = vmul.f32 %v772_v4, %v846_v33 }
  0x34   :  { %v857_v40 = vstv %s578_s30  ;;  %v859_v41 = vstv %s579_s6  ;;  %v861_v42 = vstv %s580_s7  ;;  %v864_v43 = vadd.f32 %v803_v14, %v94_v35 }
  0x35   :  { %v112_v44 = vadd.f32 %v111_v29, %v108_v36  ;;  %v122_v45 = vadd.f32 %v121_v37, %v118_v30  ;;  %v136_v46 = vmul.f32 %v857_v40, %v744_v0  ;;  %v139_v49 = vmul.f32 %v758_v2, %v859_v41 }
  0x36   :  { %v143_v50 = vmul.f32 %v763_v3, %v861_v42  ;;  %v883_v51 = vstv %s811_s8  ;;  %v886_v52 = vstv %s822_s9  ;;  %v276_v56 = vadd.f32 %v275_v18, %v274_v10 }
  0x37   :  { %v115_v53 = vadd.f32 %v830_v25, %v112_v44  ;;  %v126_v54 = vadd.f32 %v125_v38, %v122_v45  ;;  %v147_v55 = vmul.f32 %v772_v4, %v883_v51  ;;  %v140_v57 = vadd.f32 %v139_v49, %v136_v46  ;;  %v64_v38 = vld [vmem:[%s1067_s4] sm:$0xff]  ;;  %v563_v44 = vld [vmem:[%s1067_s4 + $0x10] sm:$0xff] }
  0x38   :  { %v277_v58 = vmul.f32 %v871_v47, %v789_v9  ;;  %v279_v59 = vmul.f32 %v876_v48, %v801_v13  ;;  %v282_v60 = vmul.f32 %v753_v1, %v807_v16  ;;  %v283_v63 = vmul.f32 %v783_v6, %v809_v17 }
  0x39   :  { %v130_v61 = vadd.f32 %v129_v39, %v126_v54  ;;  %v152_v62 = vmax.f32 %v864_v43, %v115_v53  ;;  %v285_v7 = vmul.f32 %v871_v47, %v820_v22  ;;  %v144_v10 = vadd.f32 %v143_v50, %v140_v57  ;;  %v562_v39 = vld [vmem:[%s1067_s4 + $0x8] sm:$0xff]  ;;  %v564_v54 = vld [vmem:[%s1067_s4 + $0x18] sm:$0xff] }
  0x3a   :  { %v278_v11 = vadd.f32 %v277_v58, %v276_v56  ;;  %v287_v12 = vmul.f32 %v876_v48, %v827_v24  ;;  %v290_v15 = vmul.f32 %v753_v1, %v833_v26  ;;  %v284_v19 = vadd.f32 %v283_v63, %v282_v60 }
  0x3b   :  { %v133_v18 = vadd.f32 %v849_v34, %v130_v61  ;;  %v291_v20 = vmul.f32 %v783_v6, %v840_v31  ;;  %v293_v21 = vmul.f32 %v871_v47, %v843_v32  ;;  %v148_v23 = vadd.f32 %v147_v55, %v144_v10 }
  0x3c   :  { %v280_v27 = vadd.f32 %v279_v59, %v278_v11  ;;  %v295_v28 = vmul.f32 %v876_v48, %v846_v33  ;;  %v298_v29 = vmul.f32 %v753_v1, %v857_v40  ;;  %v286_v35 = vadd.f32 %v285_v7, %v284_v19 }
  0x3d   :  { %v153_v30 = vmax.f32 %v152_v62, %v133_v18  ;;  %v292_v36 = vadd.f32 %v291_v20, %v290_v15  ;;  %v299_v37 = vmul.f32 %v783_v6, %v859_v41  ;;  %v151_v45 = vadd.f32 %v886_v52, %v148_v23 }
  0x3e   :  { %v281_v46 = vadd.f32 %v280_v27, %v803_v14  ;;  %v301_v49 = vmul.f32 %v871_v47, %v861_v42  ;;  %v303_v50 = vmul.f32 %v876_v48, %v883_v51  ;;  %v288_v55 = vadd.f32 %v287_v12, %v286_v35 }
  0x3f   :  { %v294_v56 = vadd.f32 %v293_v21, %v292_v36  ;;  %v300_v57 = vadd.f32 %v299_v37, %v298_v29  ;;  %v65_v58 = vstv %s891_s13  ;;  %v154_v59 = vmax.f32 %v153_v30, %v151_v45 }
  0x40   :  { %v66_v60 = vmul.f32 %v65_v58, %v64_v38  ;;  %v70_v61 = vmul.f32 %v562_v39, %v65_v58  ;;  %v74_v62 = vmul.f32 %v563_v44, %v65_v58  ;;  %v289_v63 = vadd.f32 %v288_v55, %v830_v25 }
  0x41   :  { %v296_v7 = vadd.f32 %v295_v28, %v294_v56  ;;  %v302_v10 = vadd.f32 %v301_v49, %v300_v57  ;;  %v78_v11 = vmul.f32 %v564_v54, %v65_v58  ;;  %v155_v15 = vsub.f32 %v864_v43, %v154_v59 }
  0x42   :  { %v158_v19 = vsub.f32 %v115_v53, %v154_v59  ;;  %v161_v20 = vsub.f32 %v133_v18, %v154_v59  ;;  %v164_v23 = vsub.f32 %v151_v45, %v154_v59  ;;  %v306_v21 = vmax.f32 %v281_v46, %v289_v63 }
  0x43   :  { %v297_v27 = vadd.f32 %v296_v7, %v849_v34  ;;  %v304_v12 = vadd.f32 %v303_v50, %v302_v10  ;;  %v67_v29 = vadd.f32 %v66_v60, %v744_v0  ;;  %v156_v30 = vmul.f32 1.442695, %v155_v15 }
  0x44   :  { %v159_v35 = vmul.f32 1.442695, %v158_v19  ;;  %v162_v36 = vmul.f32 1.442695, %v161_v20  ;;  %v71_v37 = vadd.f32 %v758_v2, %v70_v61  ;;  %v165_v38 = vmul.f32 1.442695, %v164_v23 }
  0x45   :  { %v305_v28 = vadd.f32 %v304_v12, %v886_v52  ;;  %v307_v39 = vmax.f32 %v306_v21, %v297_v27  ;;  %v75_v43 = vadd.f32 %v763_v3, %v74_v62  ;;  %619 = vpow2.f32 %v156_v30  ;;  %v588_v21 = vld [vmem:[%s1067_s4 + $0x20] sm:$0xff]  ;;  %v589_v30 = vld [vmem:[%s1067_s4 + $0x28] sm:$0xff] }
  0x46   :  { %v79_v53 = vadd.f32 %v772_v4, %v78_v11  ;;  %v178_v18 = vmul.f32 %v774_v5, %v67_v29  ;;  %v179_v44 = vmul.f32 %v787_v8, %v71_v37  ;;  %621 = vpow2.f32 %v159_v35 }
  0x47   :  { %v308_v0 = vmax.f32 %v307_v39, %v305_v28  ;;  %v181_v45 = vmul.f32 %v789_v9, %v75_v43  ;;  %v186_v49 = vmul.f32 %v807_v16, %v67_v29  ;;  %623 = vpow2.f32 %v162_v36 }
  0x48   :  { %v180_v2 = vadd.f32 %v179_v44, %v178_v18  ;;  %v183_v50 = vmul.f32 %v801_v13, %v79_v53  ;;  %v187_v54 = vmul.f32 %v809_v17, %v71_v37  ;;  %625 = vpow2.f32 %v165_v38 }
  0x49   :  { %v309_v3 = vsub.f32 %v281_v46, %v308_v0  ;;  %v312_v4 = vsub.f32 %v289_v63, %v308_v0  ;;  %v315_v55 = vsub.f32 %v297_v27, %v308_v0  ;;  %v318_v56 = vsub.f32 %v305_v28, %v308_v0  ;;  %v590_v28 = vld [vmem:[%s1067_s4 + $0x30] sm:$0xff] }
  0x4a   :  { %v182_v57 = vadd.f32 %v181_v45, %v180_v2  ;;  %v188_v58 = vadd.f32 %v187_v54, %v186_v49  ;;  %v189_v59 = vmul.f32 %v820_v22, %v75_v43  ;;  %v191_v7 = vmul.f32 %v827_v24, %v79_v53 }
  0x4b   :  { %v310_v60 = vmul.f32 1.442695, %v309_v3  ;;  %v313_v61 = vmul.f32 1.442695, %v312_v4  ;;  %v316_v62 = vmul.f32 1.442695, %v315_v55  ;;  %v194_v19 = vmul.f32 %v833_v26, %v67_v29 }
  0x4c   :  { %v319_v10 = vmul.f32 1.442695, %v318_v56  ;;  %v184_v11 = vadd.f32 %v183_v50, %v182_v57  ;;  %v190_v15 = vadd.f32 %v189_v59, %v188_v58  ;;  %v195_v46 = vmul.f32 %v840_v31, %v71_v37 }
  0x4d   :  { %627 = vpow2.f32 %v310_v60  ;;  %v197_v63 = vmul.f32 %v843_v32, %v75_v43  ;;  %v199_v20 = vmul.f32 %v846_v33, %v79_v53  ;;  %v202_v12 = vmul.f32 %v857_v40, %v67_v29  ;;  %v591_v29 = vld [vmem:[%s1067_s4 + $0x38] sm:$0xff] }
  0x4e   :  { %629 = vpow2.f32 %v313_v61  ;;  %v961_v23 = vadd.f32 %v184_v11, %v803_v14  ;;  %v192_v27 = vadd.f32 %v191_v7, %v190_v15  ;;  %v196_v35 = vadd.f32 %v195_v46, %v194_v19 }
  0x4f   :  { %631 = vpow2.f32 %v316_v62  ;;  %v203_v36 = vmul.f32 %v859_v41, %v71_v37  ;;  %v205_v38 = vmul.f32 %v861_v42, %v75_v43  ;;  %v978_v39 = vpop.eup %619  ;;  %v207_v44 = vmul.f32 %v883_v51, %v79_v53 }
  0x50   :  { %633 = vpow2.f32 %v319_v10  ;;  %v193_v18 = vadd.f32 %v192_v27, %v830_v25  ;;  %v259_v0 = vstv %s952_s21  ;;  %v983_v45 = vpop.eup %621  ;;  %v198_v37 = vadd.f32 %v197_v63, %v196_v35 }
  0x51   :  { %v204_v43 = vadd.f32 %v203_v36, %v202_v12  ;;  %v260_v49 = vmul.f32 %v588_v21, %v259_v0  ;;  %v264_v2 = vmul.f32 %v589_v30, %v259_v0  ;;  %v985_v50 = vpop.eup %623  ;;  %v167_v54 = vadd.f32 %v983_v45, %v978_v39 }
  0x52   :  { %v210_v3 = vmax.f32 %v961_v23, %v193_v18  ;;  %v268_v4 = vmul.f32 %v590_v28, %v259_v0  ;;  %v272_v55 = vmul.f32 %v591_v29, %v259_v0  ;;  %v990_v56 = vpop.eup %625  ;;  %v200_v57 = vadd.f32 %v199_v20, %v198_v37 }
  0x53   :  { %v206_v53 = vadd.f32 %v205_v38, %v204_v43  ;;  %v261_v58 = vadd.f32 %v753_v1, %v260_v49  ;;  %v265_v59 = vadd.f32 %v783_v6, %v264_v2  ;;  %v168_v60 = vadd.f32 %v985_v50, %v167_v54 }
  0x54   :  { %v269_v61 = vadd.f32 %v871_v47, %v268_v4  ;;  %v273_v62 = vadd.f32 %v876_v48, %v272_v55  ;;  %v201_v7 = vadd.f32 %v200_v57, %v849_v34 }
  0x55   :  { %v208_v10 = vadd.f32 %v207_v44, %v206_v53  ;;  %v332_v11 = vmul.f32 %v261_v58, %v774_v5  ;;  %v333_v15 = vmul.f32 %v265_v59, %v787_v8  ;;  %v169_v19 = vadd.f32 %v990_v56, %v168_v60 }
  0x56   :  { %v335_v46 = vmul.f32 %v269_v61, %v789_v9  ;;  %v340_v1 = vmul.f32 %v261_v58, %v807_v16  ;;  %v211_v47 = vmax.f32 %v210_v3, %v201_v7  ;;  %v341_v48 = vmul.f32 %v265_v59, %v809_v17 }
  0x57   :  { %v1003_v6 = vpop.eup %627  ;;  %v209_v63 = vadd.f32 %v208_v10, %v886_v52  ;;  %v334_v20 = vadd.f32 %v333_v15, %v332_v11  ;;  %635 = vrcp.f32 %v169_v19  ;;  %v337_v5 = vmul.f32 %v273_v62, %v801_v13 }
  0x58   :  { %v1007_v27 = vpop.eup %629  ;;  %v343_v8 = vmul.f32 %v269_v61, %v820_v22  ;;  %v348_v12 = vmul.f32 %v261_v58, %v833_v26  ;;  %v342_v35 = vadd.f32 %v341_v48, %v340_v1  ;;  %v345_v17 = vmul.f32 %v273_v62, %v827_v24 }
  0x59   :  { %v1012_v9 = vpop.eup %631  ;;  %v321_v16 = vadd.f32 %v1007_v27, %v1003_v6  ;;  %v212_v21 = vmax.f32 %v211_v47, %v209_v63  ;;  %v336_v30 = vadd.f32 %v335_v46, %v334_v20  ;;  %v349_v38 = vmul.f32 %v265_v59, %v840_v31 }
  0x5a   :  { %v1016_v36 = vpop.eup %633  ;;  %v351_v13 = vmul.f32 %v269_v61, %v843_v32  ;;  %v353_v22 = vmul.f32 %v273_v62, %v846_v33  ;;  %v344_v43 = vadd.f32 %v343_v8, %v342_v35  ;;  %v356_v31 = vmul.f32 %v261_v58, %v857_v40 }
  0x5b   :  { %v322_v26 = vadd.f32 %v1012_v9, %v321_v16  ;;  %v213_v28 = vsub.f32 %v961_v23, %v212_v21  ;;  %v216_v29 = vsub.f32 %v193_v18, %v212_v21  ;;  %v219_v44 = vsub.f32 %v201_v7, %v212_v21 }
  0x5c   :  { %v222_v0 = vsub.f32 %v209_v63, %v212_v21  ;;  %v338_v37 = vadd.f32 %v337_v5, %v336_v30  ;;  %v350_v49 = vadd.f32 %v349_v38, %v348_v12  ;;  %v346_v33 = vadd.f32 %v345_v17, %v344_v43 }
  0x5d   :  { %v323_v2 = vadd.f32 %v1016_v36, %v322_v26  ;;  %v214_v54 = vmul.f32 1.442695, %v213_v28  ;;  %v217_v24 = vmul.f32 1.442695, %v216_v29  ;;  %v220_v3 = vmul.f32 1.442695, %v219_v44 }
  0x5e   :  { %v339_v32 = vadd.f32 %v338_v37, %v803_v14  ;;  %v352_v4 = vadd.f32 %v351_v13, %v350_v49  ;;  %v357_v23 = vmul.f32 %v265_v59, %v859_v41  ;;  %v359_v18 = vmul.f32 %v269_v61, %v861_v42 }
  0x5f   :  { %637 = vrcp.f32 %v323_v2  ;;  %v223_v55 = vmul.f32 1.442695, %v222_v0  ;;  %v347_v57 = vadd.f32 %v346_v33, %v830_v25  ;;  %v361_v7 = vmul.f32 %v273_v62, %v883_v51 }
  0x60   :  { %639 = vpow2.f32 %v214_v54  ;;  %v354_v53 = vadd.f32 %v353_v22, %v352_v4  ;;  %v358_v60 = vadd.f32 %v357_v23, %v356_v31 }
  0x61   :  { %641 = vpow2.f32 %v217_v24  ;;  %v636_v40 = vpop.eup %635  ;;  %v364_v58 = vmax.f32 %v339_v32, %v347_v57 }
  0x62   :  { %643 = vpow2.f32 %v220_v3  ;;  %v355_v14 = vadd.f32 %v354_v53, %v849_v34  ;;  %v171_v10 = vmul.f32 %v636_v40, %v169_v19  ;;  %v360_v11 = vadd.f32 %v359_v18, %v358_v60 }
  0x63   :  { %645 = vpow2.f32 %v223_v55 }
  0x64   :  { %v172_v41 = vsub.f32 2.0, %v171_v10  ;;  %v362_v59 = vadd.f32 %v361_v7, %v360_v11  ;;  %v365_v42 = vmax.f32 %v364_v58, %v355_v14 }
  0x66   :  { %v173_v61 = vmul.f32 %v636_v40, %v172_v41  ;;  %v363_v15 = vadd.f32 %v362_v59, %v886_v52 }
  0x68   :  { %v366_v46 = vmax.f32 %v365_v42, %v363_v15  ;;  %v1034_v51 = vmul.f32 %v985_v50, %v173_v61  ;;  %v174_v34 = vmul.f32 %v978_v39, %v173_v61  ;;  %v175_v12 = vmul.f32 %v983_v45, %v173_v61 }
  0x69   :  { %v638_v25 = vpop.eup %637  ;;  %v177_v38 = vmul.f32 %v990_v56, %v173_v61 }
  0x6a   :  { %v640_v1 = vpop.eup %639  ;;  %v325_v63 = vmul.f32 %v638_v25, %v323_v2  ;;  %v367_v62 = vsub.f32 %v339_v32, %v366_v46  ;;  %v370_v5 = vsub.f32 %v347_v57, %v366_v46  ;;  %v373_v8 = vsub.f32 %v355_v14, %v366_v46 }
  0x6b   :  { %v642_v47 = vpop.eup %641  ;;  %v376_v52 = vsub.f32 %v363_v15, %v366_v46  ;;  %v244_v50 = vmul.f32 %v1034_v51, %v1034_v51  ;;  %v238_v39 = vmul.f32 %v174_v34, %v174_v34  ;;  %v247_v0 = vmul.f32 %v177_v38, %v177_v38 }
  0x6c   :  { %v644_v19 = vpop.eup %643  ;;  %v326_v20 = vsub.f32 2.0, %v325_v63  ;;  %v225_v48 = vadd.f32 %v642_v47, %v640_v1  ;;  %v368_v16 = vmul.f32 1.442695, %v367_v62  ;;  %v371_v17 = vmul.f32 1.442695, %v370_v5 }
  0x6d   :  { %v646_v21 = vpop.eup %645  ;;  %v374_v13 = vmul.f32 1.442695, %v373_v8  ;;  %v377_v28 = vmul.f32 1.442695, %v376_v52  ;;  %v241_v43 = vmul.f32 %v175_v12, %v175_v12 }
  0x6e   :  { %v327_v30 = vmul.f32 %v638_v25, %v326_v20  ;;  %v226_v35 = vadd.f32 %v644_v19, %v225_v48  ;;  %647 = vpow2.f32 %v368_v16 }
  0x6f   :  { %649 = vpow2.f32 %v371_v17 }
  0x70   :  { %v1042_v22 = vmul.f32 %v1012_v9, %v327_v30  ;;  %v328_v26 = vmul.f32 %v1003_v6, %v327_v30  ;;  %v329_v45 = vmul.f32 %v1007_v27, %v327_v30  ;;  %v227_v29 = vadd.f32 %v646_v21, %v226_v35 }
  0x71   :  { %v331_v44 = vmul.f32 %v1016_v36, %v327_v30  ;;  %651 = vpow2.f32 %v374_v13 }
  0x72   :  { %v404_v56 = vmul.f32 %v1042_v22, %v1042_v22  ;;  %v392_v37 = vmul.f32 %v328_v26, %v328_v26  ;;  %v398_v49 = vmul.f32 %v329_v45, %v329_v45  ;;  %653 = vpow2.f32 %v377_v28 }
  0x73   :  { %v410_v2 = vmul.f32 %v331_v44, %v331_v44  ;;  %655 = vrcp.f32 %v227_v29 }
  0x74   :  { %v407_v9 = vadd.f32 %v404_v56, %v244_v50  ;;  %v395_v54 = vadd.f32 %v392_v37, %v238_v39  ;;  %v401_v27 = vadd.f32 %v398_v49, %v241_v43 }
  0x75   :  { %v413_v6 = vadd.f32 %v410_v2, %v247_v0 }
  0x76   :  { %486 = vadd.xlane.f32.xlu0 %v407_v9  ;;  %432 = vadd.xlane.f32.xlu1 %v395_v54 }
  0x78   :  { %v648_v24 = vpop.eup %647 }
  0x79   :  { %v650_v36 = vpop.eup %649 }
  0x7a   :  { %459 = vadd.xlane.f32.xlu1 %v401_v27  ;;  %v379_v31 = vadd.f32 %v650_v36, %v648_v24 }
  0x7b   :  { %v652_v3 = vpop.eup %651 }
  0x7c   :  { %v654_v32 = vpop.eup %653  ;;  %v380_v33 = vadd.f32 %v652_v3, %v379_v31 }
  0x7d   :  { %v656_v4 = vpop.eup %655 }
  0x7e   :  { %v381_v23 = vadd.f32 %v654_v32, %v380_v33  ;;  %v229_v18 = vmul.f32 %v656_v4, %v227_v29 }
  0x80   :  { %657 = vrcp.f32 %v381_v23  ;;  %v230_v55 = vsub.f32 2.0, %v229_v18 }
  0x82   :  { %v231_v57 = vmul.f32 %v656_v4, %v230_v55 }
  0x84   :  { %v232_v7 = vmul.f32 %v640_v1, %v231_v57  ;;  %v233_v40 = vmul.f32 %v642_v47, %v231_v57  ;;  %v234_v58 = vmul.f32 %v644_v19, %v231_v57  ;;  %v235_v10 = vmul.f32 %v646_v21, %v231_v57 }
  0x86   :  { %v236_v41 = vmul.f32 %v232_v7, %v174_v34  ;;  %v239_v59 = vmul.f32 %v233_v40, %v175_v12  ;;  %v237_v46 = vmul.f32 %v232_v7, %v232_v7  ;;  %v243_v63 = vmul.f32 %v234_v58, %v234_v58 }
  0x87   :  { %v245_v62 = vmul.f32 %v235_v10, %v177_v38  ;;  %v240_v52 = vmul.f32 %v233_v40, %v233_v40  ;;  %v242_v35 = vmul.f32 %v234_v58, %v1034_v51  ;;  %v246_v50 = vmul.f32 %v235_v10, %v235_v10 }
  0x8a   :  { %v658_v53 = vpop.eup %657 }
  0x8b   :  { %v383_v60 = vmul.f32 %v658_v53, %v381_v23 }
  0x8d   :  { %v384_v14 = vsub.f32 2.0, %v383_v60 }
  0x8f   :  { %v385_v11 = vmul.f32 %v658_v53, %v384_v14 }
  0x91   :  { %v386_v42 = vmul.f32 %v648_v24, %v385_v11  ;;  %v387_v61 = vmul.f32 %v650_v36, %v385_v11  ;;  %v388_v15 = vmul.f32 %v652_v3, %v385_v11  ;;  %v389_v25 = vmul.f32 %v654_v32, %v385_v11 }
  0x93   :  { %v390_v20 = vmul.f32 %v386_v42, %v328_v26  ;;  %v396_v48 = vmul.f32 %v387_v61, %v329_v45  ;;  %v391_v5 = vmul.f32 %v386_v42, %v386_v42  ;;  %v403_v8 = vmul.f32 %v388_v15, %v388_v15 }
  0x94   :  { %v408_v16 = vmul.f32 %v389_v25, %v331_v44  ;;  %v397_v21 = vmul.f32 %v387_v61, %v387_v61  ;;  %v402_v17 = vmul.f32 %v388_v15, %v1042_v22  ;;  %v409_v39 = vmul.f32 %v389_v25, %v389_v25 }
  0x95   :  { %v393_v1 = vadd.f32 %v390_v20, %v236_v41  ;;  %v399_v47 = vadd.f32 %v396_v48, %v239_v59  ;;  %v394_v34 = vadd.f32 %v391_v5, %v237_v46  ;;  %v406_v12 = vadd.f32 %v403_v8, %v243_v63 }
  0x96   :  { %v411_v19 = vadd.f32 %v408_v16, %v245_v62  ;;  %v400_v30 = vadd.f32 %v397_v21, %v240_v52  ;;  %v405_v38 = vadd.f32 %v402_v17, %v242_v35  ;;  %v412_v13 = vadd.f32 %v409_v39, %v246_v50 }
  0x97   :  { %414 = vadd.xlane.f32.xlu0 %v393_v1  ;;  %441 = vadd.xlane.f32.xlu1 %v399_v47 }
  0x9b   :  { %423 = vadd.xlane.f32.xlu0 %v394_v34  ;;  %477 = vadd.xlane.f32.xlu1 %v406_v12 }
  0x9f   :  { %450 = vadd.xlane.f32.xlu0 %v400_v30  ;;  %495 = vadd.xlane.f32.xlu1 %v411_v19 }
  0xa3   :  { %468 = vadd.xlane.f32.xlu0 %v405_v38  ;;  %513 = vadd.xlane.f32.xlu1 %v413_v6 }
  0xa7   :  { %504 = vadd.xlane.f32.xlu0 %v412_v13 }
 0x103   :  { %v433_v26 = vpop.xlane.xlu1 %432  ;;  %v487_v45 = vpop.xlane.xlu0 %486 }
 0x104   :  { %v434_v28 = vrot.slane %v433_v26, 4  ;;  %v488_v22 = vrot.slane %v487_v45, 4 }
 0x106   :  { %v435_v44 = vadd.f32 %v434_v28, %v433_v26  ;;  %v489_v32 = vadd.f32 %v488_v22, %v487_v45 }
 0x107   :  { %v460_v29 = vpop.xlane.xlu1 %459 }
 0x108   :  { %v461_v0 = vrot.slane %v460_v29, 4  ;;  %v436_v49 = vrot.slane %v435_v44, 2  ;;  %v490_v58 = vrot.slane %v489_v32, 2 }
 0x10a   :  { %v462_v2 = vadd.f32 %v461_v0, %v460_v29  ;;  %v437_v33 = vadd.f32 %v436_v49, %v435_v44  ;;  %v491_v47 = vadd.f32 %v490_v58, %v489_v32 }
 0x10c   :  { %v463_v4 = vrot.slane %v462_v2, 2  ;;  %v438_v11 = vrot.slane %v437_v33, 1  ;;  %v492_v22 = vrot.slane %v491_v47, 1 }
 0x10e   :  { %v464_v61 = vadd.f32 %v463_v4, %v462_v2  ;;  %v439_v1 = vadd.f32 %v438_v11, %v437_v33 }
 0x110   :  { %v465_v12 = vrot.slane %v464_v61, 1 }
 0x112   :  { %v466_v0 = vadd.f32 %v465_v12, %v464_v61 }
 0x124   :  { %v415_v56 = vpop.xlane.xlu0 %414  ;;  %v442_v37 = vpop.xlane.xlu1 %441 }
 0x125   :  { %v416_v51 = vrot.slane %v415_v56, 4  ;;  %v443_v43 = vrot.slane %v442_v37, 4 }
 0x127   :  { %v417_v9 = vadd.f32 %v416_v51, %v415_v56  ;;  %v444_v54 = vadd.f32 %v443_v43, %v442_v37 }
 0x128   :  { %v424_v27 = vpop.xlane.xlu0 %423  ;;  %v478_v24 = vpop.xlane.xlu1 %477 }
 0x129   :  { %v418_v6 = vrot.slane %v417_v9, 2  ;;  %v445_v36 = vrot.slane %v444_v54, 2  ;;  %v425_v31 = vrot.slane %v424_v27, 4  ;;  %v479_v3 = vrot.slane %v478_v24, 4 }
 0x12b   :  { %v426_v23 = vadd.f32 %v425_v31, %v424_v27  ;;  %v419_v18 = vadd.f32 %v418_v6, %v417_v9  ;;  %v480_v55 = vadd.f32 %v479_v3, %v478_v24  ;;  %v446_v60 = vadd.f32 %v445_v36, %v444_v54 }
 0x12c   :  { %v451_v57 = vpop.xlane.xlu0 %450  ;;  %v496_v53 = vpop.xlane.xlu1 %495  ;;  %v493_v24 = vadd.f32 %v492_v22, %v491_v47 }
 0x12d   :  { %v427_v7 = vrot.slane %v426_v23, 2  ;;  %v452_v40 = vrot.slane %v451_v57, 4  ;;  %v497_v14 = vrot.slane %v496_v53, 4  ;;  %v420_v10 = vrot.slane %v419_v18, 1 }
 0x12e   :  { %v481_v15 = vrot.slane %v480_v55, 2  ;;  %v447_v62 = vrot.slane %v446_v60, 1 }
 0x12f   :  { %v453_v41 = vadd.f32 %v452_v40, %v451_v57  ;;  %v498_v59 = vadd.f32 %v497_v14, %v496_v53  ;;  %v428_v42 = vadd.f32 %v427_v7, %v426_v23  ;;  %v421_v46 = vadd.f32 %v420_v10, %v419_v18 }
 0x130   :  { %v469_v25 = vpop.xlane.xlu0 %468  ;;  %v514_v63 = vpop.xlane.xlu1 %513  ;;  %v448_v35 = vadd.f32 %v447_v62, %v446_v60  ;;  %v482_v17 = vadd.f32 %v481_v15, %v480_v55 }
 0x131   :  { %v454_v20 = vrot.slane %v453_v41, 2  ;;  %v499_v48 = vrot.slane %v498_v59, 2  ;;  %v470_v5 = vrot.slane %v469_v25, 4  ;;  %v515_v8 = vrot.slane %v514_v63, 4  ;;  %592 = vpush %v421_v46 }
 0x132   :  { %v429_v16 = vrot.slane %v428_v42, 1  ;;  %v483_v56 = vrot.slane %v482_v17, 1 }
 0x133   :  { %v471_v52 = vadd.f32 %v470_v5, %v469_v25  ;;  %v516_v19 = vadd.f32 %v515_v8, %v514_v63  ;;  %v455_v34 = vadd.f32 %v454_v20, %v453_v41  ;;  %v500_v38 = vadd.f32 %v499_v48, %v498_v59 }
 0x134   :  { %v505_v21 = vpop.xlane.xlu0 %504  ;;  %v430_v30 = vadd.f32 %v429_v16, %v428_v42  ;;  %v484_v54 = vadd.f32 %v483_v56, %v482_v17 }
 0x135   :  { %v472_v50 = vrot.slane %v471_v52, 2  ;;  %v517_v39 = vrot.slane %v516_v19, 2  ;;  %v506_v13 = vrot.slane %v505_v21, 4  ;;  %v456_v26 = vrot.slane %v455_v34, 1 }
 0x136   :  { %594 = vpush %v430_v30  ;;  %v501_v37 = vrot.slane %v500_v38, 1 }
 0x137   :  { %v518_v45 = vadd.f32 %v517_v39, %v516_v19  ;;  %v507_v28 = vadd.f32 %v506_v13, %v505_v21  ;;  %596 = vpush %v439_v1  ;;  %v457_v29 = vadd.f32 %v456_v26, %v455_v34  ;;  %v473_v44 = vadd.f32 %v472_v50, %v471_v52 }
 0x138   :  { %598 = vpush %v448_v35  ;;  %v502_v27 = vadd.f32 %v501_v37, %v500_v38 }
 0x139   :  { %v508_v51 = vrot.slane %v507_v28, 2  ;;  %600 = vpush %v457_v29  ;;  %v474_v43 = vrot.slane %v473_v44, 1  ;;  %v519_v49 = vrot.slane %v518_v45, 1 }
 0x13a   :  { %602 = vpush %v466_v0 }
 0x13b   :  { %v509_v2 = vadd.f32 %v508_v51, %v507_v28  ;;  %v475_v9 = vadd.f32 %v474_v43, %v473_v44  ;;  %v520_v36 = vadd.f32 %v519_v49, %v518_v45 }
 0x13d   :  { %604 = vpush %v475_v9  ;;  %v510_v6 = vrot.slane %v509_v2, 1 }
 0x13e   :  { %606 = vpush %v484_v54 }
 0x13f   :  { %608 = vpush %v493_v24  ;;  %v511_v31 = vadd.f32 %v510_v6, %v509_v2 }
 0x140   :  { %610 = vpush %v502_v27 }
 0x141   :  { %612 = vpush %v511_v31 }
 0x142   :  { %614 = vpush %v520_v36 }
 0x162   :  { %s593_s4 = spop %592 }
 0x163   :  { %v522_v3 = vstv %s593_s4 }
 0x167   :  { %s595_s28 = spop %594 }
 0x168   :  { %v523_v32 = vstv %s595_s28  ;;  %s597_s29 = spop %596 }
 0x169   :  { %v535_v33 = vsel %vm534_vm0, %v522_v3, %v523_v32  ;;  %v524_v4 = vstv %s597_s29  ;;  %s599_s30 = spop %598 }
 0x16a   :  { %v537_v23 = vsel %vm536_vm1, %v535_v33, %v524_v4  ;;  %v525_v18 = vstv %s599_s30  ;;  %s601_s6 = spop %600 }
 0x16b   :  { %v539_v55 = vsel %vm538_vm2, %v537_v23, %v525_v18  ;;  %v526_v57 = vstv %s601_s6  ;;  %s603_s7 = spop %602 }
 0x16c   :  { %v541_v53 = vsel %vm540_vm3, %v539_v55, %v526_v57  ;;  %v527_v60 = vstv %s603_s7 }
 0x16d   :  { %v543_v7 = vsel %vm542_vm4, %v541_v53, %v527_v60 }
 0x16e   :  { %s605_s8 = spop %604 }
 0x16f   :  { %v528_v40 = vstv %s605_s8  ;;  %s607_s9 = spop %606 }
 0x170   :  { %v545_v14 = vsel %vm544_vm5, %v543_v7, %v528_v40  ;;  %v529_v58 = vstv %s607_s9  ;;  %s609_s2 = spop %608 }
 0x171   :  { %v547_v10 = vsel %vm546_vm6, %v545_v14, %v529_v58  ;;  %v530_v11 = vstv %s609_s2  ;;  %s611_s10 = spop %610 }
 0x172   :  { %551 = vst [vmem:[%s1068_s5] sm:$0xff] %v547_v10  ;;  %v531_v41 = vstv %s611_s10  ;;  %s613_s13 = spop %612 }
 0x173   :  { %v548_v59 = vsel %vm534_vm0, %v530_v11, %v531_v41  ;;  %v532_v42 = vstv %s613_s13  ;;  %s615_s3 = spop %614 }
 0x174   :  { %v549_v61 = vsel %vm536_vm1, %v548_v59, %v532_v42  ;;  %v533_v15 = vstv %s615_s3 }
 0x175   :  { %v550_v25 = vsel %vm538_vm2, %v549_v61, %v533_v15 }
 0x176   :  { %552 = vst [vmem:[%s1068_s5 + $0x8] sm:$0xf] %v550_v25 }
 0x177   :  { %557 = vsyncpa [#allocation3], 1 }
 0x178   :  { %558 = vsyncpa [#allocation5], 1 }

// kernel: vat2d_loss.6
= control target key start
LH: loop header
LB: loop body
LE: loop exit
PB: predicated region body
PF: predicated region fallthrough
CT: control target
= control target key end

     0   :  { %13 = vsyncpa [#allocation3], 0  ;;  %s1416_s0 = inlined_call_operand.vmem [shape: f32[16], index: 0, kind: input, shape index: {}]   ;;  %s1417_s1 = inlined_call_operand.vmem [shape: f32[4], index: 1, kind: input, shape index: {}]   ;;  %s1418_s2 = inlined_call_operand.vmem [shape: f32[8], index: 2, kind: input, shape index: {}]   ;;  %s1419_s3 = inlined_call_operand.vmem [shape: f32[2], index: 3, kind: input, shape index: {}]   ;;  %s1420_s4 = inlined_call_operand.vmem [shape: f32[2,4,8,128], index: 4, kind: input, shape index: {}]   ;;  %s1421_s5 = inlined_call_operand.vmem [shape: f32[2,4,8,128], index: 5, kind: input, shape index: {}]   ;;  %s1422_s6 = inlined_call_operand.vmem [shape: f32[2,4,8,128], index: 6, kind: output, shape index: {0}]   ;;  %s1423_s7 = inlined_call_operand.vmem [shape: f32[1,2,128], index: 7, kind: output, shape index: {1}]  }
   0x1   :  { %14 = vsyncpa [#allocation5], 0  ;;  %s32_s26 = sshll.u32 %s1417_s1, 4  ;;  %s33_s26 = int_to_ptr.vmem [resolvable:$true] %s32_s26 }
   0x2   :  { %15 = vsyncpa [#allocation8], 0  ;;  %s22_s29 = sshll.u32 %s1416_s0, 4  ;;  %s832_s30 = scalar_lea.vmem %s33_s26, 16  ;;  %s23_s29 = int_to_ptr.vmem [resolvable:$true] %s22_s29 }
   0x3   :  { %p833_p0 = scmp.ne.s32.totalorder %s33_s26, %s832_s30  ;;  %p837_p1 = scmp.lt.s32.totalorder %s33_s26, %s33_s26 }
   0x4   :  { %p838_p2 = scmp.lt.s32.totalorder %s832_s30, %s832_s30 }
   0x6   :  { %p839_p3 = por %p838_p2, %p837_p1 }
   0x8   :  { %p840_p4 = pnand %p839_p3, %p833_p0 }
   0xa   :  { %843 = shalt.err (!%p840_p4)
}
   0xb   :  { %s886_s8 = smov [#allocation4]   ;;  %s844_s9 = scalar_lea.vmem %s23_s29, 16 }
   0xc   :  { %35 = dma.vmem_to_smem %s33_s26, 16, %s886_s8, [#allocation5]  }
   0xd   :  { %p845_p5 = scmp.ne.s32.totalorder %s23_s29, %s844_s9  ;;  %p849_p6 = scmp.lt.s32.totalorder %s23_s29, %s23_s29 }
   0xe   :  { %p850_p7 = scmp.lt.s32.totalorder %s844_s9, %s844_s9 }
  0x10   :  { %p851_p8 = por %p850_p7, %p849_p6 }
  0x12   :  { %p852_p9 = pnand %p851_p8, %p845_p5 }
  0x14   :  { %855 = shalt.err (!%p852_p9)
}
  0x15   :  { %s887_s1 = smov [#allocation2]   ;;  %s42_s11 = sshll.u32 %s1418_s2, 4  ;;  %s43_s11 = int_to_ptr.vmem [resolvable:$true] %s42_s11 }
  0x16   :  { %25 = dma.vmem_to_smem %s23_s29, 16, %s887_s1, [#allocation3]  }
  0x17   :  { %s52_s14 = sshll.u32 %s1419_s3, 4  ;;  %s856_s15 = scalar_lea.vmem %s43_s11, 16  ;;  %s53_s14 = int_to_ptr.vmem [resolvable:$true] %s52_s14 }
  0x18   :  { %p857_p10 = scmp.ne.s32.totalorder %s43_s11, %s856_s15  ;;  %p861_p11 = scmp.lt.s32.totalorder %s43_s11, %s43_s11 }
  0x19   :  { %p862_p12 = scmp.lt.s32.totalorder %s856_s15, %s856_s15 }
  0x1b   :  { %p863_p13 = por %p862_p12, %p861_p11 }
  0x1d   :  { %p864_p0 = pnand %p863_p13, %p857_p10 }
  0x1f   :  { %867 = shalt.err (!%p864_p0)
}
  0x20   :  { %s888_s16 = smov [#allocation6]   ;;  %s868_s17 = scalar_lea.vmem %s53_s14, 16 }
  0x21   :  { %45 = dma.vmem_to_smem %s43_s11, 16, %s888_s16, [#allocation5]  }
  0x22   :  { %p869_p1 = scmp.ne.s32.totalorder %s53_s14, %s868_s17  ;;  %p873_p2 = scmp.lt.s32.totalorder %s53_s14, %s53_s14 }
  0x23   :  { %p874_p3 = scmp.lt.s32.totalorder %s868_s17, %s868_s17 }
  0x25   :  { %p875_p4 = por %p874_p3, %p873_p2 }
  0x27   :  { %p876_p5 = pnand %p875_p4, %p869_p1 }
  0x29   :  { %879 = shalt.err (!%p876_p5)
}
  0x2a   :  { %s889_s2 = smov [#allocation7]  }
  0x2b   :  { %55 = dma.vmem_to_smem %s53_s14, 16, %s889_s2, [#allocation8]  }
  0x2c   :  { %880 = dma.done.wait [#allocation3], 16  }
  0x2d   :  { %881 = vsyncadd [#allocation3], 4294967280 }
  0x2e   :  { %882 = dma.done.wait [#allocation5], 32  }
  0x2f   :  { %883 = vsyncadd [#allocation5], 4294967264 }
  0x30   :  { %884 = dma.done.wait [#allocation8], 16  }
  0x31   :  { %885 = vsyncadd [#allocation8], 4294967280 }
  0x32   :  { %72 = sfence }
  0x33   :  { %s73_s3 = sld [smem:[#allocation7]]  ;;  %s694_s19 = sld [smem:[#allocation2 + $0x1]]  ;;  %v81_v0 = vld [vmem:[%s1421_s5] sm:$0xff]  ;;  %v691_v1 = vld [vmem:[%s1421_s5 + $0x8] sm:$0xff]  ;;  %v692_v2 = vld [vmem:[%s1421_s5 + $0x10] sm:$0xff]  ;;  %vm674_vm0 = vcmask 1040384  }
  0x34   :  { %s97_s18 = sld [smem:[#allocation2]]  ;;  %s695_s20 = sld [smem:[#allocation2 + $0x2]]  ;;  %v693_v3 = vld [vmem:[%s1421_s5 + $0x18] sm:$0xff]  ;;  %v965_v4 = vld [vmem:[%s1420_s4] sm:$0xff]  ;;  %v970_v5 = vld [vmem:[%s1420_s4 + $0x8] sm:$0xff] }
  0x35   :  { %s948_s25 = sld [smem:[#allocation2 + $0x3]]  ;;  %s950_s26 = sld [smem:[#allocation4]]  ;;  %v689_v6 = vld [vmem:[%s1420_s4 + $0x10] sm:$0xff]  ;;  %v982_v7 = vld [vmem:[%s1420_s4 + $0x18] sm:$0xff] }
  0x36   :  { %s958_s8 = sld [smem:[#allocation2 + $0x4]]  ;;  %s960_s9 = sld [smem:[#allocation2 + $0x5]] }
  0x37   :  { %s972_s12 = sld [smem:[#allocation2 + $0x6]]  ;;  %s974_s13 = sld [smem:[#allocation2 + $0x7]] }
  0x38   :  { %s984_s2 = sld [smem:[#allocation4 + $0x1]]  ;;  %s986_s21 = sld [smem:[#allocation2 + $0x8]] }
  0x39   :  { %v82_v8 = vstv %s73_s3  ;;  %s988_s22 = sld [smem:[#allocation2 + $0x9]]  ;;  %s990_s23 = sld [smem:[#allocation2 + $0xa]]  ;;  %v994_v14 = vstv %s694_s19 }
  0x3a   :  { %v83_v9 = vmul.f32 %v82_v8, %v81_v0  ;;  %v87_v10 = vmul.f32 %v691_v1, %v82_v8  ;;  %v91_v11 = vmul.f32 %v692_v2, %v82_v8  ;;  %v95_v12 = vmul.f32 %v693_v3, %v82_v8  ;;  %s998_s3 = sld [smem:[#allocation2 + $0xb]]  ;;  %s1000_s24 = sld [smem:[#allocation4 + $0x2]] }
  0x3b   :  { %v992_v13 = vstv %s97_s18  ;;  %v996_v15 = vstv %s695_s20  ;;  %s1013_s18 = sld [smem:[#allocation2 + $0xc]]  ;;  %s1015_s19 = sld [smem:[#allocation2 + $0xd]]  ;;  %v102_v21 = vmul.f32 %v970_v5, %v994_v14  ;;  %v1023_v23 = vstv %s948_s25 }
  0x3c   :  { %v1003_v16 = vadd.f32 %v83_v9, %v965_v4  ;;  %v1006_v17 = vadd.f32 %v970_v5, %v87_v10  ;;  %v1008_v18 = vadd.f32 %v689_v6, %v91_v11  ;;  %v1011_v19 = vadd.f32 %v982_v7, %v95_v12  ;;  %s1025_s20 = sld [smem:[#allocation2 + $0xe]]  ;;  %s1038_s27 = sld [smem:[#allocation2 + $0xf]] }
  0x3d   :  { %v99_v20 = vmul.f32 %v992_v13, %v965_v4  ;;  %v106_v22 = vmul.f32 %v689_v6, %v996_v15  ;;  %v110_v24 = vmul.f32 %v982_v7, %v1023_v23  ;;  %v1030_v25 = vstv %s950_s26  ;;  %s1040_s28 = sld [smem:[#allocation4 + $0x3]]  ;;  %s1134_s25 = sld [smem:[#allocation7 + $0x1]] }
  0x3e   :  { %v1033_v26 = vstv %s958_s8  ;;  %v1036_v27 = vstv %s960_s9  ;;  %v1047_v31 = vstv %s972_s12  ;;  %v1051_v33 = vstv %s974_s13 }
  0x3f   :  { %v103_v28 = vadd.f32 %v102_v21, %v99_v20  ;;  %v117_v29 = vmul.f32 %v1033_v26, %v965_v4  ;;  %v120_v30 = vmul.f32 %v970_v5, %v1036_v27  ;;  %v124_v32 = vmul.f32 %v689_v6, %v1047_v31 }
  0x40   :  { %v1054_v34 = vstv %s984_s2  ;;  %v1057_v35 = vstv %s986_s21  ;;  %v128_v38 = vmul.f32 %v982_v7, %v1051_v33  ;;  %v1064_v40 = vstv %s988_s22  ;;  %s1264_s21 = sld [smem:[#allocation6 + $0x6]]  ;;  %s1267_s22 = sld [smem:[#allocation6]] }
  0x41   :  { %v107_v36 = vadd.f32 %v106_v22, %v103_v28  ;;  %v121_v37 = vadd.f32 %v120_v30, %v117_v29  ;;  %v135_v39 = vmul.f32 %v1057_v35, %v965_v4  ;;  %v1067_v41 = vstv %s990_s23  ;;  %s1269_s23 = sld [smem:[#allocation6 + $0x7]] }
  0x42   :  { %v1070_v42 = vstv %s998_s3  ;;  %v1073_v43 = vstv %s1000_s24  ;;  %v138_v46 = vmul.f32 %v970_v5, %v1064_v40  ;;  %v142_v47 = vmul.f32 %v689_v6, %v1067_v41  ;;  %s1271_s3 = sld [smem:[#allocation6 + $0x1]]  ;;  %s1273_s24 = sld [smem:[#allocation6 + $0x2]] }
  0x43   :  { %v111_v44 = vadd.f32 %v110_v24, %v107_v36  ;;  %v125_v45 = vadd.f32 %v124_v32, %v121_v37  ;;  %v146_v48 = vmul.f32 %v982_v7, %v1070_v42  ;;  %v1081_v49 = vstv %s1013_s18  ;;  %s1275_s18 = sld [smem:[#allocation6 + $0x3]] }
  0x44   :  { %v1084_v50 = vstv %s1015_s19  ;;  %v1087_v51 = vstv %s1025_s20  ;;  %v139_v54 = vadd.f32 %v138_v46, %v135_v39  ;;  %v153_v55 = vmul.f32 %v1081_v49, %v965_v4 }
  0x45   :  { %v114_v52 = vadd.f32 %v1030_v25, %v111_v44  ;;  %v129_v53 = vadd.f32 %v128_v38, %v125_v45  ;;  %v156_v56 = vmul.f32 %v970_v5, %v1084_v50  ;;  %v160_v57 = vmul.f32 %v689_v6, %v1087_v51 }
  0x46   :  { %v1096_v58 = vstv %s1038_s27  ;;  %v1099_v59 = vstv %s1040_s28  ;;  %v143_v61 = vadd.f32 %v142_v47, %v139_v54  ;;  %v195_v63 = vmul.f32 %v992_v13, %v1003_v16 }
  0x47   :  { %v132_v60 = vadd.f32 %v1054_v34, %v129_v53  ;;  %v164_v62 = vmul.f32 %v982_v7, %v1096_v58  ;;  %v157_v0 = vadd.f32 %v156_v56, %v153_v55  ;;  %v196_v1 = vmul.f32 %v994_v14, %v1006_v17 }
  0x48   :  { %v198_v2 = vmul.f32 %v996_v15, %v1008_v18  ;;  %v200_v3 = vmul.f32 %v1023_v23, %v1011_v19  ;;  %v147_v4 = vadd.f32 %v146_v48, %v143_v61  ;;  %v203_v6 = vmul.f32 %v1033_v26, %v1003_v16 }
  0x49   :  { %v169_v5 = vmax.f32 %v114_v52, %v132_v60  ;;  %v204_v7 = vmul.f32 %v1036_v27, %v1006_v17  ;;  %v161_v8 = vadd.f32 %v160_v57, %v157_v0  ;;  %v197_v9 = vadd.f32 %v196_v1, %v195_v63 }
  0x4a   :  { %v206_v10 = vmul.f32 %v1047_v31, %v1008_v18  ;;  %v208_v11 = vmul.f32 %v1051_v33, %v1011_v19  ;;  %v150_v12 = vadd.f32 %v1073_v43, %v147_v4  ;;  %v211_v21 = vmul.f32 %v1057_v35, %v1003_v16 }
  0x4b   :  { %v205_v20 = vadd.f32 %v204_v7, %v203_v6  ;;  %v212_v22 = vmul.f32 %v1064_v40, %v1006_v17  ;;  %v165_v24 = vadd.f32 %v164_v62, %v161_v8  ;;  %v199_v28 = vadd.f32 %v198_v2, %v197_v9  ;;  %v735_v7 = vld [vmem:[%s1420_s4 + $0x20] sm:$0xff]  ;;  %v741_v8 = vld [vmem:[%s1421_s5 + $0x30] sm:$0xff]  ;;  %v742_v9 = vld [vmem:[%s1421_s5 + $0x38] sm:$0xff] }
  0x4c   :  { %v214_v29 = vmul.f32 %v1067_v41, %v1008_v18  ;;  %v216_v30 = vmul.f32 %v1070_v42, %v1011_v19  ;;  %v170_v32 = vmax.f32 %v169_v5, %v150_v12  ;;  %v219_v38 = vmul.f32 %v1081_v49, %v1003_v16 }
  0x4d   :  { %v207_v36 = vadd.f32 %v206_v10, %v205_v20  ;;  %v213_v37 = vadd.f32 %v212_v22, %v211_v21  ;;  %v168_v39 = vadd.f32 %v1099_v59, %v165_v24  ;;  %v201_v44 = vadd.f32 %v200_v3, %v199_v28  ;;  %v740_v3 = vld [vmem:[%s1421_s5 + $0x28] sm:$0xff]  ;;  %v737_v21 = vld [vmem:[%s1420_s4 + $0x30] sm:$0xff]  ;;  %v738_v22 = vld [vmem:[%s1420_s4 + $0x38] sm:$0xff] }
  0x4e   :  { %v220_v45 = vmul.f32 %v1084_v50, %v1006_v17  ;;  %v222_v48 = vmul.f32 %v1087_v51, %v1008_v18  ;;  %v224_v57 = vmul.f32 %v1096_v58, %v1011_v19  ;;  %v739_v18 = vld [vmem:[%s1421_s5 + $0x20] sm:$0xff]  ;;  %v736_v10 = vld [vmem:[%s1420_s4 + $0x28] sm:$0xff]  ;;  %s1259_s4 = sld [smem:[#allocation6 + $0x4]]  ;;  %s1262_s5 = sld [smem:[#allocation6 + $0x5]] }
  0x4f   :  { %v209_v46 = vadd.f32 %v208_v11, %v207_v36  ;;  %v215_v47 = vadd.f32 %v214_v29, %v213_v37  ;;  %v171_v53 = vmax.f32 %v170_v32, %v168_v39  ;;  %v202_v54 = vadd.f32 %v201_v44, %v1030_v25 }
  0x50   :  { %v221_v55 = vadd.f32 %v220_v45, %v219_v38  ;;  %v382_v11 = vstv %s1134_s25  ;;  %v402_v32 = vmul.f32 %v736_v10, %v994_v14 }
  0x51   :  { %v210_v56 = vadd.f32 %v209_v46, %v1054_v34  ;;  %v217_v16 = vadd.f32 %v216_v30, %v215_v47  ;;  %v172_v61 = vsub.f32 %v114_v52, %v171_v53  ;;  %v175_v62 = vsub.f32 %v132_v60, %v171_v53 }
  0x52   :  { %v178_v17 = vsub.f32 %v150_v12, %v171_v53  ;;  %v181_v63 = vsub.f32 %v168_v39, %v171_v53  ;;  %v223_v1 = vadd.f32 %v222_v48, %v221_v55  ;;  %v399_v12 = vmul.f32 %v735_v7, %v992_v13 }
  0x53   :  { %v218_v0 = vadd.f32 %v217_v16, %v1073_v43  ;;  %v227_v2 = vmax.f32 %v202_v54, %v210_v56  ;;  %v173_v4 = vmul.f32 1.442695, %v172_v61  ;;  %v176_v5 = vmul.f32 1.442695, %v175_v62 }
  0x54   :  { %v179_v19 = vmul.f32 1.442695, %v178_v17  ;;  %v182_v52 = vmul.f32 1.442695, %v181_v63  ;;  %v225_v60 = vadd.f32 %v224_v57, %v223_v1  ;;  %v383_v24 = vmul.f32 %v739_v18, %v382_v11 }
  0x55   :  { %v228_v6 = vmax.f32 %v227_v2, %v218_v0  ;;  %792 = vpow2.f32 %v173_v4  ;;  %v387_v28 = vmul.f32 %v740_v3, %v382_v11  ;;  %v391_v29 = vmul.f32 %v741_v8, %v382_v11 }
  0x56   :  { %794 = vpow2.f32 %v176_v5  ;;  %v226_v20 = vadd.f32 %v225_v60, %v1099_v59  ;;  %v395_v30 = vmul.f32 %v742_v9, %v382_v11  ;;  %v1171_v37 = vadd.f32 %v735_v7, %v383_v24 }
  0x57   :  { %796 = vpow2.f32 %v179_v19  ;;  %v1173_v38 = vadd.f32 %v736_v10, %v387_v28  ;;  %v1175_v39 = vadd.f32 %v737_v21, %v391_v29  ;;  %v403_v45 = vadd.f32 %v402_v32, %v399_v12 }
  0x58   :  { %798 = vpow2.f32 %v182_v52  ;;  %v229_v36 = vmax.f32 %v228_v6, %v226_v20  ;;  %v1177_v44 = vadd.f32 %v738_v22, %v395_v30  ;;  %v406_v46 = vmul.f32 %v737_v21, %v996_v15 }
  0x59   :  { %v410_v57 = vmul.f32 %v738_v22, %v1023_v23  ;;  %v417_v61 = vmul.f32 %v735_v7, %v1033_v26  ;;  %v420_v62 = vmul.f32 %v736_v10, %v1036_v27  ;;  %v424_v2 = vmul.f32 %v737_v21, %v1047_v31 }
  0x5a   :  { %v230_v47 = vsub.f32 %v202_v54, %v229_v36  ;;  %v233_v48 = vsub.f32 %v210_v56, %v229_v36  ;;  %v236_v53 = vsub.f32 %v218_v0, %v229_v36  ;;  %v239_v55 = vsub.f32 %v226_v20, %v229_v36 }
  0x5b   :  { %v407_v16 = vadd.f32 %v406_v46, %v403_v45  ;;  %v421_v4 = vadd.f32 %v420_v62, %v417_v61  ;;  %v428_v54 = vmul.f32 %v738_v22, %v1051_v33  ;;  %v435_v56 = vmul.f32 %v735_v7, %v1057_v35 }
  0x5c   :  { %v231_v17 = vmul.f32 1.442695, %v230_v47  ;;  %v234_v63 = vmul.f32 1.442695, %v233_v48  ;;  %v237_v1 = vmul.f32 1.442695, %v236_v53  ;;  %v438_v0 = vmul.f32 %v736_v10, %v1064_v40 }
  0x5d   :  { %v240_v18 = vmul.f32 1.442695, %v239_v55  ;;  %v411_v3 = vadd.f32 %v410_v57, %v407_v16  ;;  %v442_v5 = vmul.f32 %v737_v21, %v1067_v41  ;;  %v425_v60 = vadd.f32 %v424_v2, %v421_v4 }
  0x5e   :  { %800 = vpow2.f32 %v231_v17  ;;  %v446_v6 = vmul.f32 %v738_v22, %v1070_v42  ;;  %v439_v9 = vadd.f32 %v438_v0, %v435_v56  ;;  %v453_v11 = vmul.f32 %v735_v7, %v1081_v49 }
  0x5f   :  { %v1188_v19 = vpop.eup %792  ;;  %802 = vpow2.f32 %v234_v63  ;;  %v1191_v52 = vadd.f32 %v411_v3, %v1030_v25  ;;  %v456_v12 = vmul.f32 %v736_v10, %v1084_v50  ;;  %v429_v28 = vadd.f32 %v428_v54, %v425_v60 }
  0x60   :  { %v1194_v8 = vpop.eup %794  ;;  %804 = vpow2.f32 %v237_v1  ;;  %v460_v29 = vmul.f32 %v737_v21, %v1087_v51  ;;  %v443_v32 = vadd.f32 %v442_v5, %v439_v9  ;;  %v464_v45 = vmul.f32 %v738_v22, %v1096_v58 }
  0x61   :  { %v1198_v20 = vpop.eup %796  ;;  %v184_v24 = vadd.f32 %v1194_v8, %v1188_v19  ;;  %806 = vpow2.f32 %v240_v18  ;;  %v457_v36 = vadd.f32 %v456_v12, %v453_v11  ;;  %v495_v7 = vmul.f32 %v1171_v37, %v992_v13 }
  0x62   :  { %v1203_v30 = vpop.eup %798  ;;  %v432_v46 = vadd.f32 %v429_v28, %v1054_v34  ;;  %v496_v47 = vmul.f32 %v1173_v38, %v994_v14  ;;  %v498_v48 = vmul.f32 %v1175_v39, %v996_v15  ;;  %v447_v21 = vadd.f32 %v446_v6, %v443_v32 }
  0x63   :  { %v185_v10 = vadd.f32 %v1198_v20, %v184_v24  ;;  %v461_v53 = vadd.f32 %v460_v29, %v457_v36  ;;  %v500_v55 = vmul.f32 %v1177_v44, %v1023_v23  ;;  %v503_v22 = vmul.f32 %v1171_v37, %v1033_v26 }
  0x64   :  { %v469_v57 = vmax.f32 %v1191_v52, %v432_v46  ;;  %v497_v61 = vadd.f32 %v496_v47, %v495_v7  ;;  %v504_v62 = vmul.f32 %v1173_v38, %v1036_v27  ;;  %v450_v17 = vadd.f32 %v447_v21, %v1073_v43 }
  0x65   :  { %v186_v16 = vadd.f32 %v1203_v30, %v185_v10  ;;  %v465_v63 = vadd.f32 %v464_v45, %v461_v53  ;;  %v506_v1 = vmul.f32 %v1175_v39, %v1047_v31  ;;  %v508_v2 = vmul.f32 %v1177_v44, %v1051_v33 }
  0x66   :  { %v499_v18 = vadd.f32 %v498_v48, %v497_v61  ;;  %v505_v3 = vadd.f32 %v504_v62, %v503_v22  ;;  %v511_v4 = vmul.f32 %v1171_v37, %v1057_v35  ;;  %v470_v0 = vmax.f32 %v469_v57, %v450_v17 }
  0x67   :  { %808 = vrcp.f32 %v186_v16  ;;  %v468_v56 = vadd.f32 %v465_v63, %v1099_v59  ;;  %v512_v5 = vmul.f32 %v1173_v38, %v1064_v40  ;;  %v514_v60 = vmul.f32 %v1175_v39, %v1067_v41 }
  0x68   :  { %v1229_v54 = vpop.eup %800  ;;  %v501_v9 = vadd.f32 %v500_v55, %v499_v18  ;;  %v507_v11 = vadd.f32 %v506_v1, %v505_v3  ;;  %v516_v12 = vmul.f32 %v1177_v44, %v1070_v42  ;;  %v519_v24 = vmul.f32 %v1171_v37, %v1081_v49 }
  0x69   :  { %v1236_v6 = vpop.eup %802  ;;  %v471_v32 = vmax.f32 %v470_v0, %v468_v56  ;;  %v513_v36 = vadd.f32 %v512_v5, %v511_v4  ;;  %v520_v45 = vmul.f32 %v1173_v38, %v1084_v50  ;;  %v522_v48 = vmul.f32 %v1175_v39, %v1087_v51 }
  0x6a   :  { %v1242_v28 = vpop.eup %804  ;;  %v242_v29 = vadd.f32 %v1236_v6, %v1229_v54  ;;  %v502_v10 = vadd.f32 %v501_v9, %v1030_v25  ;;  %v509_v47 = vadd.f32 %v508_v2, %v507_v11  ;;  %v524_v37 = vmul.f32 %v1177_v44, %v1096_v58 }
  0x6b   :  { %v1248_v7 = vpop.eup %806  ;;  %v472_v53 = vsub.f32 %v1191_v52, %v471_v32  ;;  %v475_v55 = vsub.f32 %v432_v46, %v471_v32  ;;  %v478_v22 = vsub.f32 %v450_v17, %v471_v32  ;;  %v481_v57 = vsub.f32 %v468_v56, %v471_v32 }
  0x6c   :  { %v243_v21 = vadd.f32 %v1242_v28, %v242_v29  ;;  %v510_v38 = vadd.f32 %v509_v47, %v1054_v34  ;;  %v515_v61 = vadd.f32 %v514_v60, %v513_v36  ;;  %v521_v62 = vadd.f32 %v520_v45, %v519_v24 }
  0x6d   :  { %v473_v63 = vmul.f32 1.442695, %v472_v53  ;;  %v476_v1 = vmul.f32 1.442695, %v475_v55  ;;  %v479_v2 = vmul.f32 1.442695, %v478_v22  ;;  %v257_v32 = vstv %s1259_s4 }
  0x6e   :  { %v244_v25 = vadd.f32 %v1248_v7, %v243_v21  ;;  %v517_v39 = vadd.f32 %v516_v12, %v515_v61  ;;  %v523_v18 = vadd.f32 %v522_v48, %v521_v62  ;;  %v527_v3 = vmax.f32 %v502_v10, %v510_v38 }
  0x6f   :  { %v482_v52 = vmul.f32 1.442695, %v481_v57  ;;  %v264_v36 = vstv %s1262_s5  ;;  %v271_v45 = vstv %s1264_s21  ;;  %v254_v62 = vstv %s1267_s22 }
  0x70   :  { %810 = vrcp.f32 %v244_v25  ;;  %v518_v46 = vadd.f32 %v517_v39, %v1073_v43  ;;  %v525_v17 = vadd.f32 %v524_v37, %v523_v18 }
  0x71   :  { %v809_v44 = vpop.eup %808  ;;  %812 = vpow2.f32 %v473_v63  ;;  %v275_v63 = vstv %s1275_s18 }
  0x72   :  { %v188_v34 = vmul.f32 %v809_v44, %v186_v16  ;;  %814 = vpow2.f32 %v476_v1  ;;  %v526_v4 = vadd.f32 %v525_v17, %v1099_v59  ;;  %v528_v56 = vmax.f32 %v527_v3, %v518_v46 }
  0x73   :  { %816 = vpow2.f32 %v479_v2 }
  0x74   :  { %v189_v0 = vsub.f32 2.0, %v188_v34  ;;  %818 = vpow2.f32 %v482_v52  ;;  %v529_v43 = vmax.f32 %v528_v56, %v526_v4 }
  0x76   :  { %v190_v16 = vmul.f32 %v809_v44, %v189_v0  ;;  %v530_v5 = vsub.f32 %v502_v10, %v529_v43  ;;  %v533_v59 = vsub.f32 %v510_v38, %v529_v43  ;;  %v536_v60 = vsub.f32 %v518_v46, %v529_v43 }
  0x77   :  { %v539_v9 = vsub.f32 %v526_v4, %v529_v43  ;;  %v278_v38 = vstv %s1269_s23 }
  0x78   :  { %v531_v11 = vmul.f32 1.442695, %v530_v5  ;;  %v534_v12 = vmul.f32 1.442695, %v533_v59  ;;  %v537_v24 = vmul.f32 1.442695, %v536_v60  ;;  %v191_v48 = vmul.f32 %v1188_v19, %v190_v16 }
  0x79   :  { %v540_v10 = vmul.f32 1.442695, %v539_v9  ;;  %v192_v53 = vmul.f32 %v1194_v8, %v190_v16  ;;  %v193_v55 = vmul.f32 %v1198_v20, %v190_v16  ;;  %v194_v22 = vmul.f32 %v1203_v30, %v190_v16 }
  0x7a   :  { %v811_v29 = vpop.eup %810  ;;  %820 = vpow2.f32 %v531_v11  ;;  %v268_v8 = vstv %s1273_s24  ;;  %v258_v2 = vmul.f32 %v257_v32, %v191_v48 }
  0x7b   :  { %v1280_v47 = vpop.eup %812  ;;  %v246_v37 = vmul.f32 %v811_v29, %v244_v25  ;;  %822 = vpow2.f32 %v534_v12  ;;  %v261_v25 = vstv %s1271_s3  ;;  %v265_v39 = vmul.f32 %v264_v36, %v192_v53 }
  0x7c   :  { %v1283_v21 = vpop.eup %814  ;;  %824 = vpow2.f32 %v537_v24  ;;  %v272_v18 = vmul.f32 %v271_v45, %v193_v55  ;;  %v279_v3 = vmul.f32 %v278_v38, %v194_v22 }
  0x7d   :  { %v1288_v57 = vpop.eup %816  ;;  %v247_v19 = vsub.f32 2.0, %v246_v37  ;;  %v484_v61 = vadd.f32 %v1283_v21, %v1280_v47  ;;  %826 = vpow2.f32 %v540_v10 }
  0x7e   :  { %v1296_v20 = vpop.eup %818 }
  0x7f   :  { %v248_v30 = vmul.f32 %v811_v29, %v247_v19  ;;  %v485_v1 = vadd.f32 %v1288_v57, %v484_v61 }
  0x81   :  { %v249_v44 = vmul.f32 %v1229_v54, %v248_v30  ;;  %v250_v52 = vmul.f32 %v1236_v6, %v248_v30  ;;  %v251_v46 = vmul.f32 %v1242_v28, %v248_v30  ;;  %v252_v17 = vmul.f32 %v1248_v7, %v248_v30 }
  0x82   :  { %v486_v34 = vadd.f32 %v1296_v20, %v485_v1 }
  0x83   :  { %v255_v4 = vmul.f32 %v254_v62, %v249_v44  ;;  %v262_v56 = vmul.f32 %v261_v25, %v250_v52  ;;  %v269_v0 = vmul.f32 %v268_v8, %v251_v46  ;;  %v276_v43 = vmul.f32 %v275_v63, %v252_v17 }
  0x84   :  { %828 = vrcp.f32 %v486_v34  ;;  %v1321_v16 = vpop.eup %820 }
  0x85   :  { %v259_v54 = vsub.f32 %v255_v4, %v258_v2  ;;  %v266_v5 = vsub.f32 %v262_v56, %v265_v39  ;;  %v273_v6 = vsub.f32 %v269_v0, %v272_v18  ;;  %v280_v59 = vsub.f32 %v276_v43, %v279_v3  ;;  %v1323_v28 = vpop.eup %822 }
  0x86   :  { %v1325_v7 = vpop.eup %824  ;;  %v542_v12 = vadd.f32 %v1323_v28, %v1321_v16 }
  0x87   :  { %v281_v60 = vmul.f32 %v259_v54, %v249_v44  ;;  %v282_v9 = vmul.f32 %v266_v5, %v250_v52  ;;  %v284_v11 = vmul.f32 %v273_v6, %v251_v46  ;;  %v1329_v24 = vpop.eup %826  ;;  %v286_v48 = vmul.f32 %v280_v59, %v252_v17 }
  0x88   :  { %v543_v37 = vadd.f32 %v1325_v7, %v542_v12 }
  0x89   :  { %v283_v29 = vadd.f32 %v282_v9, %v281_v60 }
  0x8a   :  { %v544_v53 = vadd.f32 %v1329_v24, %v543_v37 }
  0x8b   :  { %v285_v10 = vadd.f32 %v284_v11, %v283_v29 }
  0x8c   :  { %830 = vrcp.f32 %v544_v53 }
  0x8d   :  { %v287_v55 = vadd.f32 %v286_v48, %v285_v10 }
  0x8e   :  { %v829_v22 = vpop.eup %828 }
  0x8f   :  { %v288_v19 = vsub.f32 %v259_v54, %v287_v55  ;;  %v290_v61 = vsub.f32 %v266_v5, %v287_v55  ;;  %v292_v30 = vsub.f32 %v273_v6, %v287_v55  ;;  %v294_v1 = vsub.f32 %v280_v59, %v287_v55 }
  0x90   :  { %v488_v2 = vmul.f32 %v829_v22, %v486_v34 }
  0x91   :  { %v289_v39 = vmul.f32 %v288_v19, %v249_v44  ;;  %v291_v18 = vmul.f32 %v290_v61, %v250_v52  ;;  %v293_v3 = vmul.f32 %v292_v30, %v251_v46  ;;  %v295_v4 = vmul.f32 %v294_v1, %v252_v17 }
  0x92   :  { %v489_v60 = vsub.f32 2.0, %v488_v2 }
  0x93   :  { %v296_v56 = vmul.f32 %v289_v39, %v992_v13  ;;  %v297_v0 = vmul.f32 %v291_v18, %v1033_v26  ;;  %v299_v43 = vmul.f32 %v293_v3, %v1057_v35  ;;  %v301_v9 = vmul.f32 %v295_v4, %v1081_v49 }
  0x94   :  { %v307_v11 = vmul.f32 %v289_v39, %v994_v14  ;;  %v310_v54 = vmul.f32 %v291_v18, %v1036_v27  ;;  %v314_v5 = vmul.f32 %v293_v3, %v1064_v40  ;;  %v326_v44 = vmul.f32 %v289_v39, %v996_v15 }
  0x95   :  { %v298_v34 = vadd.f32 %v297_v0, %v296_v56  ;;  %v329_v52 = vmul.f32 %v291_v18, %v1047_v31  ;;  %v333_v46 = vmul.f32 %v293_v3, %v1067_v41  ;;  %v318_v6 = vmul.f32 %v295_v4, %v1084_v50 }
  0x96   :  { %v311_v17 = vadd.f32 %v310_v54, %v307_v11  ;;  %v345_v59 = vmul.f32 %v289_v39, %v1023_v23  ;;  %v348_v12 = vmul.f32 %v291_v18, %v1051_v33  ;;  %v337_v37 = vmul.f32 %v295_v4, %v1087_v51  ;;  %v831_v55 = vpop.eup %830 }
  0x97   :  { %v300_v29 = vadd.f32 %v299_v43, %v298_v34  ;;  %v330_v48 = vadd.f32 %v329_v52, %v326_v44  ;;  %v352_v10 = vmul.f32 %v293_v3, %v1070_v42  ;;  %v356_v30 = vmul.f32 %v295_v4, %v1096_v58 }
  0x98   :  { %v315_v19 = vadd.f32 %v314_v5, %v311_v17  ;;  %v349_v61 = vadd.f32 %v348_v12, %v345_v59  ;;  %v490_v1 = vmul.f32 %v829_v22, %v489_v60  ;;  %v546_v0 = vmul.f32 %v831_v55, %v544_v53 }
  0x99   :  { %v302_v2 = vadd.f32 %v301_v9, %v300_v29  ;;  %v334_v56 = vadd.f32 %v333_v46, %v330_v48 }
  0x9a   :  { %v319_v11 = vadd.f32 %v318_v6, %v315_v19  ;;  %v353_v54 = vadd.f32 %v352_v10, %v349_v61  ;;  %v491_v39 = vmul.f32 %v1280_v47, %v490_v1  ;;  %v492_v3 = vmul.f32 %v1283_v21, %v490_v1 }
  0x9b   :  { %v304_v18 = vmul.f32 %v302_v2, %v302_v2  ;;  %v338_v43 = vadd.f32 %v337_v37, %v334_v56  ;;  %303 = vst [vmem:[%s1422_s6] sm:$0xff] %v302_v2  ;;  %v493_v22 = vmul.f32 %v1288_v57, %v490_v1  ;;  %v547_v47 = vsub.f32 2.0, %v546_v0 }
  0x9c   :  { %v322_v4 = vmul.f32 %v319_v11, %v319_v11  ;;  %v357_v60 = vadd.f32 %v356_v30, %v353_v54  ;;  %723 = vst [vmem:[%s1422_s6 + $0x8] sm:$0xff] %v319_v11  ;;  %v494_v9 = vmul.f32 %v1296_v20, %v490_v1  ;;  %v558_v34 = vmul.f32 %v491_v39, %v257_v32 }
  0x9d   :  { %v341_v53 = vmul.f32 %v338_v43, %v338_v43  ;;  %728 = vst [vmem:[%s1422_s6 + $0x10] sm:$0xff] %v338_v43  ;;  %v548_v5 = vmul.f32 %v831_v55, %v547_v47  ;;  %v565_v44 = vmul.f32 %v492_v3, %v264_v36  ;;  %v572_v52 = vmul.f32 %v493_v22, %v271_v45 }
  0x9e   :  { %v323_v21 = vadd.f32 %v322_v4, %v304_v18  ;;  %v360_v57 = vmul.f32 %v357_v60, %v357_v60  ;;  %733 = vst [vmem:[%s1422_s6 + $0x18] sm:$0xff] %v357_v60  ;;  %v579_v12 = vmul.f32 %v494_v9, %v278_v38 }
  0x9f   :  { %v549_v17 = vmul.f32 %v1321_v16, %v548_v5  ;;  %v550_v20 = vmul.f32 %v1323_v28, %v548_v5  ;;  %v551_v6 = vmul.f32 %v1325_v7, %v548_v5  ;;  %v552_v59 = vmul.f32 %v1329_v24, %v548_v5 }
  0xa0   :  { %v342_v46 = vadd.f32 %v341_v53, %v323_v21 }
  0xa1   :  { %v555_v48 = vmul.f32 %v549_v17, %v254_v62  ;;  %v562_v32 = vmul.f32 %v550_v20, %v261_v25  ;;  %v569_v36 = vmul.f32 %v551_v6, %v268_v8  ;;  %v576_v45 = vmul.f32 %v552_v59, %v275_v63 }
  0xa2   :  { %v361_v29 = vadd.f32 %v360_v57, %v342_v46 }
  0xa3   :  { %v559_v37 = vsub.f32 %v555_v48, %v558_v34  ;;  %v566_v16 = vsub.f32 %v562_v32, %v565_v44  ;;  %v573_v10 = vsub.f32 %v569_v36, %v572_v52  ;;  %v580_v28 = vsub.f32 %v576_v45, %v579_v12 }
  0xa4   :  { %362 = vadd.xlane.f32.xlu0 %v361_v29 }
  0xa5   :  { %v581_v55 = vmul.f32 %v559_v37, %v549_v17  ;;  %v582_v7 = vmul.f32 %v566_v16, %v550_v20  ;;  %v584_v19 = vmul.f32 %v573_v10, %v551_v6  ;;  %v586_v61 = vmul.f32 %v580_v28, %v552_v59 }
  0xa7   :  { %v583_v24 = vadd.f32 %v582_v7, %v581_v55 }
  0xa9   :  { %v585_v38 = vadd.f32 %v584_v19, %v583_v24 }
  0xab   :  { %v587_v30 = vadd.f32 %v586_v61, %v585_v38 }
  0xad   :  { %v588_v1 = vsub.f32 %v559_v37, %v587_v30  ;;  %v590_v62 = vsub.f32 %v566_v16, %v587_v30  ;;  %v592_v2 = vsub.f32 %v573_v10, %v587_v30  ;;  %v594_v25 = vsub.f32 %v580_v28, %v587_v30 }
  0xaf   :  { %v589_v56 = vmul.f32 %v588_v1, %v549_v17  ;;  %v591_v8 = vmul.f32 %v590_v62, %v550_v20  ;;  %v593_v0 = vmul.f32 %v592_v2, %v551_v6  ;;  %v595_v63 = vmul.f32 %v594_v25, %v552_v59 }
  0xb1   :  { %v596_v11 = vmul.f32 %v589_v56, %v992_v13  ;;  %v597_v54 = vmul.f32 %v591_v8, %v1033_v26  ;;  %v599_v39 = vmul.f32 %v593_v0, %v1057_v35  ;;  %v601_v18 = vmul.f32 %v595_v63, %v1081_v49 }
  0xb2   :  { %v608_v43 = vmul.f32 %v589_v56, %v994_v14  ;;  %v611_v3 = vmul.f32 %v591_v8, %v1036_v27  ;;  %v615_v22 = vmul.f32 %v593_v0, %v1064_v40  ;;  %v627_v60 = vmul.f32 %v589_v56, %v996_v15 }
  0xb3   :  { %v598_v4 = vadd.f32 %v597_v54, %v596_v11  ;;  %v630_v47 = vmul.f32 %v591_v8, %v1047_v31  ;;  %v634_v53 = vmul.f32 %v593_v0, %v1067_v41  ;;  %v619_v26 = vmul.f32 %v595_v63, %v1084_v50 }
  0xb4   :  { %v612_v13 = vadd.f32 %v611_v3, %v608_v43  ;;  %v646_v35 = vmul.f32 %v589_v56, %v1023_v23  ;;  %v649_v49 = vmul.f32 %v591_v8, %v1051_v33  ;;  %v638_v27 = vmul.f32 %v595_v63, %v1087_v51 }
  0xb5   :  { %v600_v9 = vadd.f32 %v599_v39, %v598_v4  ;;  %v631_v14 = vadd.f32 %v630_v47, %v627_v60  ;;  %v653_v40 = vmul.f32 %v593_v0, %v1070_v42  ;;  %v657_v15 = vmul.f32 %v595_v63, %v1096_v58 }
  0xb6   :  { %v616_v21 = vadd.f32 %v615_v22, %v612_v13  ;;  %v650_v57 = vadd.f32 %v649_v49, %v646_v35 }
  0xb7   :  { %v602_v31 = vadd.f32 %v601_v18, %v600_v9  ;;  %v635_v5 = vadd.f32 %v634_v53, %v631_v14 }
  0xb8   :  { %v620_v41 = vadd.f32 %v619_v26, %v616_v21  ;;  %v654_v34 = vadd.f32 %v653_v40, %v650_v57 }
  0xb9   :  { %v605_v44 = vmul.f32 %v602_v31, %v602_v31  ;;  %v639_v50 = vadd.f32 %v638_v27, %v635_v5  ;;  %768 = vst [vmem:[%s1422_s6 + $0x20] sm:$0xff] %v602_v31 }
  0xba   :  { %v623_v23 = vmul.f32 %v620_v41, %v620_v41  ;;  %v658_v33 = vadd.f32 %v657_v15, %v654_v34  ;;  %773 = vst [vmem:[%s1422_s6 + $0x28] sm:$0xff] %v620_v41 }
  0xbb   :  { %v642_v42 = vmul.f32 %v639_v50, %v639_v50  ;;  %778 = vst [vmem:[%s1422_s6 + $0x30] sm:$0xff] %v639_v50 }
  0xbc   :  { %v624_v51 = vadd.f32 %v623_v23, %v605_v44  ;;  %v661_v58 = vmul.f32 %v658_v33, %v658_v33  ;;  %783 = vst [vmem:[%s1422_s6 + $0x38] sm:$0xff] %v658_v33 }
  0xbe   :  { %v643_v52 = vadd.f32 %v642_v42, %v624_v51 }
  0xc0   :  { %v662_v46 = vadd.f32 %v661_v58, %v643_v52 }
  0xc2   :  { %663 = vadd.xlane.f32.xlu0 %v662_v46 }
 0x131   :  { %v363_v17 = vpop.xlane.xlu0 %362 }
 0x132   :  { %v364_v20 = vrot.slane %v363_v17, 4 }
 0x134   :  { %v365_v6 = vadd.f32 %v364_v20, %v363_v17 }
 0x136   :  { %v366_v59 = vrot.slane %v365_v6, 2 }
 0x138   :  { %v367_v12 = vadd.f32 %v366_v59, %v365_v6 }
 0x13a   :  { %v368_v29 = vrot.slane %v367_v12, 1 }
 0x13c   :  { %v369_v48 = vadd.f32 %v368_v29, %v367_v12 }
 0x13e   :  { %784 = vpush %v369_v48 }
 0x14f   :  { %v664_v32 = vpop.xlane.xlu0 %663 }
 0x150   :  { %v665_v36 = vrot.slane %v664_v32, 4 }
 0x152   :  { %v666_v45 = vadd.f32 %v665_v36, %v664_v32 }
 0x154   :  { %v667_v37 = vrot.slane %v666_v45, 2 }
 0x156   :  { %v668_v16 = vadd.f32 %v667_v37, %v666_v45 }
 0x158   :  { %v669_v10 = vrot.slane %v668_v16, 1 }
 0x15a   :  { %v670_v28 = vadd.f32 %v669_v10, %v668_v16 }
 0x15c   :  { %786 = vpush %v670_v28 }
 0x16f   :  { %s785_s6 = spop %784 }
 0x170   :  { %v672_v55 = vstv %s785_s6 }
 0x18d   :  { %s787_s14 = spop %786 }
 0x18e   :  { %v673_v7 = vstv %s787_s14 }
 0x18f   :  { %v675_v19 = vsel %vm674_vm0, %v672_v55, %v673_v7 }
 0x190   :  { %676 = vst [vmem:[%s1423_s7] sm:$0x3] %v675_v19 }
 0x191   :  { %685 = vsyncpa [#allocation3], 1 }
 0x192   :  { %686 = vsyncpa [#allocation5], 1 }
 0x193   :  { %687 = vsyncpa [#allocation8], 1 }

</bundles_post_ra>
